<compile_context>
chip_gen: v5e
topology: v5e:2x2
jax: 0.10.0
libtpu: 0.0.40
codegen_flags: <defaults>
</compile_context>

<pallas_src>
import numpy as np
import jax
import jax.numpy as jnp
from jax import lax
from jax.experimental import pallas as pl
from jax.experimental.pallas import tpu as pltpu

# grid=(B,) "parallel": v7x's two TensorCores take one batch element each (B>=2);
# on v5e/v6e the extra grid step costs ~0.35us, negligible.
CPARAMS = pltpu.CompilerParams(dimension_semantics=("parallel",))


# ----------------------------- in-kernel building blocks -----------------------------

def _fourier_attention(x, wq_ref, bq_ref, wa_ref, wb_ref, dft_ref, dsum_ref, iccat_ref):
    """AutoCorrelationLayer query projection + FourierBlock for one batch element.

    x: (T, D).  Returns the irfft output in torch-contiguous (H*E, T) layout so a raw
    row-major reshape outside the kernel reproduces the reference's `out.view(B, L, -1)`
    byte order exactly.  Key/value projections are skipped: FourierBlock never reads them.
    """
    H, M = wa_ref.shape[0], wa_ref.shape[1]
    E = wa_ref.shape[3]
    # rfft at the kept modes with the query projection applied to the 2M spectral rows instead
    # of the T time rows (2M <= T); the Wq bias enters only through the DC row since every
    # other DFT row sums to zero (dsum = rowsum(DFT)).
    ft = (jnp.dot(jnp.dot(dft_ref[...], x, preferred_element_type=jnp.float32),
                  wq_ref[...], preferred_element_type=jnp.float32)
          + dsum_ref[...] * bq_ref[...])                                   # (2M, D) = [Re; Im]
    ftr, fti = ft[:M], ft[M:]

    # Per-(head, mode) complex ExE channel mix with compact bf16 weights.  Each map is too
    # small for an MXU launch, so it runs on the VPU as broadcast-multiply + lane-axis reduce,
    # vectorised over all modes at once (no per-mode Python loop, no block-diagonal expansion).
    o_re, o_im = [], []
    for h in range(H):                                                     # static unroll
        sl = slice(h * E, (h + 1) * E)
        wa = wa_ref[h].astype(jnp.float32)                                 # (M, 2E, E)
        wb = wb_ref[h].astype(jnp.float32)
        ftr_h = ftr[:, sl][:, None, :]                                     # (M, 1, E)
        fti_h = fti[:, sl][:, None, :]
        o_h = jnp.sum(ftr_h * wa + fti_h * wb, axis=-1)                    # (M, 2E) = [O_re|O_im]
        o_re.append(o_h[:, :E])
        o_im.append(o_h[:, E:])
    o_stack = jnp.concatenate([jnp.concatenate(o_re, axis=1),
                               jnp.concatenate(o_im, axis=1)], axis=0)     # (2M, D)

    # irfft(n=T) over the kept bins as a single stacked matmul, contracting the mode axis of
    # both operands so the result comes out directly in (D, T) orientation (no XLU transpose).
    return lax.dot_general(o_stack, iccat_ref[...],
                           dimension_numbers=(((0,), (0,)), ((), ())),
                           preferred_element_type=jnp.float32)             # (D, T) torch layout


def _post_layer(x, fview, wo, ima, wc1, wc2):
    """EncoderLayer tail: out_projection + residual + decomp1 + Conv1d(k=1) FFN (ReLU) + decomp2.

    The out_projection bias is dropped: every row of (I - MA) sums to 0, so decomp1 annihilates
    any per-channel constant added uniformly over time.
    """
    new_x = jnp.dot(fview, wo, preferred_element_type=jnp.float32)
    x1 = jnp.dot(ima, x + new_x, preferred_element_type=jnp.float32)       # (I - MA) @ (x + new_x)
    y = jnp.maximum(jnp.dot(x1, wc1, preferred_element_type=jnp.float32), 0.0)
    y = jnp.dot(y, wc2, preferred_element_type=jnp.float32)
    # TODO(synk): for T >~ 128 replace the dense (T,T) decomposition with a cumsum moving average.
    return jnp.dot(ima, x1 + y, preferred_element_type=jnp.float32)        # decomp2


# ----------------------------- Pallas kernels -----------------------------

def embed_attn_kernel(x_ref, m_ref, wex_ref, wem_ref, posb_ref,
                      wq_ref, bq_ref, wa_ref, wb_ref, dft_ref, dsum_ref, iccat_ref,
                      enc_ref, attn_ref):
    # SaitsEmbedding (Linear on [X, mask] split in two + sinusoidal positions with the bias
    # folded in) fused with layer 0's Fourier attention.
    x = (jnp.dot(x_ref[0], wex_ref[...], preferred_element_type=jnp.float32)
         + jnp.dot(m_ref[0], wem_ref[...], preferred_element_type=jnp.float32)
         + posb_ref[...])
    enc_ref[0] = x.astype(enc_ref.dtype)
    attn_ref[0] = _fourier_attention(x, wq_ref, bq_ref, wa_ref, wb_ref,
                                     dft_ref, dsum_ref, iccat_ref).astype(attn_ref.dtype)


def post_attn_kernel(x_ref, fv_ref, wo_ref, ima_ref, wc1_ref, wc2_ref,
                     wq_ref, bq_ref, wa_ref, wb_ref, dft_ref, dsum_ref, iccat_ref,
                     xout_ref, attn_ref):
    # Tail of encoder layer i-1 fused with the Fourier attention of layer i.
    x = _post_layer(x_ref[0], fv_ref[0], wo_ref[...], ima_ref[...], wc1_ref[...], wc2_ref[...])
    xout_ref[0] = x.astype(xout_ref.dtype)
    attn_ref[0] = _fourier_attention(x, wq_ref, bq_ref, wa_ref, wb_ref,
                                     dft_ref, dsum_ref, iccat_ref).astype(attn_ref.dtype)


def post_norm_out_kernel(x_ref, fv_ref, wo_ref, ima_ref, wc1_ref, wc2_ref,
                         gamma_ref, beta_ref, wout_ref, bout_ref, xin_ref, mask_ref,
                         out_ref):
    # Tail of the last encoder layer + SeasonalLayerNorm + output_projection + imputation mix.
    x = _post_layer(x_ref[0], fv_ref[0], wo_ref[...], ima_ref[...], wc1_ref[...], wc2_ref[...])
    mean = jnp.mean(x, axis=-1, keepdims=True)
    var = jnp.mean((x - mean) ** 2, axis=-1, keepdims=True)
    x_hat = (x - mean) * lax.rsqrt(var + 1e-5) * gamma_ref[...] + beta_ref[...]
    x_hat = x_hat - jnp.mean(x_hat, axis=0, keepdims=True)   # seasonal: remove per-feature time mean
    recon = jnp.dot(x_hat, wout_ref[...], preferred_element_type=jnp.float32) + bout_ref[...]
    m = mask_ref[0]
    out_ref[0] = (m * xin_ref[0] + (1.0 - m) * recon).astype(out_ref.dtype)


# ----------------------------- constants / params -----------------------------

def sinusoid_pos_table(n_steps, d_model):
    pos = np.arange(n_steps, dtype=np.float64)[:, None]
    div = np.exp(np.arange(0, d_model, 2, dtype=np.float64) * (-np.log(10000.0) / d_model))
    pe = np.zeros((n_steps, d_model), dtype=np.float64)
    pe[:, 0::2] = np.sin(pos * div)
    pe[:, 1::2] = np.cos(pos * div)
    return pe


def build_constants(T, K_ma, modes):
    # get_frequency_modes: with modes >= T//2 the 'random' selection degenerates to all
    # low-frequency modes [0, T//2) (our config), so the DFT operators below are exact.
    n_modes = min(modes, T // 2)
    k = np.arange(n_modes, dtype=np.float64)[:, None]
    t = np.arange(T, dtype=np.float64)[None, :]
    ang = 2.0 * np.pi * k * t / T
    # Stacked rfft operator: rows [0,M) real part (cos), rows [M,2M) imag part (-sin).
    DFT = np.concatenate([np.cos(ang), -np.sin(ang)], axis=0)           # (2M, T)
    DSUM = DFT.sum(axis=1, keepdims=True)                               # (2M, 1): folds Wq bias in
    # Stacked irfft(n=T) operator over the kept bins, mode-major (time on lanes).  The DC bin's
    # imaginary part is ignored (C2R); the Nyquist bin is never kept (modes drawn from [0, T//2)).
    ICr = (np.where(k == 0, 1.0, 2.0) / T) * np.cos(ang)                # (M, T)
    ICs = np.where(k == 0, 0.0, -2.0 / T) * np.sin(ang)                 # (M, T)
    ICcat = np.concatenate([ICr, ICs], axis=0)                          # (2M, T)
    # MovingAvgBlock (replicate padding + AvgPool1d(k, stride=1)) as a dense (T, T) operator;
    # the series_decomp residual is the single matmul (I - MA) @ x.
    pad = (K_ma - 1) // 2
    MA = np.zeros((T, T), dtype=np.float64)
    for to in range(T):
        for j in range(to, to + K_ma):
            s = min(max(j - pad, 0), T - 1)
            MA[to, s] += 1.0 / K_ma
    IMA = np.eye(T) - MA

    f32 = lambda a: jnp.asarray(a, jnp.float32)
    return dict(DFT=f32(DFT), DSUM=f32(DSUM), ICcat=f32(ICcat), IMA=f32(IMA), n_modes=n_modes)


def init_params(key, cfg, n_modes):
    T, F, D = cfg["n_steps"], cfg["n_features"], cfg["d_model"]
    H, dff, nl = cfg["n_heads"], cfg["d_ffn"], cfg["n_layers"]
    E = D // H
    keys = jax.random.split(key, 4 + nl)

    def linear(k, fan_in, fan_out):
        k1, k2 = jax.random.split(k)
        bound = 1.0 / np.sqrt(fan_in)
        W = jax.random.uniform(k1, (fan_in, fan_out), jnp.float32, -bound, bound)
        b = jax.random.uniform(k2, (1, fan_out), jnp.float32, -bound, bound)
        return W, b

    We, be = linear(keys[0], 2 * F, D)
    Wout, bout = linear(keys[1], D, F)
    pos = jnp.asarray(sinusoid_pos_table(T, D), jnp.float32)
    posb = pos + be                      # fold the embedding bias into the positional table
    WeX, WeM = We[:F], We[F:]            # split -> no (B, T, 2F) concat materialised in XLA
    gamma = jnp.ones((1, D), jnp.float32)
    beta = jnp.zeros((1, D), jnp.float32)

    layers = []
    for li in range(nl):
        lk = jax.random.split(keys[4 + li], 6)
        Wq, bq = linear(lk[0], D, D)
        Wo, _bo = linear(lk[1], D, D)     # out_projection bias is annihilated by decomp1 (dropped)
        b1 = 1.0 / np.sqrt(D)
        Wc1 = jax.random.uniform(lk[2], (D, dff), jnp.float32, -b1, b1)   # Conv1d(D->dff, k=1), no bias
        b2 = 1.0 / np.sqrt(dff)
        Wc2 = jax.random.uniform(lk[3], (dff, D), jnp.float32, -b2, b2)   # Conv1d(dff->D, k=1), no bias
        # FourierBlock complex weights, scale 1/(D*D), uniform [0,1) real & imag (as in torch.rand).
        scale = 1.0 / (D * D)
        Wre = scale * jax.random.uniform(lk[4], (H, n_modes, E, E), jnp.float32)
        Wim = scale * jax.random.uniform(lk[5], (H, n_modes, E, E), jnp.float32)
        # Complex mode mixing folded into two real weights, kept compact per head and stored
        # transposed to (H, M, 2E, E) so the kernel contraction is a lane-axis reduce:
        #   O[m, 0:E]  = sum_i ftr[m,i]*Wre[m,i,:] - fti[m,i]*Wim[m,i,:]
        #   O[m, E:2E] = sum_i ftr[m,i]*Wim[m,i,:] + fti[m,i]*Wre[m,i,:]
        Wa = jnp.transpose(jnp.concatenate([Wre, Wim], axis=-1), (0, 1, 3, 2))    # (H, M, 2E, E)
        Wb = jnp.transpose(jnp.concatenate([-Wim, Wre], axis=-1), (0, 1, 3, 2))   # (H, M, 2E, E)
        layers.append(dict(Wq=Wq, bq=bq,
                           Wa=Wa.astype(jnp.bfloat16), Wb=Wb.astype(jnp.bfloat16),
                           Wo=Wo, Wc1=Wc1, Wc2=Wc2))

    return dict(WeX=WeX, WeM=WeM, posb=posb, gamma=gamma, beta=beta, Wout=Wout, bout=bout,
                layers=layers)


# ----------------------------- forward -----------------------------

def make_forward(cfg, consts):
    T, F, D = cfg["n_steps"], cfg["n_features"], cfg["d_model"]
    H, dff, nl = cfg["n_heads"], cfg["d_ffn"], cfg["n_layers"]
    E = D // H
    M = consts["n_modes"]

    # TODO(synk): at production sizes add pipeline_mode=pl.Buffered(1) to these constant-index
    #             weight specs (single-buffer) and set vmem_limit_bytes in CompilerParams.
    def bspec(shape):
        nd = len(shape)
        return pl.BlockSpec(shape, lambda b: (0,) * nd)

    def batched(shape):
        nd = len(shape)
        return pl.BlockSpec((1,) + shape, lambda b: (b,) + (0,) * nd)

    attn_specs = [bspec((D, D)), bspec((1, D)),
                  bspec((H, M, 2 * E, E)), bspec((H, M, 2 * E, E)),
                  bspec((2 * M, T)), bspec((2 * M, 1)), bspec((2 * M, T))]
    post_specs = [bspec((D, D)), bspec((T, T)), bspec((D, dff)), bspec((dff, D))]

    def forward(params, X, missing_mask):
        B = X.shape[0]
        layers = params["layers"]
        cargs = (consts["DFT"], consts["DSUM"], consts["ICcat"])

        # ---- call 0: SaitsEmbedding + Fourier attention of layer 0 ----
        lp = layers[0]
        enc, attn_t = pl.pallas_call(
            embed_attn_kernel,
            out_shape=(jax.ShapeDtypeStruct((B, T, D), jnp.float32),
                       jax.ShapeDtypeStruct((B, D, T), jnp.float32)),
            grid=(B,),
            in_specs=[batched((T, F)), batched((T, F)), bspec((F, D)), bspec((F, D)),
                      bspec((T, D))] + attn_specs,
            out_specs=(batched((T, D)), batched((D, T))),
            compiler_params=CPARAMS,
        )(X, missing_mask, params["WeX"], params["WeM"], params["posb"],
          lp["Wq"], lp["bq"], lp["Wa"], lp["Wb"], *cargs)

        # ---- calls 1..n_layers-1: tail of layer i-1 + Fourier attention of layer i ----
        for i in range(1, nl):
            prev, lp = layers[i - 1], layers[i]
            fview = attn_t.reshape(B, T, D)    # torch's out.view(B, L, -1): zero-copy XLA re-view
            enc, attn_t = pl.pallas_call(
                post_attn_kernel,
                out_shape=(jax.ShapeDtypeStruct((B, T, D), jnp.float32),
                           jax.ShapeDtypeStruct((B, D, T), jnp.float32)),
                grid=(B,),
                in_specs=[batched((T, D)), batched((T, D))] + post_specs + attn_specs,
                out_specs=(batched((T, D)), batched((D, T))),
                compiler_params=CPARAMS,
            )(enc, fview, prev["Wo"], consts["IMA"], prev["Wc1"], prev["Wc2"],
              lp["Wq"], lp["bq"], lp["Wa"], lp["Wb"], *cargs)

        # ---- final call: tail of last layer + SeasonalLayerNorm + projection + imputation ----
        last = layers[nl - 1]
        fview = attn_t.reshape(B, T, D)
        imputed = pl.pallas_call(
            post_norm_out_kernel,
            out_shape=jax.ShapeDtypeStruct((B, T, F), jnp.float32),
            grid=(B,),
            in_specs=[batched((T, D)), batched((T, D))] + post_specs
                     + [bspec((1, D)), bspec((1, D)), bspec((D, F)), bspec((1, F)),
                        batched((T, F)), batched((T, F))],
            out_specs=batched((T, F)),
            compiler_params=CPARAMS,
        )(enc, fview, last["Wo"], consts["IMA"], last["Wc1"], last["Wc2"],
          params["gamma"], params["beta"], params["Wout"], params["bout"], X, missing_mask)
        return imputed

    return forward


if __name__ == "__main__":
    cfg = dict(n_steps=8, n_features=4, n_layers=2, d_model=32, n_heads=8, d_ffn=64,
               moving_avg_window_size=5, modes=32)
    B, T, F = 2, cfg["n_steps"], cfg["n_features"]

    consts = build_constants(T, cfg["moving_avg_window_size"], cfg["modes"])
    key = jax.random.PRNGKey(0)
    kx, km, kp = jax.random.split(key, 3)
    params = init_params(kp, cfg, consts["n_modes"])

    missing_mask = (jax.random.uniform(km, (B, T, F)) > 0.3).astype(jnp.float32)
    X = jax.random.normal(kx, (B, T, F), jnp.float32) * missing_mask       # missing entries zeroed

    forward = make_forward(cfg, consts)
    imputed = jax.jit(forward)(params, X, missing_mask)
    jax.block_until_ready(imputed)
    assert imputed.shape == (B, T, F) and imputed.dtype == jnp.float32
    assert bool(jnp.all(jnp.isfinite(imputed)))
    print("KERNEL_OK")
</pallas_src>

<mosaic_0001>
module attributes {stable_mosaic.version = 11 : i64} {
  func.func @embed_attn_kernel(%arg0: i32, %arg1: memref<1x8x4xf32, #tpu.memory_space<vmem>>, %arg2: memref<1x8x4xf32, #tpu.memory_space<vmem>>, %arg3: memref<4x32xf32, #tpu.memory_space<vmem>>, %arg4: memref<4x32xf32, #tpu.memory_space<vmem>>, %arg5: memref<8x32xf32, #tpu.memory_space<vmem>>, %arg6: memref<32x32xf32, #tpu.memory_space<vmem>>, %arg7: memref<1x32xf32, #tpu.memory_space<vmem>>, %arg8: memref<8x4x8x4xbf16, #tpu.memory_space<vmem>>, %arg9: memref<8x4x8x4xbf16, #tpu.memory_space<vmem>>, %arg10: memref<8x8xf32, #tpu.memory_space<vmem>>, %arg11: memref<8x1xf32, #tpu.memory_space<vmem>>, %arg12: memref<8x8xf32, #tpu.memory_space<vmem>>, %arg13: memref<1x8x32xf32, #tpu.memory_space<vmem>>, %arg14: memref<1x32x8xf32, #tpu.memory_space<vmem>>) attributes {dimension_semantics = [#tpu.dimension_semantics<parallel>], iteration_bounds = array<i64: 2>, scalar_prefetch = 0 : i64, scratch_operands = 0 : i64, tpu.core_type = #tpu.core_type<tc>, window_params = [{transform_indices = @transform_0, window_bounds = array<i64: 1, 8, 4>}, {transform_indices = @transform_1, window_bounds = array<i64: 1, 8, 4>}, {pipeline_mode = #tpu.pipeline_mode<synchronous>, transform_indices = @transform_2, window_bounds = array<i64: 4, 32>}, {pipeline_mode = #tpu.pipeline_mode<synchronous>, transform_indices = @transform_3, window_bounds = array<i64: 4, 32>}, {pipeline_mode = #tpu.pipeline_mode<synchronous>, transform_indices = @transform_4, window_bounds = array<i64: 8, 32>}, {pipeline_mode = #tpu.pipeline_mode<synchronous>, transform_indices = @transform_5, window_bounds = array<i64: 32, 32>}, {pipeline_mode = #tpu.pipeline_mode<synchronous>, transform_indices = @transform_6, window_bounds = array<i64: 1, 32>}, {pipeline_mode = #tpu.pipeline_mode<synchronous>, transform_indices = @transform_7, window_bounds = array<i64: 8, 4, 8, 4>}, {pipeline_mode = #tpu.pipeline_mode<synchronous>, transform_indices = @transform_8, window_bounds = array<i64: 8, 4, 8, 4>}, {pipeline_mode = #tpu.pipeline_mode<synchronous>, transform_indices = @transform_9, window_bounds = array<i64: 8, 8>}, {pipeline_mode = #tpu.pipeline_mode<synchronous>, transform_indices = @transform_10, window_bounds = array<i64: 8, 1>}, {pipeline_mode = #tpu.pipeline_mode<synchronous>, transform_indices = @transform_11, window_bounds = array<i64: 8, 8>}, {transform_indices = @transform_12, window_bounds = array<i64: 1, 8, 32>}, {transform_indices = @transform_13, window_bounds = array<i64: 1, 32, 8>}]} {
    %c0 = arith.constant 0 : index
    %c0_0 = arith.constant 0 : index
    %c0_1 = arith.constant 0 : index
    %0 = vector.load %arg1[%c0, %c0_0, %c0_1] : memref<1x8x4xf32, #tpu.memory_space<vmem>>, vector<1x8x4xf32>
    %1 = vector.shape_cast %0 : vector<1x8x4xf32> to vector<8x4xf32>
    %c0_2 = arith.constant 0 : index
    %c0_3 = arith.constant 0 : index
    %2 = vector.load %arg3[%c0_2, %c0_3] : memref<4x32xf32, #tpu.memory_space<vmem>>, vector<4x32xf32>
    %cst = arith.constant dense<0.000000e+00> : vector<8x32xf32>
    %3 = tpu.matmul %1, %2, %cst {dimension_numbers = #tpu.dot_dimension_numbers<[1], [0], [0], [1], [0, 0, 1, 1], [], []>} : vector<8x4xf32>, vector<4x32xf32>, vector<8x32xf32> -> vector<8x32xf32>
    %c0_4 = arith.constant 0 : index
    %c0_5 = arith.constant 0 : index
    %c0_6 = arith.constant 0 : index
    %4 = vector.load %arg2[%c0_4, %c0_5, %c0_6] : memref<1x8x4xf32, #tpu.memory_space<vmem>>, vector<1x8x4xf32>
    %5 = vector.shape_cast %4 : vector<1x8x4xf32> to vector<8x4xf32>
    %c0_7 = arith.constant 0 : index
    %c0_8 = arith.constant 0 : index
    %6 = vector.load %arg4[%c0_7, %c0_8] : memref<4x32xf32, #tpu.memory_space<vmem>>, vector<4x32xf32>
    %cst_9 = arith.constant dense<0.000000e+00> : vector<8x32xf32>
    %7 = tpu.matmul %5, %6, %cst_9 {dimension_numbers = #tpu.dot_dimension_numbers<[1], [0], [0], [1], [0, 0, 1, 1], [], []>} : vector<8x4xf32>, vector<4x32xf32>, vector<8x32xf32> -> vector<8x32xf32>
    %8 = arith.addf %3, %7 : vector<8x32xf32>
    %c0_10 = arith.constant 0 : index
    %c0_11 = arith.constant 0 : index
    %9 = vector.load %arg5[%c0_10, %c0_11] : memref<8x32xf32, #tpu.memory_space<vmem>>, vector<8x32xf32>
    %10 = arith.addf %8, %9 : vector<8x32xf32>
    %c0_12 = arith.constant 0 : index
    %c0_13 = arith.constant 0 : index
    %c0_14 = arith.constant 0 : index
    %11 = vector.load %arg13[%c0_12, %c0_13, %c0_14] : memref<1x8x32xf32, #tpu.memory_space<vmem>>, vector<1x8x32xf32>
    %12 = vector.shape_cast %11 : vector<1x8x32xf32> to vector<8x32xf32>
    %13 = vector.shape_cast %10 : vector<8x32xf32> to vector<1x8x32xf32>
    tpu.vector_store %arg13[%c0_12, %c0_13, %c0_14], %13 {strides = array<i32>} : memref<1x8x32xf32, #tpu.memory_space<vmem>>, vector<1x8x32xf32>,
    %c0_15 = arith.constant 0 : index
    %c0_16 = arith.constant 0 : index
    %14 = vector.load %arg10[%c0_15, %c0_16] : memref<8x8xf32, #tpu.memory_space<vmem>>, vector<8x8xf32>
    %cst_17 = arith.constant dense<0.000000e+00> : vector<8x32xf32>
    %15 = tpu.matmul %14, %10, %cst_17 {dimension_numbers = #tpu.dot_dimension_numbers<[1], [0], [0], [1], [0, 0, 1, 1], [], []>} : vector<8x8xf32>, vector<8x32xf32>, vector<8x32xf32> -> vector<8x32xf32>
    %c0_18 = arith.constant 0 : index
    %c0_19 = arith.constant 0 : index
    %16 = vector.load %arg6[%c0_18, %c0_19] : memref<32x32xf32, #tpu.memory_space<vmem>>, vector<32x32xf32>
    %cst_20 = arith.constant dense<0.000000e+00> : vector<8x32xf32>
    %17 = tpu.matmul %15, %16, %cst_20 {dimension_numbers = #tpu.dot_dimension_numbers<[1], [0], [0], [1], [0, 0, 1, 1], [], []>} : vector<8x32xf32>, vector<32x32xf32>, vector<8x32xf32> -> vector<8x32xf32>
    %c0_21 = arith.constant 0 : index
    %c0_22 = arith.constant 0 : index
    %18 = vector.load %arg11[%c0_21, %c0_22] : memref<8x1xf32, #tpu.memory_space<vmem>>, vector<8x1xf32>
    %c0_23 = arith.constant 0 : index
    %c0_24 = arith.constant 0 : index
    %19 = vector.load %arg7[%c0_23, %c0_24] : memref<1x32xf32, #tpu.memory_space<vmem>>, vector<1x32xf32>
    %20 = vector.broadcast %18 : vector<8x1xf32> to vector<8x32xf32>
    %21 = vector.broadcast %19 : vector<1x32xf32> to vector<8x32xf32>
    %22 = arith.mulf %20, %21 : vector<8x32xf32>
    %23 = arith.addf %17, %22 : vector<8x32xf32>
    %24 = vector.extract_strided_slice %23 {offsets = [0, 0], sizes = [4, 32], strides = [1, 1]} : vector<8x32xf32> to vector<4x32xf32>
    %25 = vector.extract_strided_slice %23 {offsets = [4, 0], sizes = [4, 32], strides = [1, 1]} : vector<8x32xf32> to vector<4x32xf32>
    %c0_25 = arith.constant 0 : index
    %c0_26 = arith.constant 0 : index
    %c0_27 = arith.constant 0 : index
    %c0_28 = arith.constant 0 : index
    %26 = vector.load %arg8[%c0_25, %c0_26, %c0_27, %c0_28] : memref<8x4x8x4xbf16, #tpu.memory_space<vmem>>, vector<1x4x8x4xbf16>
    %27 = vector.shape_cast %26 : vector<1x4x8x4xbf16> to vector<4x8x4xbf16>
    %28 = arith.extf %27 : vector<4x8x4xbf16> to vector<4x8x4xf32>
    %c0_29 = arith.constant 0 : index
    %c0_30 = arith.constant 0 : index
    %c0_31 = arith.constant 0 : index
    %c0_32 = arith.constant 0 : index
    %29 = vector.load %arg9[%c0_29, %c0_30, %c0_31, %c0_32] : memref<8x4x8x4xbf16, #tpu.memory_space<vmem>>, vector<1x4x8x4xbf16>
    %30 = vector.shape_cast %29 : vector<1x4x8x4xbf16> to vector<4x8x4xbf16>
    %31 = arith.extf %30 : vector<4x8x4xbf16> to vector<4x8x4xf32>
    %32 = vector.extract_strided_slice %24 {offsets = [0, 0], sizes = [4, 4], strides = [1, 1]} : vector<4x32xf32> to vector<4x4xf32>
    %33 = vector.shape_cast %32 : vector<4x4xf32> to vector<4x1x4xf32>
    %34 = vector.extract_strided_slice %25 {offsets = [0, 0], sizes = [4, 4], strides = [1, 1]} : vector<4x32xf32> to vector<4x4xf32>
    %35 = vector.shape_cast %34 : vector<4x4xf32> to vector<4x1x4xf32>
    %36 = vector.broadcast %33 : vector<4x1x4xf32> to vector<4x8x4xf32>
    %37 = arith.mulf %36, %28 : vector<4x8x4xf32>
    %38 = vector.broadcast %35 : vector<4x1x4xf32> to vector<4x8x4xf32>
    %39 = arith.mulf %38, %31 : vector<4x8x4xf32>
    %40 = arith.addf %37, %39 : vector<4x8x4xf32>
    %cst_33 = arith.constant dense<0.000000e+00> : vector<4x8xf32>
    %41 = vector.multi_reduction <add>, %40, %cst_33 [2] : vector<4x8x4xf32> to vector<4x8xf32>
    %42 = vector.extract_strided_slice %41 {offsets = [0, 0], sizes = [4, 4], strides = [1, 1]} : vector<4x8xf32> to vector<4x4xf32>
    %43 = vector.extract_strided_slice %41 {offsets = [0, 4], sizes = [4, 4], strides = [1, 1]} : vector<4x8xf32> to vector<4x4xf32>
    %c1 = arith.constant 1 : index
    %c0_34 = arith.constant 0 : index
    %c0_35 = arith.constant 0 : index
    %c0_36 = arith.constant 0 : index
    %44 = vector.load %arg8[%c1, %c0_34, %c0_35, %c0_36] : memref<8x4x8x4xbf16, #tpu.memory_space<vmem>>, vector<1x4x8x4xbf16>
    %45 = vector.shape_cast %44 : vector<1x4x8x4xbf16> to vector<4x8x4xbf16>
    %46 = arith.extf %45 : vector<4x8x4xbf16> to vector<4x8x4xf32>
    %c1_37 = arith.constant 1 : index
    %c0_38 = arith.constant 0 : index
    %c0_39 = arith.constant 0 : index
    %c0_40 = arith.constant 0 : index
    %47 = vector.load %arg9[%c1_37, %c0_38, %c0_39, %c0_40] : memref<8x4x8x4xbf16, #tpu.memory_space<vmem>>, vector<1x4x8x4xbf16>
    %48 = vector.shape_cast %47 : vector<1x4x8x4xbf16> to vector<4x8x4xbf16>
    %49 = arith.extf %48 : vector<4x8x4xbf16> to vector<4x8x4xf32>
    %50 = vector.extract_strided_slice %24 {offsets = [0, 4], sizes = [4, 4], strides = [1, 1]} : vector<4x32xf32> to vector<4x4xf32>
    %51 = vector.shape_cast %50 : vector<4x4xf32> to vector<4x1x4xf32>
    %52 = vector.extract_strided_slice %25 {offsets = [0, 4], sizes = [4, 4], strides = [1, 1]} : vector<4x32xf32> to vector<4x4xf32>
    %53 = vector.shape_cast %52 : vector<4x4xf32> to vector<4x1x4xf32>
    %54 = vector.broadcast %51 : vector<4x1x4xf32> to vector<4x8x4xf32>
    %55 = arith.mulf %54, %46 : vector<4x8x4xf32>
    %56 = vector.broadcast %53 : vector<4x1x4xf32> to vector<4x8x4xf32>
    %57 = arith.mulf %56, %49 : vector<4x8x4xf32>
    %58 = arith.addf %55, %57 : vector<4x8x4xf32>
    %cst_41 = arith.constant dense<0.000000e+00> : vector<4x8xf32>
    %59 = vector.multi_reduction <add>, %58, %cst_41 [2] : vector<4x8x4xf32> to vector<4x8xf32>
    %60 = vector.extract_strided_slice %59 {offsets = [0, 0], sizes = [4, 4], strides = [1, 1]} : vector<4x8xf32> to vector<4x4xf32>
    %61 = vector.extract_strided_slice %59 {offsets = [0, 4], sizes = [4, 4], strides = [1, 1]} : vector<4x8xf32> to vector<4x4xf32>
    %c2 = arith.constant 2 : index
    %c0_42 = arith.constant 0 : index
    %c0_43 = arith.constant 0 : index
    %c0_44 = arith.constant 0 : index
    %62 = vector.load %arg8[%c2, %c0_42, %c0_43, %c0_44] : memref<8x4x8x4xbf16, #tpu.memory_space<vmem>>, vector<1x4x8x4xbf16>
    %63 = vector.shape_cast %62 : vector<1x4x8x4xbf16> to vector<4x8x4xbf16>
    %64 = arith.extf %63 : vector<4x8x4xbf16> to vector<4x8x4xf32>
    %c2_45 = arith.constant 2 : index
    %c0_46 = arith.constant 0 : index
    %c0_47 = arith.constant 0 : index
    %c0_48 = arith.constant 0 : index
    %65 = vector.load %arg9[%c2_45, %c0_46, %c0_47, %c0_48] : memref<8x4x8x4xbf16, #tpu.memory_space<vmem>>, vector<1x4x8x4xbf16>
    %66 = vector.shape_cast %65 : vector<1x4x8x4xbf16> to vector<4x8x4xbf16>
    %67 = arith.extf %66 : vector<4x8x4xbf16> to vector<4x8x4xf32>
    %68 = vector.extract_strided_slice %24 {offsets = [0, 8], sizes = [4, 4], strides = [1, 1]} : vector<4x32xf32> to vector<4x4xf32>
    %69 = vector.shape_cast %68 : vector<4x4xf32> to vector<4x1x4xf32>
    %70 = vector.extract_strided_slice %25 {offsets = [0, 8], sizes = [4, 4], strides = [1, 1]} : vector<4x32xf32> to vector<4x4xf32>
    %71 = vector.shape_cast %70 : vector<4x4xf32> to vector<4x1x4xf32>
    %72 = vector.broadcast %69 : vector<4x1x4xf32> to vector<4x8x4xf32>
    %73 = arith.mulf %72, %64 : vector<4x8x4xf32>
    %74 = vector.broadcast %71 : vector<4x1x4xf32> to vector<4x8x4xf32>
    %75 = arith.mulf %74, %67 : vector<4x8x4xf32>
    %76 = arith.addf %73, %75 : vector<4x8x4xf32>
    %cst_49 = arith.constant dense<0.000000e+00> : vector<4x8xf32>
    %77 = vector.multi_reduction <add>, %76, %cst_49 [2] : vector<4x8x4xf32> to vector<4x8xf32>
    %78 = vector.extract_strided_slice %77 {offsets = [0, 0], sizes = [4, 4], strides = [1, 1]} : vector<4x8xf32> to vector<4x4xf32>
    %79 = vector.extract_strided_slice %77 {offsets = [0, 4], sizes = [4, 4], strides = [1, 1]} : vector<4x8xf32> to vector<4x4xf32>
    %c3 = arith.constant 3 : index
    %c0_50 = arith.constant 0 : index
    %c0_51 = arith.constant 0 : index
    %c0_52 = arith.constant 0 : index
    %80 = vector.load %arg8[%c3, %c0_50, %c0_51, %c0_52] : memref<8x4x8x4xbf16, #tpu.memory_space<vmem>>, vector<1x4x8x4xbf16>
    %81 = vector.shape_cast %80 : vector<1x4x8x4xbf16> to vector<4x8x4xbf16>
    %82 = arith.extf %81 : vector<4x8x4xbf16> to vector<4x8x4xf32>
    %c3_53 = arith.constant 3 : index
    %c0_54 = arith.constant 0 : index
    %c0_55 = arith.constant 0 : index
    %c0_56 = arith.constant 0 : index
    %83 = vector.load %arg9[%c3_53, %c0_54, %c0_55, %c0_56] : memref<8x4x8x4xbf16, #tpu.memory_space<vmem>>, vector<1x4x8x4xbf16>
    %84 = vector.shape_cast %83 : vector<1x4x8x4xbf16> to vector<4x8x4xbf16>
    %85 = arith.extf %84 : vector<4x8x4xbf16> to vector<4x8x4xf32>
    %86 = vector.extract_strided_slice %24 {offsets = [0, 12], sizes = [4, 4], strides = [1, 1]} : vector<4x32xf32> to vector<4x4xf32>
    %87 = vector.shape_cast %86 : vector<4x4xf32> to vector<4x1x4xf32>
    %88 = vector.extract_strided_slice %25 {offsets = [0, 12], sizes = [4, 4], strides = [1, 1]} : vector<4x32xf32> to vector<4x4xf32>
    %89 = vector.shape_cast %88 : vector<4x4xf32> to vector<4x1x4xf32>
    %90 = vector.broadcast %87 : vector<4x1x4xf32> to vector<4x8x4xf32>
    %91 = arith.mulf %90, %82 : vector<4x8x4xf32>
    %92 = vector.broadcast %89 : vector<4x1x4xf32> to vector<4x8x4xf32>
    %93 = arith.mulf %92, %85 : vector<4x8x4xf32>
    %94 = arith.addf %91, %93 : vector<4x8x4xf32>
    %cst_57 = arith.constant dense<0.000000e+00> : vector<4x8xf32>
    %95 = vector.multi_reduction <add>, %94, %cst_57 [2] : vector<4x8x4xf32> to vector<4x8xf32>
    %96 = vector.extract_strided_slice %95 {offsets = [0, 0], sizes = [4, 4], strides = [1, 1]} : vector<4x8xf32> to vector<4x4xf32>
    %97 = vector.extract_strided_slice %95 {offsets = [0, 4], sizes = [4, 4], strides = [1, 1]} : vector<4x8xf32> to vector<4x4xf32>
    %c4 = arith.constant 4 : index
    %c0_58 = arith.constant 0 : index
    %c0_59 = arith.constant 0 : index
    %c0_60 = arith.constant 0 : index
    %98 = vector.load %arg8[%c4, %c0_58, %c0_59, %c0_60] : memref<8x4x8x4xbf16, #tpu.memory_space<vmem>>, vector<1x4x8x4xbf16>
    %99 = vector.shape_cast %98 : vector<1x4x8x4xbf16> to vector<4x8x4xbf16>
    %100 = arith.extf %99 : vector<4x8x4xbf16> to vector<4x8x4xf32>
    %c4_61 = arith.constant 4 : index
    %c0_62 = arith.constant 0 : index
    %c0_63 = arith.constant 0 : index
    %c0_64 = arith.constant 0 : index
    %101 = vector.load %arg9[%c4_61, %c0_62, %c0_63, %c0_64] : memref<8x4x8x4xbf16, #tpu.memory_space<vmem>>, vector<1x4x8x4xbf16>
    %102 = vector.shape_cast %101 : vector<1x4x8x4xbf16> to vector<4x8x4xbf16>
    %103 = arith.extf %102 : vector<4x8x4xbf16> to vector<4x8x4xf32>
    %104 = vector.extract_strided_slice %24 {offsets = [0, 16], sizes = [4, 4], strides = [1, 1]} : vector<4x32xf32> to vector<4x4xf32>
    %105 = vector.shape_cast %104 : vector<4x4xf32> to vector<4x1x4xf32>
    %106 = vector.extract_strided_slice %25 {offsets = [0, 16], sizes = [4, 4], strides = [1, 1]} : vector<4x32xf32> to vector<4x4xf32>
    %107 = vector.shape_cast %106 : vector<4x4xf32> to vector<4x1x4xf32>
    %108 = vector.broadcast %105 : vector<4x1x4xf32> to vector<4x8x4xf32>
    %109 = arith.mulf %108, %100 : vector<4x8x4xf32>
    %110 = vector.broadcast %107 : vector<4x1x4xf32> to vector<4x8x4xf32>
    %111 = arith.mulf %110, %103 : vector<4x8x4xf32>
    %112 = arith.addf %109, %111 : vector<4x8x4xf32>
    %cst_65 = arith.constant dense<0.000000e+00> : vector<4x8xf32>
    %113 = vector.multi_reduction <add>, %112, %cst_65 [2] : vector<4x8x4xf32> to vector<4x8xf32>
    %114 = vector.extract_strided_slice %113 {offsets = [0, 0], sizes = [4, 4], strides = [1, 1]} : vector<4x8xf32> to vector<4x4xf32>
    %115 = vector.extract_strided_slice %113 {offsets = [0, 4], sizes = [4, 4], strides = [1, 1]} : vector<4x8xf32> to vector<4x4xf32>
    %c5 = arith.constant 5 : index
    %c0_66 = arith.constant 0 : index
    %c0_67 = arith.constant 0 : index
    %c0_68 = arith.constant 0 : index
    %116 = vector.load %arg8[%c5, %c0_66, %c0_67, %c0_68] : memref<8x4x8x4xbf16, #tpu.memory_space<vmem>>, vector<1x4x8x4xbf16>
    %117 = vector.shape_cast %116 : vector<1x4x8x4xbf16> to vector<4x8x4xbf16>
    %118 = arith.extf %117 : vector<4x8x4xbf16> to vector<4x8x4xf32>
    %c5_69 = arith.constant 5 : index
    %c0_70 = arith.constant 0 : index
    %c0_71 = arith.constant 0 : index
    %c0_72 = arith.constant 0 : index
    %119 = vector.load %arg9[%c5_69, %c0_70, %c0_71, %c0_72] : memref<8x4x8x4xbf16, #tpu.memory_space<vmem>>, vector<1x4x8x4xbf16>
    %120 = vector.shape_cast %119 : vector<1x4x8x4xbf16> to vector<4x8x4xbf16>
    %121 = arith.extf %120 : vector<4x8x4xbf16> to vector<4x8x4xf32>
    %122 = vector.extract_strided_slice %24 {offsets = [0, 20], sizes = [4, 4], strides = [1, 1]} : vector<4x32xf32> to vector<4x4xf32>
    %123 = vector.shape_cast %122 : vector<4x4xf32> to vector<4x1x4xf32>
    %124 = vector.extract_strided_slice %25 {offsets = [0, 20], sizes = [4, 4], strides = [1, 1]} : vector<4x32xf32> to vector<4x4xf32>
    %125 = vector.shape_cast %124 : vector<4x4xf32> to vector<4x1x4xf32>
    %126 = vector.broadcast %123 : vector<4x1x4xf32> to vector<4x8x4xf32>
    %127 = arith.mulf %126, %118 : vector<4x8x4xf32>
    %128 = vector.broadcast %125 : vector<4x1x4xf32> to vector<4x8x4xf32>
    %129 = arith.mulf %128, %121 : vector<4x8x4xf32>
    %130 = arith.addf %127, %129 : vector<4x8x4xf32>
    %cst_73 = arith.constant dense<0.000000e+00> : vector<4x8xf32>
    %131 = vector.multi_reduction <add>, %130, %cst_73 [2] : vector<4x8x4xf32> to vector<4x8xf32>
    %132 = vector.extract_strided_slice %131 {offsets = [0, 0], sizes = [4, 4], strides = [1, 1]} : vector<4x8xf32> to vector<4x4xf32>
    %133 = vector.extract_strided_slice %131 {offsets = [0, 4], sizes = [4, 4], strides = [1, 1]} : vector<4x8xf32> to vector<4x4xf32>
    %c6 = arith.constant 6 : index
    %c0_74 = arith.constant 0 : index
    %c0_75 = arith.constant 0 : index
    %c0_76 = arith.constant 0 : index
    %134 = vector.load %arg8[%c6, %c0_74, %c0_75, %c0_76] : memref<8x4x8x4xbf16, #tpu.memory_space<vmem>>, vector<1x4x8x4xbf16>
    %135 = vector.shape_cast %134 : vector<1x4x8x4xbf16> to vector<4x8x4xbf16>
    %136 = arith.extf %135 : vector<4x8x4xbf16> to vector<4x8x4xf32>
    %c6_77 = arith.constant 6 : index
    %c0_78 = arith.constant 0 : index
    %c0_79 = arith.constant 0 : index
    %c0_80 = arith.constant 0 : index
    %137 = vector.load %arg9[%c6_77, %c0_78, %c0_79, %c0_80] : memref<8x4x8x4xbf16, #tpu.memory_space<vmem>>, vector<1x4x8x4xbf16>
    %138 = vector.shape_cast %137 : vector<1x4x8x4xbf16> to vector<4x8x4xbf16>
    %139 = arith.extf %138 : vector<4x8x4xbf16> to vector<4x8x4xf32>
    %140 = vector.extract_strided_slice %24 {offsets = [0, 24], sizes = [4, 4], strides = [1, 1]} : vector<4x32xf32> to vector<4x4xf32>
    %141 = vector.shape_cast %140 : vector<4x4xf32> to vector<4x1x4xf32>
    %142 = vector.extract_strided_slice %25 {offsets = [0, 24], sizes = [4, 4], strides = [1, 1]} : vector<4x32xf32> to vector<4x4xf32>
    %143 = vector.shape_cast %142 : vector<4x4xf32> to vector<4x1x4xf32>
    %144 = vector.broadcast %141 : vector<4x1x4xf32> to vector<4x8x4xf32>
    %145 = arith.mulf %144, %136 : vector<4x8x4xf32>
    %146 = vector.broadcast %143 : vector<4x1x4xf32> to vector<4x8x4xf32>
    %147 = arith.mulf %146, %139 : vector<4x8x4xf32>
    %148 = arith.addf %145, %147 : vector<4x8x4xf32>
    %cst_81 = arith.constant dense<0.000000e+00> : vector<4x8xf32>
    %149 = vector.multi_reduction <add>, %148, %cst_81 [2] : vector<4x8x4xf32> to vector<4x8xf32>
    %150 = vector.extract_strided_slice %149 {offsets = [0, 0], sizes = [4, 4], strides = [1, 1]} : vector<4x8xf32> to vector<4x4xf32>
    %151 = vector.extract_strided_slice %149 {offsets = [0, 4], sizes = [4, 4], strides = [1, 1]} : vector<4x8xf32> to vector<4x4xf32>
    %c7 = arith.constant 7 : index
    %c0_82 = arith.constant 0 : index
    %c0_83 = arith.constant 0 : index
    %c0_84 = arith.constant 0 : index
    %152 = vector.load %arg8[%c7, %c0_82, %c0_83, %c0_84] : memref<8x4x8x4xbf16, #tpu.memory_space<vmem>>, vector<1x4x8x4xbf16>
    %153 = vector.shape_cast %152 : vector<1x4x8x4xbf16> to vector<4x8x4xbf16>
    %154 = arith.extf %153 : vector<4x8x4xbf16> to vector<4x8x4xf32>
    %c7_85 = arith.constant 7 : index
    %c0_86 = arith.constant 0 : index
    %c0_87 = arith.constant 0 : index
    %c0_88 = arith.constant 0 : index
    %155 = vector.load %arg9[%c7_85, %c0_86, %c0_87, %c0_88] : memref<8x4x8x4xbf16, #tpu.memory_space<vmem>>, vector<1x4x8x4xbf16>
    %156 = vector.shape_cast %155 : vector<1x4x8x4xbf16> to vector<4x8x4xbf16>
    %157 = arith.extf %156 : vector<4x8x4xbf16> to vector<4x8x4xf32>
    %158 = vector.extract_strided_slice %24 {offsets = [0, 28], sizes = [4, 4], strides = [1, 1]} : vector<4x32xf32> to vector<4x4xf32>
    %159 = vector.shape_cast %158 : vector<4x4xf32> to vector<4x1x4xf32>
    %160 = vector.extract_strided_slice %25 {offsets = [0, 28], sizes = [4, 4], strides = [1, 1]} : vector<4x32xf32> to vector<4x4xf32>
    %161 = vector.shape_cast %160 : vector<4x4xf32> to vector<4x1x4xf32>
    %162 = vector.broadcast %159 : vector<4x1x4xf32> to vector<4x8x4xf32>
    %163 = arith.mulf %162, %154 : vector<4x8x4xf32>
    %164 = vector.broadcast %161 : vector<4x1x4xf32> to vector<4x8x4xf32>
    %165 = arith.mulf %164, %157 : vector<4x8x4xf32>
    %166 = arith.addf %163, %165 : vector<4x8x4xf32>
    %cst_89 = arith.constant dense<0.000000e+00> : vector<4x8xf32>
    %167 = vector.multi_reduction <add>, %166, %cst_89 [2] : vector<4x8x4xf32> to vector<4x8xf32>
    %168 = vector.extract_strided_slice %167 {offsets = [0, 0], sizes = [4, 4], strides = [1, 1]} : vector<4x8xf32> to vector<4x4xf32>
    %169 = vector.extract_strided_slice %167 {offsets = [0, 4], sizes = [4, 4], strides = [1, 1]} : vector<4x8xf32> to vector<4x4xf32>
    %170 = tpu.concatenate %42, %60, %78, %96, %114, %132, %150, %168 in 1 : vector<4x4xf32>, vector<4x4xf32>, vector<4x4xf32>, vector<4x4xf32>, vector<4x4xf32>, vector<4x4xf32>, vector<4x4xf32>, vector<4x4xf32> -> vector<4x32xf32>
    %171 = tpu.concatenate %43, %61, %79, %97, %115, %133, %151, %169 in 1 : vector<4x4xf32>, vector<4x4xf32>, vector<4x4xf32>, vector<4x4xf32>, vector<4x4xf32>, vector<4x4xf32>, vector<4x4xf32>, vector<4x4xf32> -> vector<4x32xf32>
    %172 = tpu.concatenate %170, %171 in 0 : vector<4x32xf32>, vector<4x32xf32> -> vector<8x32xf32>
    %c0_90 = arith.constant 0 : index
    %c0_91 = arith.constant 0 : index
    %173 = vector.load %arg12[%c0_90, %c0_91] : memref<8x8xf32, #tpu.memory_space<vmem>>, vector<8x8xf32>
    %cst_92 = arith.constant dense<0.000000e+00> : vector<32x8xf32>
    %174 = tpu.matmul %172, %173, %cst_92 {dimension_numbers = #tpu.dot_dimension_numbers<[0], [0], [1], [1], [0, 1, 1, 1], [], []>} : vector<8x32xf32>, vector<8x8xf32>, vector<32x8xf32> -> vector<32x8xf32>
    %c0_93 = arith.constant 0 : index
    %c0_94 = arith.constant 0 : index
    %c0_95 = arith.constant 0 : index
    %175 = vector.load %arg14[%c0_93, %c0_94, %c0_95] : memref<1x32x8xf32, #tpu.memory_space<vmem>>, vector<1x32x8xf32>
    %176 = vector.shape_cast %175 : vector<1x32x8xf32> to vector<32x8xf32>
    %177 = vector.shape_cast %174 : vector<32x8xf32> to vector<1x32x8xf32>
    tpu.vector_store %arg14[%c0_93, %c0_94, %c0_95], %177 {strides = array<i32>} : memref<1x32x8xf32, #tpu.memory_space<vmem>>, vector<1x32x8xf32>,
    return
  }
  func.func @transform_0(%arg0: i32) -> (i32, i32, i32) {
    %c0_i32 = arith.constant 0 : i32
    %c0_i32_0 = arith.constant 0 : i32
    %c0_i32_1 = arith.constant 0 : i32
    return %arg0, %c0_i32, %c0_i32_0 : i32, i32, i32
  }
  func.func @transform_1(%arg0: i32) -> (i32, i32, i32) {
    %c0_i32 = arith.constant 0 : i32
    %c0_i32_0 = arith.constant 0 : i32
    %c0_i32_1 = arith.constant 0 : i32
    return %arg0, %c0_i32, %c0_i32_0 : i32, i32, i32
  }
  func.func @transform_2(%arg0: i32) -> (i32, i32) {
    %c0_i32 = arith.constant 0 : i32
    %c0_i32_0 = arith.constant 0 : i32
    %c0_i32_1 = arith.constant 0 : i32
    return %c0_i32, %c0_i32_0 : i32, i32
  }
  func.func @transform_3(%arg0: i32) -> (i32, i32) {
    %c0_i32 = arith.constant 0 : i32
    %c0_i32_0 = arith.constant 0 : i32
    %c0_i32_1 = arith.constant 0 : i32
    return %c0_i32, %c0_i32_0 : i32, i32
  }
  func.func @transform_4(%arg0: i32) -> (i32, i32) {
    %c0_i32 = arith.constant 0 : i32
    %c0_i32_0 = arith.constant 0 : i32
    %c0_i32_1 = arith.constant 0 : i32
    return %c0_i32, %c0_i32_0 : i32, i32
  }
  func.func @transform_5(%arg0: i32) -> (i32, i32) {
    %c0_i32 = arith.constant 0 : i32
    %c0_i32_0 = arith.constant 0 : i32
    %c0_i32_1 = arith.constant 0 : i32
    return %c0_i32, %c0_i32_0 : i32, i32
  }
  func.func @transform_6(%arg0: i32) -> (i32, i32) {
    %c0_i32 = arith.constant 0 : i32
    %c0_i32_0 = arith.constant 0 : i32
    %c0_i32_1 = arith.constant 0 : i32
    return %c0_i32, %c0_i32_0 : i32, i32
  }
  func.func @transform_7(%arg0: i32) -> (i32, i32, i32, i32) {
    %c0_i32 = arith.constant 0 : i32
    %c0_i32_0 = arith.constant 0 : i32
    %c0_i32_1 = arith.constant 0 : i32
    %c0_i32_2 = arith.constant 0 : i32
    %c0_i32_3 = arith.constant 0 : i32
    return %c0_i32, %c0_i32_0, %c0_i32_1, %c0_i32_2 : i32, i32, i32, i32
  }
  func.func @transform_8(%arg0: i32) -> (i32, i32, i32, i32) {
    %c0_i32 = arith.constant 0 : i32
    %c0_i32_0 = arith.constant 0 : i32
    %c0_i32_1 = arith.constant 0 : i32
    %c0_i32_2 = arith.constant 0 : i32
    %c0_i32_3 = arith.constant 0 : i32
    return %c0_i32, %c0_i32_0, %c0_i32_1, %c0_i32_2 : i32, i32, i32, i32
  }
  func.func @transform_9(%arg0: i32) -> (i32, i32) {
    %c0_i32 = arith.constant 0 : i32
    %c0_i32_0 = arith.constant 0 : i32
    %c0_i32_1 = arith.constant 0 : i32
    return %c0_i32, %c0_i32_0 : i32, i32
  }
  func.func @transform_10(%arg0: i32) -> (i32, i32) {
    %c0_i32 = arith.constant 0 : i32
    %c0_i32_0 = arith.constant 0 : i32
    %c0_i32_1 = arith.constant 0 : i32
    return %c0_i32, %c0_i32_0 : i32, i32
  }
  func.func @transform_11(%arg0: i32) -> (i32, i32) {
    %c0_i32 = arith.constant 0 : i32
    %c0_i32_0 = arith.constant 0 : i32
    %c0_i32_1 = arith.constant 0 : i32
    return %c0_i32, %c0_i32_0 : i32, i32
  }
  func.func @transform_12(%arg0: i32) -> (i32, i32, i32) {
    %c0_i32 = arith.constant 0 : i32
    %c0_i32_0 = arith.constant 0 : i32
    %c0_i32_1 = arith.constant 0 : i32
    return %arg0, %c0_i32, %c0_i32_0 : i32, i32, i32
  }
  func.func @transform_13(%arg0: i32) -> (i32, i32, i32) {
    %c0_i32 = arith.constant 0 : i32
    %c0_i32_0 = arith.constant 0 : i32
    %c0_i32_1 = arith.constant 0 : i32
    return %arg0, %c0_i32, %c0_i32_0 : i32, i32, i32
  }
}

module attributes {stable_mosaic.version = 11 : i64} {
  func.func @post_norm_out_kernel(%arg0: i32, %arg1: memref<1x8x32xf32, #tpu.memory_space<vmem>>, %arg2: memref<1x8x32xf32, #tpu.memory_space<vmem>>, %arg3: memref<32x32xf32, #tpu.memory_space<vmem>>, %arg4: memref<8x8xf32, #tpu.memory_space<vmem>>, %arg5: memref<32x64xf32, #tpu.memory_space<vmem>>, %arg6: memref<64x32xf32, #tpu.memory_space<vmem>>, %arg7: memref<1x32xf32, #tpu.memory_space<vmem>>, %arg8: memref<1x32xf32, #tpu.memory_space<vmem>>, %arg9: memref<32x4xf32, #tpu.memory_space<vmem>>, %arg10: memref<1x4xf32, #tpu.memory_space<vmem>>, %arg11: memref<1x8x4xf32, #tpu.memory_space<vmem>>, %arg12: memref<1x8x4xf32, #tpu.memory_space<vmem>>, %arg13: memref<1x8x4xf32, #tpu.memory_space<vmem>>) attributes {dimension_semantics = [#tpu.dimension_semantics<parallel>], iteration_bounds = array<i64: 2>, scalar_prefetch = 0 : i64, scratch_operands = 0 : i64, tpu.core_type = #tpu.core_type<tc>, window_params = [{transform_indices = @transform_0, window_bounds = array<i64: 1, 8, 32>}, {transform_indices = @transform_1, window_bounds = array<i64: 1, 8, 32>}, {pipeline_mode = #tpu.pipeline_mode<synchronous>, transform_indices = @transform_2, window_bounds = array<i64: 32, 32>}, {pipeline_mode = #tpu.pipeline_mode<synchronous>, transform_indices = @transform_3, window_bounds = array<i64: 8, 8>}, {pipeline_mode = #tpu.pipeline_mode<synchronous>, transform_indices = @transform_4, window_bounds = array<i64: 32, 64>}, {pipeline_mode = #tpu.pipeline_mode<synchronous>, transform_indices = @transform_5, window_bounds = array<i64: 64, 32>}, {pipeline_mode = #tpu.pipeline_mode<synchronous>, transform_indices = @transform_6, window_bounds = array<i64: 1, 32>}, {pipeline_mode = #tpu.pipeline_mode<synchronous>, transform_indices = @transform_7, window_bounds = array<i64: 1, 32>}, {pipeline_mode = #tpu.pipeline_mode<synchronous>, transform_indices = @transform_8, window_bounds = array<i64: 32, 4>}, {pipeline_mode = #tpu.pipeline_mode<synchronous>, transform_indices = @transform_9, window_bounds = array<i64: 1, 4>}, {transform_indices = @transform_10, window_bounds = array<i64: 1, 8, 4>}, {transform_indices = @transform_11, window_bounds = array<i64: 1, 8, 4>}, {transform_indices = @transform_12, window_bounds = array<i64: 1, 8, 4>}]} {
    %c0 = arith.constant 0 : index
    %c0_0 = arith.constant 0 : index
    %c0_1 = arith.constant 0 : index
    %0 = vector.load %arg1[%c0, %c0_0, %c0_1] : memref<1x8x32xf32, #tpu.memory_space<vmem>>, vector<1x8x32xf32>
    %1 = vector.shape_cast %0 : vector<1x8x32xf32> to vector<8x32xf32>
    %c0_2 = arith.constant 0 : index
    %c0_3 = arith.constant 0 : index
    %c0_4 = arith.constant 0 : index
    %2 = vector.load %arg2[%c0_2, %c0_3, %c0_4] : memref<1x8x32xf32, #tpu.memory_space<vmem>>, vector<1x8x32xf32>
    %3 = vector.shape_cast %2 : vector<1x8x32xf32> to vector<8x32xf32>
    %c0_5 = arith.constant 0 : index
    %c0_6 = arith.constant 0 : index
    %4 = vector.load %arg3[%c0_5, %c0_6] : memref<32x32xf32, #tpu.memory_space<vmem>>, vector<32x32xf32>
    %c0_7 = arith.constant 0 : index
    %c0_8 = arith.constant 0 : index
    %5 = vector.load %arg4[%c0_7, %c0_8] : memref<8x8xf32, #tpu.memory_space<vmem>>, vector<8x8xf32>
    %c0_9 = arith.constant 0 : index
    %c0_10 = arith.constant 0 : index
    %6 = vector.load %arg5[%c0_9, %c0_10] : memref<32x64xf32, #tpu.memory_space<vmem>>, vector<32x64xf32>
    %c0_11 = arith.constant 0 : index
    %c0_12 = arith.constant 0 : index
    %7 = vector.load %arg6[%c0_11, %c0_12] : memref<64x32xf32, #tpu.memory_space<vmem>>, vector<64x32xf32>
    %cst = arith.constant dense<0.000000e+00> : vector<8x32xf32>
    %8 = tpu.matmul %3, %4, %cst {dimension_numbers = #tpu.dot_dimension_numbers<[1], [0], [0], [1], [0, 0, 1, 1], [], []>} : vector<8x32xf32>, vector<32x32xf32>, vector<8x32xf32> -> vector<8x32xf32>
    %9 = arith.addf %1, %8 : vector<8x32xf32>
    %cst_13 = arith.constant dense<0.000000e+00> : vector<8x32xf32>
    %10 = tpu.matmul %5, %9, %cst_13 {dimension_numbers = #tpu.dot_dimension_numbers<[1], [0], [0], [1], [0, 0, 1, 1], [], []>} : vector<8x8xf32>, vector<8x32xf32>, vector<8x32xf32> -> vector<8x32xf32>
    %cst_14 = arith.constant dense<0.000000e+00> : vector<8x64xf32>
    %11 = tpu.matmul %10, %6, %cst_14 {dimension_numbers = #tpu.dot_dimension_numbers<[1], [0], [0], [1], [0, 0, 1, 1], [], []>} : vector<8x32xf32>, vector<32x64xf32>, vector<8x64xf32> -> vector<8x64xf32>
    %cst_15 = arith.constant 0.000000e+00 : f32
    %12 = vector.broadcast %cst_15 : f32 to vector<8x64xf32>
    %13 = arith.maximumf %11, %12 : vector<8x64xf32>
    %cst_16 = arith.constant dense<0.000000e+00> : vector<8x32xf32>
    %14 = tpu.matmul %13, %7, %cst_16 {dimension_numbers = #tpu.dot_dimension_numbers<[1], [0], [0], [1], [0, 0, 1, 1], [], []>} : vector<8x64xf32>, vector<64x32xf32>, vector<8x32xf32> -> vector<8x32xf32>
    %15 = arith.addf %10, %14 : vector<8x32xf32>
    %cst_17 = arith.constant dense<0.000000e+00> : vector<8x32xf32>
    %16 = tpu.matmul %5, %15, %cst_17 {dimension_numbers = #tpu.dot_dimension_numbers<[1], [0], [0], [1], [0, 0, 1, 1], [], []>} : vector<8x8xf32>, vector<8x32xf32>, vector<8x32xf32> -> vector<8x32xf32>
    %cst_18 = arith.constant dense<0.000000e+00> : vector<8xf32>
    %17 = vector.multi_reduction <add>, %16, %cst_18 [1] : vector<8x32xf32> to vector<8xf32>
    %18 = vector.shape_cast %17 : vector<8xf32> to vector<8x1xf32>
    %cst_19 = arith.constant 3.200000e+01 : f32
    %19 = vector.broadcast %cst_19 : f32 to vector<8x1xf32>
    %20 = arith.divf %18, %19 : vector<8x1xf32>
    %21 = vector.broadcast %20 : vector<8x1xf32> to vector<8x32xf32>
    %22 = arith.subf %16, %21 : vector<8x32xf32>
    %23 = arith.mulf %22, %22 : vector<8x32xf32>
    %cst_20 = arith.constant dense<0.000000e+00> : vector<8xf32>
    %24 = vector.multi_reduction <add>, %23, %cst_20 [1] : vector<8x32xf32> to vector<8xf32>
    %25 = vector.shape_cast %24 : vector<8xf32> to vector<8x1xf32>
    %cst_21 = arith.constant 3.200000e+01 : f32
    %26 = vector.broadcast %cst_21 : f32 to vector<8x1xf32>
    %27 = arith.divf %25, %26 : vector<8x1xf32>
    %28 = vector.broadcast %20 : vector<8x1xf32> to vector<8x32xf32>
    %29 = arith.subf %16, %28 : vector<8x32xf32>
    %cst_22 = arith.constant 9.99999974E-6 : f32
    %30 = vector.broadcast %cst_22 : f32 to vector<8x1xf32>
    %31 = arith.addf %27, %30 : vector<8x1xf32>
    %32 = math.rsqrt %31 : vector<8x1xf32>
    %33 = vector.broadcast %32 : vector<8x1xf32> to vector<8x32xf32>
    %34 = arith.mulf %29, %33 : vector<8x32xf32>
    %c0_23 = arith.constant 0 : index
    %c0_24 = arith.constant 0 : index
    %35 = vector.load %arg7[%c0_23, %c0_24] : memref<1x32xf32, #tpu.memory_space<vmem>>, vector<1x32xf32>
    %36 = vector.broadcast %35 : vector<1x32xf32> to vector<8x32xf32>
    %37 = arith.mulf %34, %36 : vector<8x32xf32>
    %c0_25 = arith.constant 0 : index
    %c0_26 = arith.constant 0 : index
    %38 = vector.load %arg8[%c0_25, %c0_26] : memref<1x32xf32, #tpu.memory_space<vmem>>, vector<1x32xf32>
    %39 = vector.broadcast %38 : vector<1x32xf32> to vector<8x32xf32>
    %40 = arith.addf %37, %39 : vector<8x32xf32>
    %cst_27 = arith.constant dense<0.000000e+00> : vector<32xf32>
    %41 = vector.multi_reduction <add>, %40, %cst_27 [0] : vector<8x32xf32> to vector<32xf32>
    %42 = vector.shape_cast %41 : vector<32xf32> to vector<1x32xf32>
    %cst_28 = arith.constant 8.000000e+00 : f32
    %43 = vector.broadcast %cst_28 : f32 to vector<1x32xf32>
    %44 = arith.divf %42, %43 : vector<1x32xf32>
    %45 = vector.broadcast %44 : vector<1x32xf32> to vector<8x32xf32>
    %46 = arith.subf %40, %45 : vector<8x32xf32>
    %c0_29 = arith.constant 0 : index
    %c0_30 = arith.constant 0 : index
    %47 = vector.load %arg9[%c0_29, %c0_30] : memref<32x4xf32, #tpu.memory_space<vmem>>, vector<32x4xf32>
    %cst_31 = arith.constant dense<0.000000e+00> : vector<8x4xf32>
    %48 = tpu.matmul %46, %47, %cst_31 {dimension_numbers = #tpu.dot_dimension_numbers<[1], [0], [0], [1], [0, 0, 1, 1], [], []>} : vector<8x32xf32>, vector<32x4xf32>, vector<8x4xf32> -> vector<8x4xf32>
    %c0_32 = arith.constant 0 : index
    %c0_33 = arith.constant 0 : index
    %49 = vector.load %arg10[%c0_32, %c0_33] : memref<1x4xf32, #tpu.memory_space<vmem>>, vector<1x4xf32>
    %50 = vector.broadcast %49 : vector<1x4xf32> to vector<8x4xf32>
    %51 = arith.addf %48, %50 : vector<8x4xf32>
    %c0_34 = arith.constant 0 : index
    %c0_35 = arith.constant 0 : index
    %c0_36 = arith.constant 0 : index
    %52 = vector.load %arg12[%c0_34, %c0_35, %c0_36] : memref<1x8x4xf32, #tpu.memory_space<vmem>>, vector<1x8x4xf32>
    %53 = vector.shape_cast %52 : vector<1x8x4xf32> to vector<8x4xf32>
    %c0_37 = arith.constant 0 : index
    %c0_38 = arith.constant 0 : index
    %c0_39 = arith.constant 0 : index
    %54 = vector.load %arg11[%c0_37, %c0_38, %c0_39] : memref<1x8x4xf32, #tpu.memory_space<vmem>>, vector<1x8x4xf32>
    %55 = vector.shape_cast %54 : vector<1x8x4xf32> to vector<8x4xf32>
    %56 = arith.mulf %53, %55 : vector<8x4xf32>
    %cst_40 = arith.constant 1.000000e+00 : f32
    %57 = vector.broadcast %cst_40 : f32 to vector<8x4xf32>
    %58 = arith.subf %57, %53 : vector<8x4xf32>
    %59 = arith.mulf %58, %51 : vector<8x4xf32>
    %60 = arith.addf %56, %59 : vector<8x4xf32>
    %c0_41 = arith.constant 0 : index
    %c0_42 = arith.constant 0 : index
    %c0_43 = arith.constant 0 : index
    %61 = vector.load %arg13[%c0_41, %c0_42, %c0_43] : memref<1x8x4xf32, #tpu.memory_space<vmem>>, vector<1x8x4xf32>
    %62 = vector.shape_cast %61 : vector<1x8x4xf32> to vector<8x4xf32>
    %63 = vector.shape_cast %60 : vector<8x4xf32> to vector<1x8x4xf32>
    tpu.vector_store %arg13[%c0_41, %c0_42, %c0_43], %63 {strides = array<i32>} : memref<1x8x4xf32, #tpu.memory_space<vmem>>, vector<1x8x4xf32>,
    return
  }
  func.func @transform_0(%arg0: i32) -> (i32, i32, i32) {
    %c0_i32 = arith.constant 0 : i32
    %c0_i32_0 = arith.constant 0 : i32
    %c0_i32_1 = arith.constant 0 : i32
    return %arg0, %c0_i32, %c0_i32_0 : i32, i32, i32
  }
  func.func @transform_1(%arg0: i32) -> (i32, i32, i32) {
    %c0_i32 = arith.constant 0 : i32
    %c0_i32_0 = arith.constant 0 : i32
    %c0_i32_1 = arith.constant 0 : i32
    return %arg0, %c0_i32, %c0_i32_0 : i32, i32, i32
  }
  func.func @transform_2(%arg0: i32) -> (i32, i32) {
    %c0_i32 = arith.constant 0 : i32
    %c0_i32_0 = arith.constant 0 : i32
    %c0_i32_1 = arith.constant 0 : i32
    return %c0_i32, %c0_i32_0 : i32, i32
  }
  func.func @transform_3(%arg0: i32) -> (i32, i32) {
    %c0_i32 = arith.constant 0 : i32
    %c0_i32_0 = arith.constant 0 : i32
    %c0_i32_1 = arith.constant 0 : i32
    return %c0_i32, %c0_i32_0 : i32, i32
  }
  func.func @transform_4(%arg0: i32) -> (i32, i32) {
    %c0_i32 = arith.constant 0 : i32
    %c0_i32_0 = arith.constant 0 : i32
    %c0_i32_1 = arith.constant 0 : i32
    return %c0_i32, %c0_i32_0 : i32, i32
  }
  func.func @transform_5(%arg0: i32) -> (i32, i32) {
    %c0_i32 = arith.constant 0 : i32
    %c0_i32_0 = arith.constant 0 : i32
    %c0_i32_1 = arith.constant 0 : i32
    return %c0_i32, %c0_i32_0 : i32, i32
  }
  func.func @transform_6(%arg0: i32) -> (i32, i32) {
    %c0_i32 = arith.constant 0 : i32
    %c0_i32_0 = arith.constant 0 : i32
    %c0_i32_1 = arith.constant 0 : i32
    return %c0_i32, %c0_i32_0 : i32, i32
  }
  func.func @transform_7(%arg0: i32) -> (i32, i32) {
    %c0_i32 = arith.constant 0 : i32
    %c0_i32_0 = arith.constant 0 : i32
    %c0_i32_1 = arith.constant 0 : i32
    return %c0_i32, %c0_i32_0 : i32, i32
  }
  func.func @transform_8(%arg0: i32) -> (i32, i32) {
    %c0_i32 = arith.constant 0 : i32
    %c0_i32_0 = arith.constant 0 : i32
    %c0_i32_1 = arith.constant 0 : i32
    return %c0_i32, %c0_i32_0 : i32, i32
  }
  func.func @transform_9(%arg0: i32) -> (i32, i32) {
    %c0_i32 = arith.constant 0 : i32
    %c0_i32_0 = arith.constant 0 : i32
    %c0_i32_1 = arith.constant 0 : i32
    return %c0_i32, %c0_i32_0 : i32, i32
  }
  func.func @transform_10(%arg0: i32) -> (i32, i32, i32) {
    %c0_i32 = arith.constant 0 : i32
    %c0_i32_0 = arith.constant 0 : i32
    %c0_i32_1 = arith.constant 0 : i32
    return %arg0, %c0_i32, %c0_i32_0 : i32, i32, i32
  }
  func.func @transform_11(%arg0: i32) -> (i32, i32, i32) {
    %c0_i32 = arith.constant 0 : i32
    %c0_i32_0 = arith.constant 0 : i32
    %c0_i32_1 = arith.constant 0 : i32
    return %arg0, %c0_i32, %c0_i32_0 : i32, i32, i32
  }
  func.func @transform_12(%arg0: i32) -> (i32, i32, i32) {
    %c0_i32 = arith.constant 0 : i32
    %c0_i32_0 = arith.constant 0 : i32
    %c0_i32_1 = arith.constant 0 : i32
    return %arg0, %c0_i32, %c0_i32_0 : i32, i32, i32
  }
}

module attributes {stable_mosaic.version = 11 : i64} {
  func.func @post_attn_kernel(%arg0: i32, %arg1: memref<1x8x32xf32, #tpu.memory_space<vmem>>, %arg2: memref<1x8x32xf32, #tpu.memory_space<vmem>>, %arg3: memref<32x32xf32, #tpu.memory_space<vmem>>, %arg4: memref<8x8xf32, #tpu.memory_space<vmem>>, %arg5: memref<32x64xf32, #tpu.memory_space<vmem>>, %arg6: memref<64x32xf32, #tpu.memory_space<vmem>>, %arg7: memref<32x32xf32, #tpu.memory_space<vmem>>, %arg8: memref<1x32xf32, #tpu.memory_space<vmem>>, %arg9: memref<8x4x8x4xbf16, #tpu.memory_space<vmem>>, %arg10: memref<8x4x8x4xbf16, #tpu.memory_space<vmem>>, %arg11: memref<8x8xf32, #tpu.memory_space<vmem>>, %arg12: memref<8x1xf32, #tpu.memory_space<vmem>>, %arg13: memref<8x8xf32, #tpu.memory_space<vmem>>, %arg14: memref<1x8x32xf32, #tpu.memory_space<vmem>>, %arg15: memref<1x32x8xf32, #tpu.memory_space<vmem>>) attributes {dimension_semantics = [#tpu.dimension_semantics<parallel>], iteration_bounds = array<i64: 2>, scalar_prefetch = 0 : i64, scratch_operands = 0 : i64, tpu.core_type = #tpu.core_type<tc>, window_params = [{transform_indices = @transform_0, window_bounds = array<i64: 1, 8, 32>}, {transform_indices = @transform_1, window_bounds = array<i64: 1, 8, 32>}, {pipeline_mode = #tpu.pipeline_mode<synchronous>, transform_indices = @transform_2, window_bounds = array<i64: 32, 32>}, {pipeline_mode = #tpu.pipeline_mode<synchronous>, transform_indices = @transform_3, window_bounds = array<i64: 8, 8>}, {pipeline_mode = #tpu.pipeline_mode<synchronous>, transform_indices = @transform_4, window_bounds = array<i64: 32, 64>}, {pipeline_mode = #tpu.pipeline_mode<synchronous>, transform_indices = @transform_5, window_bounds = array<i64: 64, 32>}, {pipeline_mode = #tpu.pipeline_mode<synchronous>, transform_indices = @transform_6, window_bounds = array<i64: 32, 32>}, {pipeline_mode = #tpu.pipeline_mode<synchronous>, transform_indices = @transform_7, window_bounds = array<i64: 1, 32>}, {pipeline_mode = #tpu.pipeline_mode<synchronous>, transform_indices = @transform_8, window_bounds = array<i64: 8, 4, 8, 4>}, {pipeline_mode = #tpu.pipeline_mode<synchronous>, transform_indices = @transform_9, window_bounds = array<i64: 8, 4, 8, 4>}, {pipeline_mode = #tpu.pipeline_mode<synchronous>, transform_indices = @transform_10, window_bounds = array<i64: 8, 8>}, {pipeline_mode = #tpu.pipeline_mode<synchronous>, transform_indices = @transform_11, window_bounds = array<i64: 8, 1>}, {pipeline_mode = #tpu.pipeline_mode<synchronous>, transform_indices = @transform_12, window_bounds = array<i64: 8, 8>}, {transform_indices = @transform_13, window_bounds = array<i64: 1, 8, 32>}, {transform_indices = @transform_14, window_bounds = array<i64: 1, 32, 8>}]} {
    %c0 = arith.constant 0 : index
    %c0_0 = arith.constant 0 : index
    %c0_1 = arith.constant 0 : index
    %0 = vector.load %arg1[%c0, %c0_0, %c0_1] : memref<1x8x32xf32, #tpu.memory_space<vmem>>, vector<1x8x32xf32>
    %1 = vector.shape_cast %0 : vector<1x8x32xf32> to vector<8x32xf32>
    %c0_2 = arith.constant 0 : index
    %c0_3 = arith.constant 0 : index
    %c0_4 = arith.constant 0 : index
    %2 = vector.load %arg2[%c0_2, %c0_3, %c0_4] : memref<1x8x32xf32, #tpu.memory_space<vmem>>, vector<1x8x32xf32>
    %3 = vector.shape_cast %2 : vector<1x8x32xf32> to vector<8x32xf32>
    %c0_5 = arith.constant 0 : index
    %c0_6 = arith.constant 0 : index
    %4 = vector.load %arg3[%c0_5, %c0_6] : memref<32x32xf32, #tpu.memory_space<vmem>>, vector<32x32xf32>
    %c0_7 = arith.constant 0 : index
    %c0_8 = arith.constant 0 : index
    %5 = vector.load %arg4[%c0_7, %c0_8] : memref<8x8xf32, #tpu.memory_space<vmem>>, vector<8x8xf32>
    %c0_9 = arith.constant 0 : index
    %c0_10 = arith.constant 0 : index
    %6 = vector.load %arg5[%c0_9, %c0_10] : memref<32x64xf32, #tpu.memory_space<vmem>>, vector<32x64xf32>
    %c0_11 = arith.constant 0 : index
    %c0_12 = arith.constant 0 : index
    %7 = vector.load %arg6[%c0_11, %c0_12] : memref<64x32xf32, #tpu.memory_space<vmem>>, vector<64x32xf32>
    %cst = arith.constant dense<0.000000e+00> : vector<8x32xf32>
    %8 = tpu.matmul %3, %4, %cst {dimension_numbers = #tpu.dot_dimension_numbers<[1], [0], [0], [1], [0, 0, 1, 1], [], []>} : vector<8x32xf32>, vector<32x32xf32>, vector<8x32xf32> -> vector<8x32xf32>
    %9 = arith.addf %1, %8 : vector<8x32xf32>
    %cst_13 = arith.constant dense<0.000000e+00> : vector<8x32xf32>
    %10 = tpu.matmul %5, %9, %cst_13 {dimension_numbers = #tpu.dot_dimension_numbers<[1], [0], [0], [1], [0, 0, 1, 1], [], []>} : vector<8x8xf32>, vector<8x32xf32>, vector<8x32xf32> -> vector<8x32xf32>
    %cst_14 = arith.constant dense<0.000000e+00> : vector<8x64xf32>
    %11 = tpu.matmul %10, %6, %cst_14 {dimension_numbers = #tpu.dot_dimension_numbers<[1], [0], [0], [1], [0, 0, 1, 1], [], []>} : vector<8x32xf32>, vector<32x64xf32>, vector<8x64xf32> -> vector<8x64xf32>
    %cst_15 = arith.constant 0.000000e+00 : f32
    %12 = vector.broadcast %cst_15 : f32 to vector<8x64xf32>
    %13 = arith.maximumf %11, %12 : vector<8x64xf32>
    %cst_16 = arith.constant dense<0.000000e+00> : vector<8x32xf32>
    %14 = tpu.matmul %13, %7, %cst_16 {dimension_numbers = #tpu.dot_dimension_numbers<[1], [0], [0], [1], [0, 0, 1, 1], [], []>} : vector<8x64xf32>, vector<64x32xf32>, vector<8x32xf32> -> vector<8x32xf32>
    %15 = arith.addf %10, %14 : vector<8x32xf32>
    %cst_17 = arith.constant dense<0.000000e+00> : vector<8x32xf32>
    %16 = tpu.matmul %5, %15, %cst_17 {dimension_numbers = #tpu.dot_dimension_numbers<[1], [0], [0], [1], [0, 0, 1, 1], [], []>} : vector<8x8xf32>, vector<8x32xf32>, vector<8x32xf32> -> vector<8x32xf32>
    %c0_18 = arith.constant 0 : index
    %c0_19 = arith.constant 0 : index
    %c0_20 = arith.constant 0 : index
    %17 = vector.load %arg14[%c0_18, %c0_19, %c0_20] : memref<1x8x32xf32, #tpu.memory_space<vmem>>, vector<1x8x32xf32>
    %18 = vector.shape_cast %17 : vector<1x8x32xf32> to vector<8x32xf32>
    %19 = vector.shape_cast %16 : vector<8x32xf32> to vector<1x8x32xf32>
    tpu.vector_store %arg14[%c0_18, %c0_19, %c0_20], %19 {strides = array<i32>} : memref<1x8x32xf32, #tpu.memory_space<vmem>>, vector<1x8x32xf32>,
    %c0_21 = arith.constant 0 : index
    %c0_22 = arith.constant 0 : index
    %20 = vector.load %arg11[%c0_21, %c0_22] : memref<8x8xf32, #tpu.memory_space<vmem>>, vector<8x8xf32>
    %cst_23 = arith.constant dense<0.000000e+00> : vector<8x32xf32>
    %21 = tpu.matmul %20, %16, %cst_23 {dimension_numbers = #tpu.dot_dimension_numbers<[1], [0], [0], [1], [0, 0, 1, 1], [], []>} : vector<8x8xf32>, vector<8x32xf32>, vector<8x32xf32> -> vector<8x32xf32>
    %c0_24 = arith.constant 0 : index
    %c0_25 = arith.constant 0 : index
    %22 = vector.load %arg7[%c0_24, %c0_25] : memref<32x32xf32, #tpu.memory_space<vmem>>, vector<32x32xf32>
    %cst_26 = arith.constant dense<0.000000e+00> : vector<8x32xf32>
    %23 = tpu.matmul %21, %22, %cst_26 {dimension_numbers = #tpu.dot_dimension_numbers<[1], [0], [0], [1], [0, 0, 1, 1], [], []>} : vector<8x32xf32>, vector<32x32xf32>, vector<8x32xf32> -> vector<8x32xf32>
    %c0_27 = arith.constant 0 : index
    %c0_28 = arith.constant 0 : index
    %24 = vector.load %arg12[%c0_27, %c0_28] : memref<8x1xf32, #tpu.memory_space<vmem>>, vector<8x1xf32>
    %c0_29 = arith.constant 0 : index
    %c0_30 = arith.constant 0 : index
    %25 = vector.load %arg8[%c0_29, %c0_30] : memref<1x32xf32, #tpu.memory_space<vmem>>, vector<1x32xf32>
    %26 = vector.broadcast %24 : vector<8x1xf32> to vector<8x32xf32>
    %27 = vector.broadcast %25 : vector<1x32xf32> to vector<8x32xf32>
    %28 = arith.mulf %26, %27 : vector<8x32xf32>
    %29 = arith.addf %23, %28 : vector<8x32xf32>
    %30 = vector.extract_strided_slice %29 {offsets = [0, 0], sizes = [4, 32], strides = [1, 1]} : vector<8x32xf32> to vector<4x32xf32>
    %31 = vector.extract_strided_slice %29 {offsets = [4, 0], sizes = [4, 32], strides = [1, 1]} : vector<8x32xf32> to vector<4x32xf32>
    %c0_31 = arith.constant 0 : index
    %c0_32 = arith.constant 0 : index
    %c0_33 = arith.constant 0 : index
    %c0_34 = arith.constant 0 : index
    %32 = vector.load %arg9[%c0_31, %c0_32, %c0_33, %c0_34] : memref<8x4x8x4xbf16, #tpu.memory_space<vmem>>, vector<1x4x8x4xbf16>
    %33 = vector.shape_cast %32 : vector<1x4x8x4xbf16> to vector<4x8x4xbf16>
    %34 = arith.extf %33 : vector<4x8x4xbf16> to vector<4x8x4xf32>
    %c0_35 = arith.constant 0 : index
    %c0_36 = arith.constant 0 : index
    %c0_37 = arith.constant 0 : index
    %c0_38 = arith.constant 0 : index
    %35 = vector.load %arg10[%c0_35, %c0_36, %c0_37, %c0_38] : memref<8x4x8x4xbf16, #tpu.memory_space<vmem>>, vector<1x4x8x4xbf16>
    %36 = vector.shape_cast %35 : vector<1x4x8x4xbf16> to vector<4x8x4xbf16>
    %37 = arith.extf %36 : vector<4x8x4xbf16> to vector<4x8x4xf32>
    %38 = vector.extract_strided_slice %30 {offsets = [0, 0], sizes = [4, 4], strides = [1, 1]} : vector<4x32xf32> to vector<4x4xf32>
    %39 = vector.shape_cast %38 : vector<4x4xf32> to vector<4x1x4xf32>
    %40 = vector.extract_strided_slice %31 {offsets = [0, 0], sizes = [4, 4], strides = [1, 1]} : vector<4x32xf32> to vector<4x4xf32>
    %41 = vector.shape_cast %40 : vector<4x4xf32> to vector<4x1x4xf32>
    %42 = vector.broadcast %39 : vector<4x1x4xf32> to vector<4x8x4xf32>
    %43 = arith.mulf %42, %34 : vector<4x8x4xf32>
    %44 = vector.broadcast %41 : vector<4x1x4xf32> to vector<4x8x4xf32>
    %45 = arith.mulf %44, %37 : vector<4x8x4xf32>
    %46 = arith.addf %43, %45 : vector<4x8x4xf32>
    %cst_39 = arith.constant dense<0.000000e+00> : vector<4x8xf32>
    %47 = vector.multi_reduction <add>, %46, %cst_39 [2] : vector<4x8x4xf32> to vector<4x8xf32>
    %48 = vector.extract_strided_slice %47 {offsets = [0, 0], sizes = [4, 4], strides = [1, 1]} : vector<4x8xf32> to vector<4x4xf32>
    %49 = vector.extract_strided_slice %47 {offsets = [0, 4], sizes = [4, 4], strides = [1, 1]} : vector<4x8xf32> to vector<4x4xf32>
    %c1 = arith.constant 1 : index
    %c0_40 = arith.constant 0 : index
    %c0_41 = arith.constant 0 : index
    %c0_42 = arith.constant 0 : index
    %50 = vector.load %arg9[%c1, %c0_40, %c0_41, %c0_42] : memref<8x4x8x4xbf16, #tpu.memory_space<vmem>>, vector<1x4x8x4xbf16>
    %51 = vector.shape_cast %50 : vector<1x4x8x4xbf16> to vector<4x8x4xbf16>
    %52 = arith.extf %51 : vector<4x8x4xbf16> to vector<4x8x4xf32>
    %c1_43 = arith.constant 1 : index
    %c0_44 = arith.constant 0 : index
    %c0_45 = arith.constant 0 : index
    %c0_46 = arith.constant 0 : index
    %53 = vector.load %arg10[%c1_43, %c0_44, %c0_45, %c0_46] : memref<8x4x8x4xbf16, #tpu.memory_space<vmem>>, vector<1x4x8x4xbf16>
    %54 = vector.shape_cast %53 : vector<1x4x8x4xbf16> to vector<4x8x4xbf16>
    %55 = arith.extf %54 : vector<4x8x4xbf16> to vector<4x8x4xf32>
    %56 = vector.extract_strided_slice %30 {offsets = [0, 4], sizes = [4, 4], strides = [1, 1]} : vector<4x32xf32> to vector<4x4xf32>
    %57 = vector.shape_cast %56 : vector<4x4xf32> to vector<4x1x4xf32>
    %58 = vector.extract_strided_slice %31 {offsets = [0, 4], sizes = [4, 4], strides = [1, 1]} : vector<4x32xf32> to vector<4x4xf32>
    %59 = vector.shape_cast %58 : vector<4x4xf32> to vector<4x1x4xf32>
    %60 = vector.broadcast %57 : vector<4x1x4xf32> to vector<4x8x4xf32>
    %61 = arith.mulf %60, %52 : vector<4x8x4xf32>
    %62 = vector.broadcast %59 : vector<4x1x4xf32> to vector<4x8x4xf32>
    %63 = arith.mulf %62, %55 : vector<4x8x4xf32>
    %64 = arith.addf %61, %63 : vector<4x8x4xf32>
    %cst_47 = arith.constant dense<0.000000e+00> : vector<4x8xf32>
    %65 = vector.multi_reduction <add>, %64, %cst_47 [2] : vector<4x8x4xf32> to vector<4x8xf32>
    %66 = vector.extract_strided_slice %65 {offsets = [0, 0], sizes = [4, 4], strides = [1, 1]} : vector<4x8xf32> to vector<4x4xf32>
    %67 = vector.extract_strided_slice %65 {offsets = [0, 4], sizes = [4, 4], strides = [1, 1]} : vector<4x8xf32> to vector<4x4xf32>
    %c2 = arith.constant 2 : index
    %c0_48 = arith.constant 0 : index
    %c0_49 = arith.constant 0 : index
    %c0_50 = arith.constant 0 : index
    %68 = vector.load %arg9[%c2, %c0_48, %c0_49, %c0_50] : memref<8x4x8x4xbf16, #tpu.memory_space<vmem>>, vector<1x4x8x4xbf16>
    %69 = vector.shape_cast %68 : vector<1x4x8x4xbf16> to vector<4x8x4xbf16>
    %70 = arith.extf %69 : vector<4x8x4xbf16> to vector<4x8x4xf32>
    %c2_51 = arith.constant 2 : index
    %c0_52 = arith.constant 0 : index
    %c0_53 = arith.constant 0 : index
    %c0_54 = arith.constant 0 : index
    %71 = vector.load %arg10[%c2_51, %c0_52, %c0_53, %c0_54] : memref<8x4x8x4xbf16, #tpu.memory_space<vmem>>, vector<1x4x8x4xbf16>
    %72 = vector.shape_cast %71 : vector<1x4x8x4xbf16> to vector<4x8x4xbf16>
    %73 = arith.extf %72 : vector<4x8x4xbf16> to vector<4x8x4xf32>
    %74 = vector.extract_strided_slice %30 {offsets = [0, 8], sizes = [4, 4], strides = [1, 1]} : vector<4x32xf32> to vector<4x4xf32>
    %75 = vector.shape_cast %74 : vector<4x4xf32> to vector<4x1x4xf32>
    %76 = vector.extract_strided_slice %31 {offsets = [0, 8], sizes = [4, 4], strides = [1, 1]} : vector<4x32xf32> to vector<4x4xf32>
    %77 = vector.shape_cast %76 : vector<4x4xf32> to vector<4x1x4xf32>
    %78 = vector.broadcast %75 : vector<4x1x4xf32> to vector<4x8x4xf32>
    %79 = arith.mulf %78, %70 : vector<4x8x4xf32>
    %80 = vector.broadcast %77 : vector<4x1x4xf32> to vector<4x8x4xf32>
    %81 = arith.mulf %80, %73 : vector<4x8x4xf32>
    %82 = arith.addf %79, %81 : vector<4x8x4xf32>
    %cst_55 = arith.constant dense<0.000000e+00> : vector<4x8xf32>
    %83 = vector.multi_reduction <add>, %82, %cst_55 [2] : vector<4x8x4xf32> to vector<4x8xf32>
    %84 = vector.extract_strided_slice %83 {offsets = [0, 0], sizes = [4, 4], strides = [1, 1]} : vector<4x8xf32> to vector<4x4xf32>
    %85 = vector.extract_strided_slice %83 {offsets = [0, 4], sizes = [4, 4], strides = [1, 1]} : vector<4x8xf32> to vector<4x4xf32>
    %c3 = arith.constant 3 : index
    %c0_56 = arith.constant 0 : index
    %c0_57 = arith.constant 0 : index
    %c0_58 = arith.constant 0 : index
    %86 = vector.load %arg9[%c3, %c0_56, %c0_57, %c0_58] : memref<8x4x8x4xbf16, #tpu.memory_space<vmem>>, vector<1x4x8x4xbf16>
    %87 = vector.shape_cast %86 : vector<1x4x8x4xbf16> to vector<4x8x4xbf16>
    %88 = arith.extf %87 : vector<4x8x4xbf16> to vector<4x8x4xf32>
    %c3_59 = arith.constant 3 : index
    %c0_60 = arith.constant 0 : index
    %c0_61 = arith.constant 0 : index
    %c0_62 = arith.constant 0 : index
    %89 = vector.load %arg10[%c3_59, %c0_60, %c0_61, %c0_62] : memref<8x4x8x4xbf16, #tpu.memory_space<vmem>>, vector<1x4x8x4xbf16>
    %90 = vector.shape_cast %89 : vector<1x4x8x4xbf16> to vector<4x8x4xbf16>
    %91 = arith.extf %90 : vector<4x8x4xbf16> to vector<4x8x4xf32>
    %92 = vector.extract_strided_slice %30 {offsets = [0, 12], sizes = [4, 4], strides = [1, 1]} : vector<4x32xf32> to vector<4x4xf32>
    %93 = vector.shape_cast %92 : vector<4x4xf32> to vector<4x1x4xf32>
    %94 = vector.extract_strided_slice %31 {offsets = [0, 12], sizes = [4, 4], strides = [1, 1]} : vector<4x32xf32> to vector<4x4xf32>
    %95 = vector.shape_cast %94 : vector<4x4xf32> to vector<4x1x4xf32>
    %96 = vector.broadcast %93 : vector<4x1x4xf32> to vector<4x8x4xf32>
    %97 = arith.mulf %96, %88 : vector<4x8x4xf32>
    %98 = vector.broadcast %95 : vector<4x1x4xf32> to vector<4x8x4xf32>
    %99 = arith.mulf %98, %91 : vector<4x8x4xf32>
    %100 = arith.addf %97, %99 : vector<4x8x4xf32>
    %cst_63 = arith.constant dense<0.000000e+00> : vector<4x8xf32>
    %101 = vector.multi_reduction <add>, %100, %cst_63 [2] : vector<4x8x4xf32> to vector<4x8xf32>
    %102 = vector.extract_strided_slice %101 {offsets = [0, 0], sizes = [4, 4], strides = [1, 1]} : vector<4x8xf32> to vector<4x4xf32>
    %103 = vector.extract_strided_slice %101 {offsets = [0, 4], sizes = [4, 4], strides = [1, 1]} : vector<4x8xf32> to vector<4x4xf32>
    %c4 = arith.constant 4 : index
    %c0_64 = arith.constant 0 : index
    %c0_65 = arith.constant 0 : index
    %c0_66 = arith.constant 0 : index
    %104 = vector.load %arg9[%c4, %c0_64, %c0_65, %c0_66] : memref<8x4x8x4xbf16, #tpu.memory_space<vmem>>, vector<1x4x8x4xbf16>
    %105 = vector.shape_cast %104 : vector<1x4x8x4xbf16> to vector<4x8x4xbf16>
    %106 = arith.extf %105 : vector<4x8x4xbf16> to vector<4x8x4xf32>
    %c4_67 = arith.constant 4 : index
    %c0_68 = arith.constant 0 : index
    %c0_69 = arith.constant 0 : index
    %c0_70 = arith.constant 0 : index
    %107 = vector.load %arg10[%c4_67, %c0_68, %c0_69, %c0_70] : memref<8x4x8x4xbf16, #tpu.memory_space<vmem>>, vector<1x4x8x4xbf16>
    %108 = vector.shape_cast %107 : vector<1x4x8x4xbf16> to vector<4x8x4xbf16>
    %109 = arith.extf %108 : vector<4x8x4xbf16> to vector<4x8x4xf32>
    %110 = vector.extract_strided_slice %30 {offsets = [0, 16], sizes = [4, 4], strides = [1, 1]} : vector<4x32xf32> to vector<4x4xf32>
    %111 = vector.shape_cast %110 : vector<4x4xf32> to vector<4x1x4xf32>
    %112 = vector.extract_strided_slice %31 {offsets = [0, 16], sizes = [4, 4], strides = [1, 1]} : vector<4x32xf32> to vector<4x4xf32>
    %113 = vector.shape_cast %112 : vector<4x4xf32> to vector<4x1x4xf32>
    %114 = vector.broadcast %111 : vector<4x1x4xf32> to vector<4x8x4xf32>
    %115 = arith.mulf %114, %106 : vector<4x8x4xf32>
    %116 = vector.broadcast %113 : vector<4x1x4xf32> to vector<4x8x4xf32>
    %117 = arith.mulf %116, %109 : vector<4x8x4xf32>
    %118 = arith.addf %115, %117 : vector<4x8x4xf32>
    %cst_71 = arith.constant dense<0.000000e+00> : vector<4x8xf32>
    %119 = vector.multi_reduction <add>, %118, %cst_71 [2] : vector<4x8x4xf32> to vector<4x8xf32>
    %120 = vector.extract_strided_slice %119 {offsets = [0, 0], sizes = [4, 4], strides = [1, 1]} : vector<4x8xf32> to vector<4x4xf32>
    %121 = vector.extract_strided_slice %119 {offsets = [0, 4], sizes = [4, 4], strides = [1, 1]} : vector<4x8xf32> to vector<4x4xf32>
    %c5 = arith.constant 5 : index
    %c0_72 = arith.constant 0 : index
    %c0_73 = arith.constant 0 : index
    %c0_74 = arith.constant 0 : index
    %122 = vector.load %arg9[%c5, %c0_72, %c0_73, %c0_74] : memref<8x4x8x4xbf16, #tpu.memory_space<vmem>>, vector<1x4x8x4xbf16>
    %123 = vector.shape_cast %122 : vector<1x4x8x4xbf16> to vector<4x8x4xbf16>
    %124 = arith.extf %123 : vector<4x8x4xbf16> to vector<4x8x4xf32>
    %c5_75 = arith.constant 5 : index
    %c0_76 = arith.constant 0 : index
    %c0_77 = arith.constant 0 : index
    %c0_78 = arith.constant 0 : index
    %125 = vector.load %arg10[%c5_75, %c0_76, %c0_77, %c0_78] : memref<8x4x8x4xbf16, #tpu.memory_space<vmem>>, vector<1x4x8x4xbf16>
    %126 = vector.shape_cast %125 : vector<1x4x8x4xbf16> to vector<4x8x4xbf16>
    %127 = arith.extf %126 : vector<4x8x4xbf16> to vector<4x8x4xf32>
    %128 = vector.extract_strided_slice %30 {offsets = [0, 20], sizes = [4, 4], strides = [1, 1]} : vector<4x32xf32> to vector<4x4xf32>
    %129 = vector.shape_cast %128 : vector<4x4xf32> to vector<4x1x4xf32>
    %130 = vector.extract_strided_slice %31 {offsets = [0, 20], sizes = [4, 4], strides = [1, 1]} : vector<4x32xf32> to vector<4x4xf32>
    %131 = vector.shape_cast %130 : vector<4x4xf32> to vector<4x1x4xf32>
    %132 = vector.broadcast %129 : vector<4x1x4xf32> to vector<4x8x4xf32>
    %133 = arith.mulf %132, %124 : vector<4x8x4xf32>
    %134 = vector.broadcast %131 : vector<4x1x4xf32> to vector<4x8x4xf32>
    %135 = arith.mulf %134, %127 : vector<4x8x4xf32>
    %136 = arith.addf %133, %135 : vector<4x8x4xf32>
    %cst_79 = arith.constant dense<0.000000e+00> : vector<4x8xf32>
    %137 = vector.multi_reduction <add>, %136, %cst_79 [2] : vector<4x8x4xf32> to vector<4x8xf32>
    %138 = vector.extract_strided_slice %137 {offsets = [0, 0], sizes = [4, 4], strides = [1, 1]} : vector<4x8xf32> to vector<4x4xf32>
    %139 = vector.extract_strided_slice %137 {offsets = [0, 4], sizes = [4, 4], strides = [1, 1]} : vector<4x8xf32> to vector<4x4xf32>
    %c6 = arith.constant 6 : index
    %c0_80 = arith.constant 0 : index
    %c0_81 = arith.constant 0 : index
    %c0_82 = arith.constant 0 : index
    %140 = vector.load %arg9[%c6, %c0_80, %c0_81, %c0_82] : memref<8x4x8x4xbf16, #tpu.memory_space<vmem>>, vector<1x4x8x4xbf16>
    %141 = vector.shape_cast %140 : vector<1x4x8x4xbf16> to vector<4x8x4xbf16>
    %142 = arith.extf %141 : vector<4x8x4xbf16> to vector<4x8x4xf32>
    %c6_83 = arith.constant 6 : index
    %c0_84 = arith.constant 0 : index
    %c0_85 = arith.constant 0 : index
    %c0_86 = arith.constant 0 : index
    %143 = vector.load %arg10[%c6_83, %c0_84, %c0_85, %c0_86] : memref<8x4x8x4xbf16, #tpu.memory_space<vmem>>, vector<1x4x8x4xbf16>
    %144 = vector.shape_cast %143 : vector<1x4x8x4xbf16> to vector<4x8x4xbf16>
    %145 = arith.extf %144 : vector<4x8x4xbf16> to vector<4x8x4xf32>
    %146 = vector.extract_strided_slice %30 {offsets = [0, 24], sizes = [4, 4], strides = [1, 1]} : vector<4x32xf32> to vector<4x4xf32>
    %147 = vector.shape_cast %146 : vector<4x4xf32> to vector<4x1x4xf32>
    %148 = vector.extract_strided_slice %31 {offsets = [0, 24], sizes = [4, 4], strides = [1, 1]} : vector<4x32xf32> to vector<4x4xf32>
    %149 = vector.shape_cast %148 : vector<4x4xf32> to vector<4x1x4xf32>
    %150 = vector.broadcast %147 : vector<4x1x4xf32> to vector<4x8x4xf32>
    %151 = arith.mulf %150, %142 : vector<4x8x4xf32>
    %152 = vector.broadcast %149 : vector<4x1x4xf32> to vector<4x8x4xf32>
    %153 = arith.mulf %152, %145 : vector<4x8x4xf32>
    %154 = arith.addf %151, %153 : vector<4x8x4xf32>
    %cst_87 = arith.constant dense<0.000000e+00> : vector<4x8xf32>
    %155 = vector.multi_reduction <add>, %154, %cst_87 [2] : vector<4x8x4xf32> to vector<4x8xf32>
    %156 = vector.extract_strided_slice %155 {offsets = [0, 0], sizes = [4, 4], strides = [1, 1]} : vector<4x8xf32> to vector<4x4xf32>
    %157 = vector.extract_strided_slice %155 {offsets = [0, 4], sizes = [4, 4], strides = [1, 1]} : vector<4x8xf32> to vector<4x4xf32>
    %c7 = arith.constant 7 : index
    %c0_88 = arith.constant 0 : index
    %c0_89 = arith.constant 0 : index
    %c0_90 = arith.constant 0 : index
    %158 = vector.load %arg9[%c7, %c0_88, %c0_89, %c0_90] : memref<8x4x8x4xbf16, #tpu.memory_space<vmem>>, vector<1x4x8x4xbf16>
    %159 = vector.shape_cast %158 : vector<1x4x8x4xbf16> to vector<4x8x4xbf16>
    %160 = arith.extf %159 : vector<4x8x4xbf16> to vector<4x8x4xf32>
    %c7_91 = arith.constant 7 : index
    %c0_92 = arith.constant 0 : index
    %c0_93 = arith.constant 0 : index
    %c0_94 = arith.constant 0 : index
    %161 = vector.load %arg10[%c7_91, %c0_92, %c0_93, %c0_94] : memref<8x4x8x4xbf16, #tpu.memory_space<vmem>>, vector<1x4x8x4xbf16>
    %162 = vector.shape_cast %161 : vector<1x4x8x4xbf16> to vector<4x8x4xbf16>
    %163 = arith.extf %162 : vector<4x8x4xbf16> to vector<4x8x4xf32>
    %164 = vector.extract_strided_slice %30 {offsets = [0, 28], sizes = [4, 4], strides = [1, 1]} : vector<4x32xf32> to vector<4x4xf32>
    %165 = vector.shape_cast %164 : vector<4x4xf32> to vector<4x1x4xf32>
    %166 = vector.extract_strided_slice %31 {offsets = [0, 28], sizes = [4, 4], strides = [1, 1]} : vector<4x32xf32> to vector<4x4xf32>
    %167 = vector.shape_cast %166 : vector<4x4xf32> to vector<4x1x4xf32>
    %168 = vector.broadcast %165 : vector<4x1x4xf32> to vector<4x8x4xf32>
    %169 = arith.mulf %168, %160 : vector<4x8x4xf32>
    %170 = vector.broadcast %167 : vector<4x1x4xf32> to vector<4x8x4xf32>
    %171 = arith.mulf %170, %163 : vector<4x8x4xf32>
    %172 = arith.addf %169, %171 : vector<4x8x4xf32>
    %cst_95 = arith.constant dense<0.000000e+00> : vector<4x8xf32>
    %173 = vector.multi_reduction <add>, %172, %cst_95 [2] : vector<4x8x4xf32> to vector<4x8xf32>
    %174 = vector.extract_strided_slice %173 {offsets = [0, 0], sizes = [4, 4], strides = [1, 1]} : vector<4x8xf32> to vector<4x4xf32>
    %175 = vector.extract_strided_slice %173 {offsets = [0, 4], sizes = [4, 4], strides = [1, 1]} : vector<4x8xf32> to vector<4x4xf32>
    %176 = tpu.concatenate %48, %66, %84, %102, %120, %138, %156, %174 in 1 : vector<4x4xf32>, vector<4x4xf32>, vector<4x4xf32>, vector<4x4xf32>, vector<4x4xf32>, vector<4x4xf32>, vector<4x4xf32>, vector<4x4xf32> -> vector<4x32xf32>
    %177 = tpu.concatenate %49, %67, %85, %103, %121, %139, %157, %175 in 1 : vector<4x4xf32>, vector<4x4xf32>, vector<4x4xf32>, vector<4x4xf32>, vector<4x4xf32>, vector<4x4xf32>, vector<4x4xf32>, vector<4x4xf32> -> vector<4x32xf32>
    %178 = tpu.concatenate %176, %177 in 0 : vector<4x32xf32>, vector<4x32xf32> -> vector<8x32xf32>
    %c0_96 = arith.constant 0 : index
    %c0_97 = arith.constant 0 : index
    %179 = vector.load %arg13[%c0_96, %c0_97] : memref<8x8xf32, #tpu.memory_space<vmem>>, vector<8x8xf32>
    %cst_98 = arith.constant dense<0.000000e+00> : vector<32x8xf32>
    %180 = tpu.matmul %178, %179, %cst_98 {dimension_numbers = #tpu.dot_dimension_numbers<[0], [0], [1], [1], [0, 1, 1, 1], [], []>} : vector<8x32xf32>, vector<8x8xf32>, vector<32x8xf32> -> vector<32x8xf32>
    %c0_99 = arith.constant 0 : index
    %c0_100 = arith.constant 0 : index
    %c0_101 = arith.constant 0 : index
    %181 = vector.load %arg15[%c0_99, %c0_100, %c0_101] : memref<1x32x8xf32, #tpu.memory_space<vmem>>, vector<1x32x8xf32>
    %182 = vector.shape_cast %181 : vector<1x32x8xf32> to vector<32x8xf32>
    %183 = vector.shape_cast %180 : vector<32x8xf32> to vector<1x32x8xf32>
    tpu.vector_store %arg15[%c0_99, %c0_100, %c0_101], %183 {strides = array<i32>} : memref<1x32x8xf32, #tpu.memory_space<vmem>>, vector<1x32x8xf32>,
    return
  }
  func.func @transform_0(%arg0: i32) -> (i32, i32, i32) {
    %c0_i32 = arith.constant 0 : i32
    %c0_i32_0 = arith.constant 0 : i32
    %c0_i32_1 = arith.constant 0 : i32
    return %arg0, %c0_i32, %c0_i32_0 : i32, i32, i32
  }
  func.func @transform_1(%arg0: i32) -> (i32, i32, i32) {
    %c0_i32 = arith.constant 0 : i32
    %c0_i32_0 = arith.constant 0 : i32
    %c0_i32_1 = arith.constant 0 : i32
    return %arg0, %c0_i32, %c0_i32_0 : i32, i32, i32
  }
  func.func @transform_2(%arg0: i32) -> (i32, i32) {
    %c0_i32 = arith.constant 0 : i32
    %c0_i32_0 = arith.constant 0 : i32
    %c0_i32_1 = arith.constant 0 : i32
    return %c0_i32, %c0_i32_0 : i32, i32
  }
  func.func @transform_3(%arg0: i32) -> (i32, i32) {
    %c0_i32 = arith.constant 0 : i32
    %c0_i32_0 = arith.constant 0 : i32
    %c0_i32_1 = arith.constant 0 : i32
    return %c0_i32, %c0_i32_0 : i32, i32
  }
  func.func @transform_4(%arg0: i32) -> (i32, i32) {
    %c0_i32 = arith.constant 0 : i32
    %c0_i32_0 = arith.constant 0 : i32
    %c0_i32_1 = arith.constant 0 : i32
    return %c0_i32, %c0_i32_0 : i32, i32
  }
  func.func @transform_5(%arg0: i32) -> (i32, i32) {
    %c0_i32 = arith.constant 0 : i32
    %c0_i32_0 = arith.constant 0 : i32
    %c0_i32_1 = arith.constant 0 : i32
    return %c0_i32, %c0_i32_0 : i32, i32
  }
  func.func @transform_6(%arg0: i32) -> (i32, i32) {
    %c0_i32 = arith.constant 0 : i32
    %c0_i32_0 = arith.constant 0 : i32
    %c0_i32_1 = arith.constant 0 : i32
    return %c0_i32, %c0_i32_0 : i32, i32
  }
  func.func @transform_7(%arg0: i32) -> (i32, i32) {
    %c0_i32 = arith.constant 0 : i32
    %c0_i32_0 = arith.constant 0 : i32
    %c0_i32_1 = arith.constant 0 : i32
    return %c0_i32, %c0_i32_0 : i32, i32
  }
  func.func @transform_8(%arg0: i32) -> (i32, i32, i32, i32) {
    %c0_i32 = arith.constant 0 : i32
    %c0_i32_0 = arith.constant 0 : i32
    %c0_i32_1 = arith.constant 0 : i32
    %c0_i32_2 = arith.constant 0 : i32
    %c0_i32_3 = arith.constant 0 : i32
    return %c0_i32, %c0_i32_0, %c0_i32_1, %c0_i32_2 : i32, i32, i32, i32
  }
  func.func @transform_9(%arg0: i32) -> (i32, i32, i32, i32) {
    %c0_i32 = arith.constant 0 : i32
    %c0_i32_0 = arith.constant 0 : i32
    %c0_i32_1 = arith.constant 0 : i32
    %c0_i32_2 = arith.constant 0 : i32
    %c0_i32_3 = arith.constant 0 : i32
    return %c0_i32, %c0_i32_0, %c0_i32_1, %c0_i32_2 : i32, i32, i32, i32
  }
  func.func @transform_10(%arg0: i32) -> (i32, i32) {
    %c0_i32 = arith.constant 0 : i32
    %c0_i32_0 = arith.constant 0 : i32
    %c0_i32_1 = arith.constant 0 : i32
    return %c0_i32, %c0_i32_0 : i32, i32
  }
  func.func @transform_11(%arg0: i32) -> (i32, i32) {
    %c0_i32 = arith.constant 0 : i32
    %c0_i32_0 = arith.constant 0 : i32
    %c0_i32_1 = arith.constant 0 : i32
    return %c0_i32, %c0_i32_0 : i32, i32
  }
  func.func @transform_12(%arg0: i32) -> (i32, i32) {
    %c0_i32 = arith.constant 0 : i32
    %c0_i32_0 = arith.constant 0 : i32
    %c0_i32_1 = arith.constant 0 : i32
    return %c0_i32, %c0_i32_0 : i32, i32
  }
  func.func @transform_13(%arg0: i32) -> (i32, i32, i32) {
    %c0_i32 = arith.constant 0 : i32
    %c0_i32_0 = arith.constant 0 : i32
    %c0_i32_1 = arith.constant 0 : i32
    return %arg0, %c0_i32, %c0_i32_0 : i32, i32, i32
  }
  func.func @transform_14(%arg0: i32) -> (i32, i32, i32) {
    %c0_i32 = arith.constant 0 : i32
    %c0_i32_0 = arith.constant 0 : i32
    %c0_i32_1 = arith.constant 0 : i32
    return %arg0, %c0_i32, %c0_i32_0 : i32, i32, i32
  }
}

</mosaic_0001>

<bundles_post_ra>
// kernel: forward.5
= control target key start
LH: loop header
LB: loop body
LE: loop exit
PB: predicated region body
PF: predicated region fallthrough
CT: control target
= control target key end

     0   :  { %s892_s21 = smov 0   ;;  %s1005_s0 = inlined_call_operand.vmem [shape: f32[2,8,32], index: 0, kind: input, shape index: {}]   ;;  %s1006_s1 = inlined_call_operand.vmem [shape: f32[2,8,32], index: 1, kind: input, shape index: {}]   ;;  %s1007_s2 = inlined_call_operand.vmem [shape: f32[32,32], index: 2, kind: input, shape index: {}]   ;;  %s1008_s3 = inlined_call_operand.vmem [shape: f32[8,8], index: 3, kind: input, shape index: {}]   ;;  %s1009_s4 = inlined_call_operand.vmem [shape: f32[32,64], index: 4, kind: input, shape index: {}]   ;;  %s1010_s5 = inlined_call_operand.vmem [shape: f32[64,32], index: 5, kind: input, shape index: {}]   ;;  %s1011_s6 = inlined_call_operand.vmem [shape: f32[1,32], index: 6, kind: input, shape index: {}]   ;;  %s1012_s7 = inlined_call_operand.vmem [shape: f32[1,32], index: 7, kind: input, shape index: {}]   ;;  %s1013_s8 = inlined_call_operand.vmem [shape: f32[32,4], index: 8, kind: input, shape index: {}]   ;;  %s1014_s9 = inlined_call_operand.vmem [shape: f32[1,4], index: 9, kind: input, shape index: {}]   ;;  %s1015_s10 = inlined_call_operand.vmem [shape: f32[2,8,4], index: 10, kind: input, shape index: {}]   ;;  %s1016_s11 = inlined_call_operand.vmem [shape: f32[2,8,4], index: 11, kind: input, shape index: {}]   ;;  %s1017_s12 = inlined_call_operand.vmem [shape: f32[2,8,4], index: 12, kind: output, shape index: {}]  }
   0x1 LB: > { %s780_s22 = sadd.s32 4294967295, %s823_s21   ;;  %p784_p0 = scmp.ge.s32.totalorder %s823_s21, 1  ;;  %s823_s21 = sphi %s892_s21, %s22_s21  }
   0x2   : > { %p388_p1 = scmp.lt.s32.totalorder %s823_s21, 3 }
   0x4   : > { %p389_p2 = pnand %p784_p0, %p388_p1 }
   0x5   : > { %p440_p3 = scmp.lt.s32.totalorder (!%p389_p2), %s780_s22, 1 }
   0x6   : > { %392 = sbr.rel (%p389_p2) target bundleno = 1087 (0x43f), region = 68 }
   0xb   : > { %v465_v0 = vld [vmem:[%s1007_s2 + $0x18] sm:$0xff]  ;;  %v464_v1 = vld [vmem:[%s1007_s2 + $0x10] sm:$0xff]  ;;  %v463_v2 = vld [vmem:[%s1007_s2 + $0x8] sm:$0xff]  ;;  %s1019_s22 = smov (!%p440_p3, %s780_s22), 1  ;;  %vm479_vm0 = vcmask 261120   ;;  %vm504_vm1 = vcmask 64512  }
   0xc   : > { %495 = vmatpush.msra.mxu0 %v465_v0  ;;  %v462_v3 = vld [vmem:[%s1007_s2] sm:$0xff]  ;;  %s912_s13 = sshll.u32 %s1019_s22, 3  ;;  %v470_v5 = vld [vmem:[%s1009_s4 + $0x18] sm:$0xff]  ;;  %v469_v6 = vld [vmem:[%s1009_s4 + $0x10] sm:$0xff]  ;;  %vm552_vm2 = vcmask 523264   ;;  %v825_v28 = vmov 32.0  }
   0xd   : > { %s447_s16 = scalar_lea.vmem %s1006_s1, %s912_s13  ;;  %543 = vmatpush.msra.mxu2 %v470_v5  ;;  %v468_v7 = vld [vmem:[%s1009_s4 + $0x8] sm:$0xff]  ;;  %s443_s26 = scalar_lea.vmem %s1005_s0, %s912_s13  ;;  %v466_v11 = vld [vmem:[%s1008_s3] sm:$0xff]  ;;  %v478_v13 = vld [vmem:[%s1010_s5 + $0x38] sm:$0xff]  ;;  %811 = vrcp.f32 %v825_v28  ;;  %v826_v50 = vmov 8.0   ;;  %vm689_vm8 = vcmask 31744  }
   0xe   : > { %496 = vmatpush.msra.mxu0 %v464_v1  ;;  %v461_v4 = vld [vmem:[%s447_s16] sm:$0xff]  ;;  %v477_v14 = vld [vmem:[%s1010_s5 + $0x30] sm:$0xff]  ;;  %564 = vmatpush.msra.mxu3 %v478_v13  ;;  %v476_v15 = vld [vmem:[%s1010_s5 + $0x28] sm:$0xff]  ;;  %s455_s29 = scalar_lea.vmem %s1016_s11, %s912_s13  ;;  %s451_s15 = scalar_lea.vmem %s1015_s10, %s912_s13 }
   0xf   : > { %544 = vmatpush.msra.mxu2 %v469_v6  ;;  %v460_v8 = vld [vmem:[%s443_s26] sm:$0xff]  ;;  %v474_v17 = vld [vmem:[%s1010_s5 + $0x18] sm:$0xff]  ;;  %v473_v18 = vld [vmem:[%s1010_s5 + $0x10] sm:$0xff]  ;;  %s459_s20 = scalar_lea.vmem %s1017_s12, %s912_s13 }
  0x10   : > { %497 = vmatpush.msra.mxu0 %v463_v2  ;;  %v467_v12 = vld [vmem:[%s1009_s4] sm:$0xff]  ;;  %565 = vmatpush.msra.mxu3 %v477_v14  ;;  %v472_v20 = vld [vmem:[%s1010_s5 + $0x8] sm:$0xff]  ;;  %v655_v40 = vld [vmem:[%s1013_s8 + $0x18] sm:$0xff] }
  0x11   : > { %545 = vmatpush.msra.mxu2 %v468_v7  ;;  %v475_v16 = vld [vmem:[%s1010_s5 + $0x20] sm:$0xff]  ;;  %v654_v41 = vld [vmem:[%s1013_s8 + $0x10] sm:$0xff]  ;;  %v653_v42 = vld [vmem:[%s1013_s8 + $0x8] sm:$0xff] }
  0x12   : > { %498 = vmatpush.msra.mxu0 %v462_v3  ;;  %566 = vmatpush.msra.mxu3 %v476_v15  ;;  %v471_v21 = vld [vmem:[%s1010_s5] sm:$0xff] }
  0x13   : > { %790 = vmatmul.msk.f32.vlgmr.msra.gmra.mxu0 %vm479_vm0, %v461_v4  ;;  %546 = vmatpush.msra.mxu2 %v467_v12  ;;  %v812_v29 = vpop.eup %811  ;;  %v652_v43 = vld [vmem:[%s1013_s8] sm:$0xff] }
  0x14   : > { %567 = vmatpush.msra.mxu3 %v475_v16  ;;  %v601_v30 = vmul.f32 32.0, %v812_v29  ;;  %vm605_vm3 = vweird.f32 %v812_v29  ;;  %675 = vmatpush.msrb.mxu0 %v655_v40  ;;  %v808_v55 = vld [vmem:[%s1011_s6] ss:$0 sm:$0xff] }
  0x15   : > { %v809_v58 = vld [vmem:[%s1012_s7] ss:$0 sm:$0xff] }
  0x16   : > { %568 = vmatpush.msra.mxu3 %v474_v17  ;;  %v602_v31 = vsub.f32 1.0, %v601_v30  ;;  %676 = vmatpush.msrb.mxu0 %v654_v41  ;;  %v810_v12 = vld [vmem:[%s1014_s9] ss:$0 sm:$0xff] }
  0x17   : > { %v684_v13 = vld [vmem:[%s451_s15] sm:$0xff] }
  0x18   : > { %569 = vmatpush.msra.mxu3 %v473_v18  ;;  %v603_v32 = vmul.f32 %v812_v29, %v602_v31  ;;  %677 = vmatpush.msrb.mxu0 %v653_v42 }
  0x1a   : > { %570 = vmatpush.msra.mxu3 %v472_v20  ;;  %v604_v33 = vadd.f32 %v812_v29, %v603_v32  ;;  %678 = vmatpush.msrb.mxu0 %v652_v43 }
  0x1c   : > { %571 = vmatpush.msra.mxu3 %v471_v21  ;;  %v606_v34 = vsel %vm605_vm3, %v812_v29, %v604_v33 }
  0x90   : > { %v500_v9 = vpop.f32.mrf.mxu0 }
  0x91   : > { %v503_v10 = vadd.f32 %v500_v9, %v460_v8 }
  0x93   : > { %523 = vmatpush.msra.mxu1 %v503_v10 }
  0x94   : > { %791 = vmatmul.msk.f32.vlgmr.msra.gmra.mxu1 %vm504_vm1, %v466_v11 }
 0x111   : > { %v525_v19 = vpop.f32.mrf.mxu1 }
 0x112   : > { %792 = vmatmul.msk.f32.vlgmr.msra.gmra.mxu2 %vm479_vm0, %v525_v19 }
 0x195   : > { %v548_v22 = vpop.f32.mrf.mxu2 }
 0x196   : > { %v551_v23 = vmax.f32 %v548_v22, 0.0 }
 0x198   : > { %793 = vmatmul.msk.f32.vlgmr.msra.gmra.mxu3 %vm552_vm2, %v551_v23 }
 0x21b   : > { %v573_v24 = vpop.f32.mrf.mxu3 }
 0x21c   : > { %v576_v25 = vadd.f32 %v573_v24, %v525_v19 }
 0x21e   : > { %592 = vmatpush.msrb.mxu1 %v576_v25 }
 0x21f   : > { %794 = vmatmul.msk.f32.vlgmr.msrb.gmra.mxu1 %vm504_vm1, %v466_v11  ;;  %v683_v11 = vld [vmem:[%s455_s29] sm:$0xff] }
 0x220   : > { %v686_v14 = vsub.f32 1.0, %v683_v11  ;;  %v685_v17 = vmul.f32 %v684_v13, %v683_v11 }
 0x29c   : > { %v594_v26 = vpop.f32.mrf.mxu1 }
 0x29d   : > { %v597_v27 = vsel %vm479_vm0, %v594_v26, 0.0 }
 0x29e   : > { %598 = vadd.xlane.f32.xlu0 %v597_v27 }
 0x311   : > { %v599_v35 = vpop.xlane.xlu0 %598 }
 0x312   : > { %v607_v36 = vmul.f32 %v606_v34, %v599_v35 }
 0x314   : > { %v608_v37 = vsub.f32 %v594_v26, %v607_v36 }
 0x316   : > { %v609_v38 = vmul.f32 %v608_v37, %v608_v37 }
 0x318   : > { %v610_v39 = vsel %vm479_vm0, %v609_v38, 0.0 }
 0x319   : > { %611 = vadd.xlane.f32.xlu0 %v610_v39 }
 0x38c   : > { %v612_v44 = vpop.xlane.xlu0 %611 }
 0x38d   : > { %v613_v45 = vmul.f32 %v612_v44, %v606_v34 }
 0x38f   : > { %v614_v46 = vadd.f32 1e-05, %v613_v45 }
 0x391   : > { %813 = vrsqrt.f32 %v614_v46  ;;  %vm621_vm5 = vweird.f32 %v614_v46 }
 0x392   : > { %815 = vrcp.f32 %v826_v50 }
 0x397   : > { %v814_v47 = vpop.eup %813 }
 0x398   : > { %v616_v48 = vmul.f32 %v814_v47, %v614_v46  ;;  %vm622_vm4 = vweird.f32 %v814_v47  ;;  %v816_v53 = vpop.eup %815 }
 0x399   : > { %vm623_vm6 = vmor %vm621_vm5, %vm622_vm4  ;;  %v644_v59 = vmul.f32 8.0, %v816_v53  ;;  %vm648_vm7 = vweird.f32 %v816_v53 }
 0x39a   : > { %v617_v49 = vmul.f32 %v814_v47, %v616_v48 }
 0x39b   : > { %v645_v62 = vsub.f32 1.0, %v644_v59 }
 0x39c   : > { %v618_v51 = vmul.f32 0.5, %v617_v49 }
 0x39d   : > { %v646_v1 = vmul.f32 %v816_v53, %v645_v62 }
 0x39e   : > { %v619_v52 = vsub.f32 1.5, %v618_v51 }
 0x39f   : > { %v647_v4 = vadd.f32 %v816_v53, %v646_v1 }
 0x3a0   : > { %v620_v54 = vmul.f32 %v814_v47, %v619_v52 }
 0x3a1   : > { %v649_v7 = vsel %vm648_vm7, %v816_v53, %v647_v4 }
 0x3a2   : > { %v624_v56 = vsel %vm623_vm6, %v814_v47, %v620_v54 }
 0x3a3   : > { %v625_v57 = vmul.f32 %v624_v56, %v608_v37 }
 0x3a5   : > { %v630_v60 = vmul.f32 %v808_v55, %v625_v57 }
 0x3a7   : > { %v635_v61 = vadd.f32 %v809_v58, %v630_v60 }
 0x3a9   : > { %v636_v63 = vsel %vm479_vm0, %v635_v61, 0.0 }
 0x3aa   : > { %v637_v0 = vrot.slane %v636_v63, 4 }
 0x3ac   : > { %v638_v2 = vadd.f32 %v637_v0, %v636_v63 }
 0x3ae   : > { %v639_v3 = vrot.slane %v638_v2, 2 }
 0x3b0   : > { %v640_v5 = vadd.f32 %v639_v3, %v638_v2 }
 0x3b2   : > { %v641_v6 = vrot.slane %v640_v5, 1 }
 0x3b4   : > { %v642_v8 = vadd.f32 %v641_v6, %v640_v5 }
 0x3b6   : > { %v650_v9 = vmul.f32 %v649_v7, %v642_v8 }
 0x3b8   : > { %v651_v10 = vsub.f32 %v635_v61, %v650_v9 }
 0x3ba   : > { %795 = vmatmul.msk.f32.vlgmr.msrb.gmra.mxu0 %vm479_vm0, %v651_v10 }
 0x437   : > { %v680_v15 = vpop.f32.mrf.mxu0 }
 0x438   : > { %v681_v16 = vadd.f32 %v810_v12, %v680_v15 }
 0x43a   : > { %v687_v18 = vmul.f32 %v686_v14, %v681_v16 }
 0x43c   : > { %v688_v19 = vadd.f32 %v687_v18, %v685_v17 }
 0x43e   : > { %690 = vst.msk [vmem:[%s459_s20] sm:$0xff] %vm689_vm8, %v688_v19 }
 0x43f PF: > { %s22_s21 = sadd.s32 1, %s823_s21  }
 0x440   : > { %p19_p4 = scmp.ge.s32.totalorder %s22_s21, 4  }
 0x442   :  { %21 = sbr.rel (!%p19_p4) target bundleno = 1 (0x1), region = 107 }

// kernel: forward.3
= control target key start
LH: loop header
LB: loop body
LE: loop exit
PB: predicated region body
PF: predicated region fallthrough
CT: control target
= control target key end

     0   :  { %s2278_s25 = smov 0   ;;  %s2881_s0 = inlined_call_operand.vmem [shape: f32[2,8,4], index: 0, kind: input, shape index: {}]   ;;  %s2882_s1 = inlined_call_operand.vmem [shape: f32[2,8,4], index: 1, kind: input, shape index: {}]   ;;  %s2883_s2 = inlined_call_operand.vmem [shape: f32[4,32], index: 2, kind: input, shape index: {}]   ;;  %s2884_s3 = inlined_call_operand.vmem [shape: f32[4,32], index: 3, kind: input, shape index: {}]   ;;  %s2885_s4 = inlined_call_operand.vmem [shape: f32[8,32], index: 4, kind: input, shape index: {}]   ;;  %s2886_s5 = inlined_call_operand.vmem [shape: f32[32,32], index: 5, kind: input, shape index: {}]   ;;  %s2887_s6 = inlined_call_operand.vmem [shape: f32[1,32], index: 6, kind: input, shape index: {}]   ;;  %s2888_s7 = inlined_call_operand.vmem [shape: bf16[8,4,8,4], index: 7, kind: input, shape index: {}]   ;;  %s2889_s8 = inlined_call_operand.vmem [shape: bf16[8,4,8,4], index: 8, kind: input, shape index: {}]   ;;  %s2890_s9 = inlined_call_operand.vmem [shape: f32[8,8], index: 9, kind: input, shape index: {}]   ;;  %s2891_s10 = inlined_call_operand.vmem [shape: f32[8,1], index: 10, kind: input, shape index: {}]   ;;  %s2892_s11 = inlined_call_operand.vmem [shape: f32[8,8], index: 11, kind: input, shape index: {}]   ;;  %s2893_s12 = inlined_call_operand.vmem [shape: f32[2,8,32], index: 12, kind: output, shape index: {0}]   ;;  %s2894_s13 = inlined_call_operand.vmem [shape: f32[2,32,8], index: 13, kind: output, shape index: {1}]  }
   0x1 LB: > { %s1781_s26 = sadd.s32 4294967295, %s2191_s25   ;;  %p1785_p0 = scmp.ge.s32.totalorder %s2191_s25, 1  ;;  %s2191_s25 = sphi %s2278_s25, %s24_s25  }
   0x2   : > { %p398_p1 = scmp.lt.s32.totalorder %s2191_s25, 3 }
   0x4   : > { %p399_p2 = pnand %p1785_p0, %p398_p1 }
   0x5   : > { %p449_p3 = scmp.lt.s32.totalorder (!%p399_p2), %s1781_s26, 1  ;;  %s2194_s19 = smov (!%p399_p2), 4  }
   0x6   : > { %402 = sbr.rel (%p399_p2) target bundleno = 1101 (0x44d), region = 68  ;;  %s2195_s30 = smov (!%p399_p2), 8  }
   0x7   : > { %s2196_s28 = smov (!%p399_p2), 12   ;;  %s2197_s21 = smov (!%p399_p2), 16  }
   0x8   : > { %s2198_s18 = smov (!%p399_p2), 20   ;;  %s2201_s15 = smov (!%p399_p2), 124  }
   0x9   : > { %s2202_s16 = smov (!%p399_p2), 120   ;;  %s2207_s22 = smov (!%p399_p2), 100  }
   0xb   : > { %v469_v0 = vld [vmem:[%s2884_s3] sm:$0xf]  ;;  %vm474_vm0 = vcmask 1043456   ;;  %s2896_s26 = smov (!%p449_p3, %s1781_s26), 1  ;;  %vm470_vm1 = vcmask 31744   ;;  %v1991_v4 = vld [vmem:[%s2888_s7 + $0x18] sm:$0xff]  }
   0xc   : > { %v467_v1 = vld [vmem:[%s2883_s2] sm:$0xf]  ;;  %1791 = vmatpush.msk.msra.mxu2 %vm474_vm0, %v469_v0  ;;  %s2297_s14 = sshll.u32 %s2896_s26, 3  ;;  %v1882_v5 = vunpack.c.l.bf16 %v1991_v4  ;;  %v1883_v6 = vunpack.c.h.bf16 %v1991_v4  ;;  %v2193_v7 = vmov 0   ;;  %v1990_v8 = vld [vmem:[%s2888_s7 + $0x10] sm:$0xff]   ;;  %v556_v21 = vld [vmem:[%s2886_s5 + $0x18] sm:$0xff] }
   0xd   : > { %1793 = vmatpush.msk.msra.mxu3 %vm474_vm0, %v467_v1  ;;  %s456_s17 = scalar_lea.vmem %s2882_s1, %s2297_s14  ;;  %s452_s20 = scalar_lea.vmem %s2881_s0, %s2297_s14  ;;  %2043 = vset.pattern.permute.xlu0 %v2193_v7  ;;  %v557_v9 = vld [vmem:[%s2891_s10] sm:$0xff]  ;;  %v1878_v11 = vunpack.c.l.bf16 %v1990_v8  ;;  %v1879_v12 = vunpack.c.h.bf16 %v1990_v8  ;;  %v1992_v15 = vld [vmem:[%s2889_s8 + $0x10] sm:$0xff]   ;;  %v1997_v28 = vld [vmem:[%s2889_s8 + $0x28] sm:$0xff]   ;;  %vm526_vm2 = vcmask 261120   ;;  %vm529_vm3 = vcmask 64512  }
   0xe   : > { %v468_v2 = vld [vmem:[%s456_s17] sm:$0xff]  ;;  %561 = vperm.xlu0 %2043, %v557_v9   ;;  %v2049_v14 = vpack.i.bf16 %v1883_v6, %v1882_v5  ;;  %v1886_v22 = vunpack.c.l.bf16 %v1992_v15  ;;  %v1887_v23 = vunpack.c.h.bf16 %v1992_v15  ;;  %v555_v24 = vld [vmem:[%s2886_s5 + $0x10] sm:$0xff]  ;;  %v1993_v32 = vld [vmem:[%s2889_s8 + $0x18] sm:$0xff]   ;;  %v1906_v33 = vunpack.c.l.bf16 %v1997_v28  ;;  %s460_s23 = scalar_lea.vmem %s2893_s12, %s2297_s14  ;;  %s2204_s17 = smov 112  }
   0xf   : > { %1792 = vmatmul.msk.f32.vlgmr.msra.gmra.mxu2 %vm470_vm1, %v468_v2  ;;  %v466_v3 = vld [vmem:[%s452_s20] sm:$0xff]  ;;  %v2044_v16 = vpack.i.bf16 %v1879_v12, %v1878_v11  ;;  %583 = vmatpush.msrb.mxu3 %v556_v21  ;;  %v2000_v26 = vld [vmem:[%s2889_s8 + $0x30] sm:$0xff]   ;;  %v1907_v34 = vunpack.c.h.bf16 %v1997_v28  ;;  %v1890_v35 = vunpack.c.l.bf16 %v1993_v32  ;;  %v1891_v36 = vunpack.c.h.bf16 %v1993_v32  ;;  %v554_v38 = vld [vmem:[%s2886_s5 + $0x8] sm:$0xff]  ;;  %s2205_s20 = smov 108   ;;  %s1859_s24 = sshll.u32 %s2896_s26, 5 }
  0x10   : > { %1794 = vmatmul.msk.f32.vlgmr.msra.gmra.mxu3 %vm470_vm1, %v466_v3  ;;  %v1994_v10 = vld [vmem:[%s2888_s7 + $0x20] sm:$0xff]   ;;  %2050 = vrot.lane.b32.xlu1 %v2049_v14, %s2194_s19  ;;  %v2054_v29 = vpack.i.bf16 %v1887_v23, %v1886_v22  ;;  %v1918_v30 = vunpack.c.l.bf16 %v2000_v26  ;;  %v1919_v31 = vunpack.c.h.bf16 %v2000_v26  ;;  %v2003_v39 = vld [vmem:[%s2888_s7 + $0x48] sm:$0xff]   ;;  %v1998_v42 = vld [vmem:[%s2888_s7 + $0x30] sm:$0xff]   ;;  %vm1419_vm4 = vcmask 1041409   ;;  %s465_s29 = scalar_lea.vmem %s2894_s13, %s1859_s24 }
  0x11   : > { %v1996_v13 = vld [vmem:[%s2889_s8 + $0x20] sm:$0xff]   ;;  %v1894_v17 = vunpack.c.l.bf16 %v1994_v10  ;;  %v1895_v18 = vunpack.c.h.bf16 %v1994_v10  ;;  %2045 = vrot.lane.b32.xlu2 %v2044_v16, %s2194_s19  ;;  %584 = vmatpush.msrb.mxu3 %v555_v24  ;;  %v2005_v40 = vld [vmem:[%s2889_s8 + $0x48] sm:$0xff]   ;;  %v2079_v41 = vpack.i.bf16 %v1907_v34, %v1906_v33  ;;  %v2059_v43 = vpack.i.bf16 %v1891_v36, %v1890_v35  ;;  %v2001_v56 = vld [vmem:[%s2889_s8 + $0x38] sm:$0xff]  }
  0x12   : > { %v1902_v19 = vunpack.c.l.bf16 %v1996_v13  ;;  %v1903_v20 = vunpack.c.h.bf16 %v1996_v13  ;;  %v2094_v37 = vpack.i.bf16 %v1919_v31, %v1918_v30  ;;  %v1930_v44 = vunpack.c.l.bf16 %v2003_v39  ;;  %v1995_v46 = vld [vmem:[%s2888_s7 + $0x28] sm:$0xff]   ;;  %v524_v55 = vld [vmem:[%s2885_s4] sm:$0xff]  ;;  %v2008_v4 = vld [vmem:[%s2889_s8 + $0x50] sm:$0xff]  }
  0x13   : > { %v2064_v27 = vpack.i.bf16 %v1895_v18, %v1894_v17  ;;  %585 = vmatpush.msrb.mxu3 %v554_v38  ;;  %v1938_v45 = vunpack.c.l.bf16 %v2005_v40  ;;  %v1910_v47 = vunpack.c.l.bf16 %v1998_v42  ;;  %v1911_v48 = vunpack.c.h.bf16 %v1998_v42  ;;  %v528_v60 = vld [vmem:[%s2890_s9] sm:$0xff]  ;;  %v1999_v5 = vld [vmem:[%s2888_s7 + $0x38] sm:$0xff]   ;;  %v2013_v26 = vld [vmem:[%s2889_s8 + $0x68] sm:$0xff]  }
  0x14   : > { %v2074_v25 = vpack.i.bf16 %v1903_v20, %v1902_v19  ;;  %v1898_v49 = vunpack.c.l.bf16 %v1995_v46  ;;  %v1899_v50 = vunpack.c.h.bf16 %v1995_v46  ;;  %v1922_v61 = vunpack.c.l.bf16 %v2001_v56  ;;  %v2004_v0 = vld [vmem:[%s2889_s8 + $0x40] sm:$0xff]   ;;  %v2014_v30 = vld [vmem:[%s2888_s7 + $0x70] sm:$0xff]   ;;  %v2009_v42 = vld [vmem:[%s2889_s8 + $0x58] sm:$0xff]  }
  0x15   : > { %v2114_v51 = vpack.i.bf16 %v1938_v45, %v1930_v44  ;;  %v2084_v53 = vpack.i.bf16 %v1911_v48, %v1910_v47  ;;  %v1923_v62 = vunpack.c.h.bf16 %v2001_v56  ;;  %v1934_v1 = vunpack.c.l.bf16 %v2004_v0  ;;  %v553_v15 = vld [vmem:[%s2886_s5] sm:$0xff]  ;;  %v2017_v44 = vld [vmem:[%s2889_s8 + $0x78] sm:$0xff]  }
  0x16   : > { %2075 = vrot.lane.b32.xlu0 %v2074_v25, %s2195_s30  ;;  %v2069_v57 = vpack.i.bf16 %v1899_v50, %v1898_v49  ;;  %v1935_v2 = vunpack.c.h.bf16 %v2004_v0  ;;  %v1950_v6 = vunpack.c.l.bf16 %v2008_v4  ;;  %v1951_v7 = vunpack.c.h.bf16 %v2008_v4  ;;  %586 = vmatpush.msrb.mxu3 %v553_v15  ;;  %v2010_v16 = vld [vmem:[%s2888_s7 + $0x60] sm:$0xff]   ;;  %v2011_v25 = vld [vmem:[%s2888_s7 + $0x68] sm:$0xff]  }
  0x17   : > { %v2099_v63 = vpack.i.bf16 %v1923_v62, %v1922_v61  ;;  %v1914_v8 = vunpack.c.l.bf16 %v1999_v5  ;;  %v1915_v9 = vunpack.c.h.bf16 %v1999_v5  ;;  %v1931_v10 = vunpack.c.h.bf16 %v2003_v39  ;;  %v2002_v17 = vld [vmem:[%s2888_s7 + $0x40] sm:$0xff]  }
  0x18   : > { %2065 = vrot.lane.b32.xlu1 %v2064_v27, %s2195_s30  ;;  %v2109_v3 = vpack.i.bf16 %v1935_v2, %v1934_v1  ;;  %v1939_v11 = vunpack.c.h.bf16 %v2005_v40  ;;  %v2124_v12 = vpack.i.bf16 %v1951_v7, %v1950_v6  ;;  %v2012_v18 = vld [vmem:[%s2889_s8 + $0x60] sm:$0xff]   ;;  %v1958_v19 = vunpack.c.l.bf16 %v2010_v16  ;;  %v2006_v27 = vld [vmem:[%s2888_s7 + $0x50] sm:$0xff]  }
  0x19   : > { %2055 = vrot.lane.b32.xlu2 %v2054_v29, %s2194_s19  ;;  %v2089_v13 = vpack.i.bf16 %v1915_v9, %v1914_v8  ;;  %v1959_v20 = vunpack.c.h.bf16 %v2010_v16  ;;  %v1926_v21 = vunpack.c.l.bf16 %v2002_v17  ;;  %v1927_v22 = vunpack.c.h.bf16 %v2002_v17  ;;  %v2184_v1 = vld [vmem:[%s2887_s6] ss:$0 sm:$0xff] }
  0x1a   : > { %v2129_v14 = vpack.i.bf16 %v1939_v11, %v1931_v10  ;;  %v1966_v23 = vunpack.c.l.bf16 %v2012_v18  ;;  %v1967_v24 = vunpack.c.h.bf16 %v2012_v18  ;;  %v1962_v32 = vunpack.c.l.bf16 %v2011_v25  ;;  %v1861_v10 = vld [vmem:[%s2888_s7] sm:$0xff]  }
  0x1b   : > { %v2139_v28 = vpack.i.bf16 %v1959_v20, %v1958_v19  ;;  %v2104_v29 = vpack.i.bf16 %v1927_v22, %v1926_v21  ;;  %v1970_v33 = vunpack.c.l.bf16 %v2013_v26  ;;  %v1942_v34 = vunpack.c.l.bf16 %v2006_v27  ;;  %v1869_v11 = vld [vmem:[%s2889_s8] sm:$0xff]  }
  0x1c   : > { %v2144_v31 = vpack.i.bf16 %v1967_v24, %v1966_v23  ;;  %v1943_v35 = vunpack.c.h.bf16 %v2006_v27  ;;  %v1974_v36 = vunpack.c.l.bf16 %v2014_v30  ;;  %v1963_v45 = vunpack.c.h.bf16 %v2011_v25 }
  0x1d   : > { %v2154_v38 = vpack.i.bf16 %v1970_v33, %v1962_v32  ;;  %v1971_v46 = vunpack.c.h.bf16 %v2013_v26  ;;  %v1954_v48 = vunpack.c.l.bf16 %v2009_v42  ;;  %v1986_v50 = vunpack.c.l.bf16 %v2017_v44 }
  0x1e   : > { %2095 = vrot.lane.b32.xlu0 %v2094_v37, %s2196_s28  ;;  %v1975_v37 = vunpack.c.h.bf16 %v2014_v30  ;;  %v2119_v39 = vpack.i.bf16 %v1943_v35, %v1942_v34  ;;  %v1862_v16 = vunpack.c.l.bf16 %v1861_v10  ;;  %v1863_v17 = vunpack.c.h.bf16 %v1861_v10 }
  0x1f   : > { %v1870_v20 = vunpack.c.l.bf16 %v1869_v11  ;;  %v1871_v21 = vunpack.c.h.bf16 %v1869_v11  ;;  %vm1534_vm5 = vcmask 1045509   ;;  %vm1421_vm6 = vcmask 1042434  }
  0x20   : > { %2080 = vrot.lane.b32.xlu1 %v2079_v41, %s2195_s30  ;;  %v2159_v40 = vpack.i.bf16 %v1975_v37, %v1974_v36  ;;  %v2007_v41 = vld [vmem:[%s2888_s7 + $0x58] sm:$0xff]   ;;  %vm1536_vm7 = vcmask 1046534   ;;  %vm1423_vm8 = vcmask 1043459   ;;  %vm1538_vm9 = vcmask 1047559  }
  0x21   : > { %2060 = vrot.lane.b32.xlu2 %v2059_v43, %s2194_s19  ;;  %v2015_v43 = vld [vmem:[%s2888_s7 + $0x78] sm:$0xff]   ;;  %v1946_v47 = vunpack.c.l.bf16 %v2007_v41  ;;  %s2206_s19 = smov 104   ;;  %vm1519_vm10 = vcmask 97280   ;;  %vm1521_vm11 = vcmask 130048   ;;  %vm1523_vm12 = vcmask 162816  }
  0x22   : > { %v1978_v49 = vunpack.c.l.bf16 %v2015_v43  ;;  %v1979_v62 = vunpack.c.h.bf16 %v2015_v43  ;;  %vm1525_vm13 = vcmask 195584   ;;  %vm1527_vm14 = vcmask 228352  }
  0x26   : > { %2115 = vrot.lane.b32.xlu0 %v2114_v51, %s2197_s21  ;;  %v2169_v51 = vpack.i.bf16 %v1971_v46, %v1963_v45 }
  0x28   : > { %2085 = vrot.lane.b32.xlu1 %v2084_v53, %s2196_s28  ;;  %v2174_v53 = vpack.i.bf16 %v1986_v50, %v1978_v49 }
  0x29   : > { %2070 = vrot.lane.b32.xlu2 %v2069_v57, %s2195_s30  ;;  %s2200_s30 = smov 28   ;;  %v2016_v57 = vld [vmem:[%s2889_s8 + $0x70] sm:$0xff]  }
  0x2e   : > { %2130 = vrot.lane.b32.xlu0 %v2129_v14, %s2197_s21  ;;  %v1989_v14 = vld [vmem:[%s2889_s8 + $0x8] sm:$0xff]  }
  0x2f   : > { %v1875_v26 = vunpack.c.h.bf16 %v1989_v14  ;;  %v1874_v34 = vunpack.c.l.bf16 %v1989_v14 }
  0x30   : > { %2100 = vrot.lane.b32.xlu1 %v2099_v63, %s2196_s28  ;;  %v1987_v63 = vunpack.c.h.bf16 %v2017_v44 }
  0x31   : > { %2090 = vrot.lane.b32.xlu2 %v2089_v13, %s2196_s28  ;;  %v1988_v13 = vld [vmem:[%s2888_s7 + $0x8] sm:$0xff]  }
  0x32   : > { %v2179_v0 = vpack.i.bf16 %v1987_v63, %v1979_v62  ;;  %v1867_v25 = vunpack.c.h.bf16 %v1988_v13  ;;  %v1866_v44 = vunpack.c.l.bf16 %v1988_v13 }
  0x38   : > { %2110 = vrot.lane.b32.xlu1 %v2109_v3, %s2197_s21 }
  0x39   : > { %2105 = vrot.lane.b32.xlu2 %v2104_v29, %s2197_s21 }
  0x40   : > { %2125 = vrot.lane.b32.xlu1 %v2124_v12, %s2198_s18 }
  0x41   : > { %2120 = vrot.lane.b32.xlu2 %v2119_v39, %s2198_s18 }
  0x6b   : > { %v2444_v3 = vpop.permute.xlu2 %2045 }
  0x6c   : > { %v2048_v13 = vunpack.i.h.bf16 %v2444_v3 }
  0x73   : > { %v2459_v12 = vpop.permute.xlu2 %2055 }
  0x7b   : > { %v2483_v46 = vpop.permute.xlu2 %2060 }
  0x80   : > { %v562_v2 = vpop.permute.xlu0 %561 }
  0x81   : > { %v567_v4 = vmul.f32 %v2184_v1, %v562_v2 }
  0x82   : > { %v2446_v6 = vpop.permute.xlu1 %2050 }
  0x83   : > { %v2053_v2 = vunpack.i.h.bf16 %v2446_v6 }
  0x8a   : > { %v2474_v27 = vpop.permute.xlu1 %2065 }
  0x92   : > { %v495_v52 = vpop.f32.mrf.mxu2 }
  0x93   : > { %v521_v54 = vpop.f32.mrf.mxu3 }
  0x94   : > { %v522_v58 = vadd.f32 %v521_v54, %v495_v52  ;;  %v2134_v52 = vpack.i.bf16 %v1954_v48, %v1946_v47  ;;  %v1947_v54 = vunpack.c.h.bf16 %v2007_v41 }
  0x96   : > { %v525_v59 = vadd.f32 %v524_v55, %v522_v58  ;;  %2135 = vrot.lane.b32.xlu2 %v2134_v52, %s2198_s18  ;;  %v1955_v55 = vunpack.c.h.bf16 %v2009_v42  ;;  %v1982_v58 = vunpack.c.l.bf16 %v2016_v57 }
  0x98   : > { %548 = vmatpush.msrb.mxu2 %v525_v59  ;;  %527 = vst.msk [vmem:[%s460_s23] sm:$0xff] %vm526_vm2, %v525_v59  ;;  %s2199_s23 = smov 24   ;;  %v2149_v56 = vpack.i.bf16 %v1955_v55, %v1947_v54  ;;  %v1983_v59 = vunpack.c.h.bf16 %v2016_v57 }
  0x99   : > { %1795 = vmatmul.msk.f32.vlgmr.msrb.gmra.mxu2 %vm529_vm3, %v528_v60  ;;  %2140 = vrot.lane.b32.xlu1 %v2139_v28, %s2199_s23 }
  0x9a   : > { %2145 = vrot.lane.b32.xlu0 %v2144_v31, %s2199_s23  ;;  %v2164_v61 = vpack.i.bf16 %v1983_v59, %v1982_v58  ;;  %v2495_v59 = vpop.permute.xlu2 %2070 }
  0x9e   : > { %2150 = vrot.lane.b32.xlu2 %v2149_v56, %s2198_s18  ;;  %v2491_v56 = vpop.permute.xlu1 %2080 }
  0xa1   : > { %2155 = vrot.lane.b32.xlu1 %v2154_v38, %s2199_s23 }
  0xa2   : > { %2160 = vrot.lane.b32.xlu0 %v2159_v40, %s2200_s30 }
  0xa6   : > { %2165 = vrot.lane.b32.xlu2 %v2164_v61, %s2200_s30  ;;  %v2063_v61 = vunpack.i.h.bf16 %v2483_v46 }
  0xa9   : > { %2170 = vrot.lane.b32.xlu1 %v2169_v51, %s2199_s23 }
  0xaa   : > { %2175 = vrot.lane.b32.xlu0 %v2174_v53, %s2200_s30 }
  0xae   : > { %2180 = vrot.lane.b32.xlu2 %v2179_v0, %s2200_s30  ;;  %s2203_s30 = smov 116  }
 0x11c   : > { %v550_v60 = vpop.f32.mrf.mxu2 }
 0x11d   : > { %1796 = vmatmul.msk.f32.vlgmr.msrb.gmra.mxu3 %vm526_vm2, %v550_v60 }
 0x1a0   : > { %v588_v5 = vpop.f32.mrf.mxu3 }
 0x1a1   : > { %v2448_v7 = vadd.f32 %v588_v5, %v567_v4  ;;  %v2504_v4 = vpop.permute.xlu1 %2085 }
 0x1a3   : > { %611 = vst [vmem:[#allocation1] sm:$0xff] %v2448_v7  ;;  %v608_v8 = vrot.slane %v2448_v7, 1  ;;  %v610_v9 = vrot.slane %v2448_v7, 3  ;;  %v2468_v15 = vperm.slane %v2448_v7, 0  ;;  %v609_v29 = vrot.slane %v2448_v7, 2 }
 0x1a5   : > { %v2470_v18 = vperm.slane %v608_v8, 0  ;;  %v2472_v19 = vperm.slane %v610_v9, 0  ;;  %v628_v32 = vmul.f32 %v1862_v16, %v2468_v15  ;;  %v2481_v41 = vperm.slane %v609_v29, 0  ;;  %v2076_v9 = vpop.permute.xlu0 %2075 }
 0x1a6   : > { %v2058_v8 = vunpack.i.h.bf16 %v2459_v12  ;;  %v2078_v14 = vunpack.i.h.bf16 %v2076_v9  ;;  %v2057_v29 = vunpack.i.l.bf16 %v2459_v12 }
 0x1a7   : > { %v629_v36 = vmul.f32 %v1863_v17, %v2470_v18  ;;  %v631_v39 = vmul.f32 %v1867_v25, %v2472_v19  ;;  %v630_v54 = vmul.f32 %v1866_v44, %v2481_v41  ;;  %v706_v11 = vmul.f32 %v2053_v2, %v2472_v19 }
 0x1a8   : > { %v2068_v25 = vunpack.i.h.bf16 %v2474_v27  ;;  %v2073_v2 = vunpack.i.h.bf16 %v2495_v59 }
 0x1aa   : > { %v613_v22 = vld [vmem:[#allocation1 + $0x4] ss:$9 sm:$0xff]  ;;  %v617_v24 = vld [vmem:[#allocation1 + $0x6] ss:$9 sm:$0xff] }
 0x1ab   : > { %v615_v23 = vld [vmem:[#allocation1 + $0x5] ss:$9 sm:$0xff]  ;;  %v619_v28 = vld [vmem:[#allocation1 + $0x7] ss:$9 sm:$0xff]  ;;  %v632_v30 = vperm.slane %v613_v22, 0  ;;  %v634_v38 = vperm.slane %v617_v24, 0 }
 0x1ac   : > { %v633_v31 = vperm.slane %v615_v23, 0  ;;  %678 = vst [vmem:[#allocation1] sm:$0xff] %v2448_v7  ;;  %v635_v33 = vperm.slane %v619_v28, 0  ;;  %v704_v28 = vmul.f32 %v2048_v13, %v2470_v18 }
 0x1ad   : > { %v640_v35 = vmul.f32 %v1870_v20, %v632_v30  ;;  %v642_v49 = vmul.f32 %v1874_v34, %v634_v38  ;;  %v2509_v20 = vpop.permute.xlu2 %2090  ;;  %v2067_v38 = vunpack.i.l.bf16 %v2474_v27 }
 0x1ae   : > { %v641_v37 = vmul.f32 %v1871_v21, %v633_v31  ;;  %v643_v40 = vmul.f32 %v1875_v26, %v635_v33  ;;  %v2077_v31 = vunpack.i.l.bf16 %v2076_v9 }
 0x1af   : > { %v644_v42 = vadd.f32 %v640_v35, %v628_v32  ;;  %v646_v57 = vadd.f32 %v642_v49, %v630_v54  ;;  %v2522_v32 = vpop.permute.xlu1 %2100  ;;  %v2083_v54 = vunpack.i.h.bf16 %v2491_v56 }
 0x1b0   : > { %v645_v43 = vadd.f32 %v641_v37, %v629_v36  ;;  %v647_v45 = vadd.f32 %v643_v40, %v631_v39  ;;  %v811_v36 = vmul.f32 %v2068_v25, %v2470_v18  ;;  %v2047_v37 = vunpack.i.l.bf16 %v2444_v3  ;;  %v2527_v39 = vpop.permute.xlu0 %2095 }
 0x1b1   : > { %v648_v47 = vsel %vm470_vm1, %v644_v42, 0.0  ;;  %v654_v58 = vsel %vm470_vm1, %v646_v57, 0.0  ;;  %v2097_v40 = vunpack.i.l.bf16 %v2527_v39 }
 0x1b2   : > { %v651_v48 = vsel %vm470_vm1, %v645_v43, 0.0  ;;  %649 = vadd.xlane.f32.xlu0 %v648_v47  ;;  %v657_v50 = vsel %vm470_vm1, %v647_v45, 0.0  ;;  %v2087_v45 = vunpack.i.l.bf16 %v2504_v4 }
 0x1b3   : > { %652 = vadd.xlane.f32.xlu1 %v651_v48  ;;  %v680_v51 = vld [vmem:[#allocation1 + $0x4] ss:$9 sm:$0xff]  ;;  %v2488_v53 = vld [vmem:[#allocation1 + $0x6] ss:$9 sm:$0xff]  ;;  %658 = vadd.xlane.f32.xlu2 %v657_v50  ;;  %v810_v50 = vmul.f32 %v2067_v38, %v2468_v15 }
 0x1b4   : > { %v682_v52 = vld [vmem:[#allocation1 + $0x5] ss:$9 sm:$0xff]  ;;  %v686_v55 = vld [vmem:[#allocation1 + $0x7] ss:$9 sm:$0xff]  ;;  %v707_v35 = vperm.slane %v680_v51, 0  ;;  %v703_v51 = vmul.f32 %v2047_v37, %v2468_v15 }
 0x1b5   : > { %785 = vst [vmem:[#allocation1] sm:$0xff] %v2448_v7  ;;  %v710_v60 = vperm.slane %v686_v55, 0  ;;  %v708_v10 = vperm.slane %v682_v52, 0  ;;  %v2539_v3 = vpop.permute.xlu2 %2105  ;;  %v2062_v52 = vunpack.i.l.bf16 %v2483_v46  ;;  %v2103_v46 = vunpack.i.h.bf16 %v2522_v32 }
 0x1b6   : > { %v731_v44 = vmul.f32 %v2057_v29, %v707_v35  ;;  %v2072_v35 = vunpack.i.l.bf16 %v2495_v59 }
 0x1b7   : > { %v734_v5 = vmul.f32 %v2063_v61, %v710_v60  ;;  %v732_v24 = vmul.f32 %v2058_v8, %v708_v10  ;;  %v709_v61 = vperm.slane %v2488_v53, 0  ;;  %v2093_v53 = vunpack.i.h.bf16 %v2509_v20 }
 0x1b9   : > { %v738_v16 = vadd.f32 %v734_v5, %v706_v11  ;;  %v736_v33 = vadd.f32 %v732_v24, %v704_v28  ;;  %v2553_v5 = vpop.permute.xlu1 %2110  ;;  %v733_v10 = vmul.f32 %v2062_v52, %v709_v61  ;;  %v2098_v24 = vunpack.i.h.bf16 %v2527_v39 }
 0x1bb   : > { %655 = vadd.xlane.f32.xlu1 %v654_v58  ;;  %v735_v58 = vadd.f32 %v731_v44, %v703_v51 }
 0x1bc   : > { %v787_v62 = vld [vmem:[#allocation1 + $0x4] ss:$9 sm:$0xff]  ;;  %v2498_v0 = vld [vmem:[#allocation1 + $0x6] ss:$9 sm:$0xff] }
 0x1bd   : > { %v789_v63 = vld [vmem:[#allocation1 + $0x5] ss:$9 sm:$0xff]  ;;  %v2500_v1 = vld [vmem:[#allocation1 + $0x7] ss:$9 sm:$0xff]  ;;  %v814_v34 = vperm.slane %v787_v62, 0  ;;  %v917_v62 = vmul.f32 %v2087_v45, %v2468_v15  ;;  %v2571_v28 = vpop.permute.xlu2 %2120 }
 0x1be   : > { %892 = vst [vmem:[#allocation1] sm:$0xff] %v2448_v7  ;;  %v815_v17 = vperm.slane %v789_v63, 0  ;;  %v817_v60 = vperm.slane %v2500_v1, 0  ;;  %v2052_v63 = vunpack.i.l.bf16 %v2446_v6  ;;  %v2116_v6 = vpop.permute.xlu0 %2115 }
 0x1bf   : > { %v838_v43 = vmul.f32 %v2077_v31, %v814_v34  ;;  %v920_v34 = vmul.f32 %v2093_v53, %v2472_v19 }
 0x1c0   : > { %v839_v30 = vmul.f32 %v2078_v14, %v815_v17  ;;  %v841_v1 = vmul.f32 %v2083_v54, %v817_v60  ;;  %v705_v17 = vmul.f32 %v2052_v63, %v2481_v41  ;;  %v2117_v60 = vunpack.i.l.bf16 %v2116_v6 }
 0x1c1   : > { %v842_v57 = vadd.f32 %v838_v43, %v810_v50  ;;  %v2583_v39 = vpop.permute.xlu1 %2125 }
 0x1c2   : > { %v843_v12 = vadd.f32 %v839_v30, %v811_v36  ;;  %v737_v30 = vadd.f32 %v733_v10, %v705_v17  ;;  %v2113_v36 = vunpack.i.h.bf16 %v2553_v5 }
 0x1c5   : > { %v894_v21 = vld [vmem:[#allocation1 + $0x4] ss:$9 sm:$0xff]  ;;  %v2513_v23 = vld [vmem:[#allocation1 + $0x6] ss:$9 sm:$0xff]  ;;  %v2601_v61 = vpop.permute.xlu2 %2135 }
 0x1c6   : > { %v2511_v22 = vld [vmem:[#allocation1 + $0x5] ss:$9 sm:$0xff]  ;;  %v2516_v26 = vld [vmem:[#allocation1 + $0x7] ss:$9 sm:$0xff]  ;;  %749 = vrot.lane.b32.xlu0 %v738_v16, %s2201_s15  ;;  %v921_v42 = vperm.slane %v894_v21, 0  ;;  %v813_v16 = vmul.f32 %v2073_v2, %v2472_v19  ;;  %v2082_v21 = vunpack.i.l.bf16 %v2491_v56  ;;  %v2088_v56 = vunpack.i.h.bf16 %v2504_v4  ;;  %v2131_v50 = vpop.permute.xlu0 %2130 }
 0x1c7   : > { %999 = vst [vmem:[#allocation1] sm:$0xff] %v2448_v7  ;;  %v924_v9 = vperm.slane %v2516_v26, 0  ;;  %v922_v31 = vperm.slane %v2511_v22, 0  ;;  %v812_v4 = vmul.f32 %v2072_v35, %v2481_v41  ;;  %v2127_v35 = vunpack.i.l.bf16 %v2583_v39 }
 0x1c8   : > { %v945_v55 = vmul.f32 %v2097_v40, %v921_v42  ;;  %v845_v29 = vadd.f32 %v841_v1, %v813_v16  ;;  %v918_v59 = vmul.f32 %v2088_v56, %v2470_v18  ;;  %v2118_v42 = vunpack.i.h.bf16 %v2116_v6 }
 0x1c9   : > { %v948_v26 = vmul.f32 %v2103_v46, %v924_v9  ;;  %v946_v22 = vmul.f32 %v2098_v24, %v922_v31  ;;  %v2112_v9 = vunpack.i.l.bf16 %v2553_v5  ;;  %v2133_v1 = vunpack.i.h.bf16 %v2131_v50 }
 0x1ca   : > { %v949_v8 = vadd.f32 %v945_v55, %v917_v62  ;;  %v2128_v62 = vunpack.i.h.bf16 %v2583_v39  ;;  %v2132_v24 = vunpack.i.l.bf16 %v2131_v50 }
 0x1cb   : > { %745 = vrot.lane.b32.xlu2 %v736_v33, %s2201_s15  ;;  %v816_v33 = vperm.slane %v2498_v0, 0  ;;  %v952_v37 = vadd.f32 %v948_v26, %v920_v34  ;;  %v2108_v0 = vunpack.i.h.bf16 %v2539_v3  ;;  %v950_v52 = vadd.f32 %v946_v22, %v918_v59 }
 0x1cd   : > { %v840_v40 = vmul.f32 %v2082_v21, %v816_v33  ;;  %v2107_v21 = vunpack.i.l.bf16 %v2539_v3  ;;  %v2617_v31 = vpop.permute.xlu2 %2150 }
 0x1ce   : > { %v2532_v47 = vld [vmem:[#allocation1 + $0x4] ss:$9 sm:$0xff]  ;;  %v2536_v49 = vld [vmem:[#allocation1 + $0x6] ss:$9 sm:$0xff]  ;;  %852 = vrot.lane.b32.xlu0 %v843_v12, %s2202_s16  ;;  %v2102_v12 = vunpack.i.l.bf16 %v2522_v32  ;;  %v1025_v32 = vmul.f32 %v2108_v0, %v2470_v18  ;;  %v2146_v26 = vpop.permute.xlu0 %2145 }
 0x1cf   : > { %v2534_v48 = vld [vmem:[#allocation1 + $0x5] ss:$9 sm:$0xff]  ;;  %v2541_v27 = vld [vmem:[#allocation1 + $0x7] ss:$9 sm:$0xff]  ;;  %v844_v54 = vadd.f32 %v840_v40, %v812_v4  ;;  %v1030_v55 = vperm.slane %v2536_v49, 0  ;;  %v1028_v16 = vperm.slane %v2532_v47, 0  ;;  %v1027_v47 = vmul.f32 %v2132_v24, %v2472_v19 }
 0x1d0   : > { %1106 = vst [vmem:[#allocation1] sm:$0xff] %v2448_v7  ;;  %v1029_v38 = vperm.slane %v2534_v48, 0  ;;  %v1024_v3 = vmul.f32 %v2107_v21, %v2468_v15  ;;  %v2148_v56 = vunpack.i.h.bf16 %v2146_v26  ;;  %v2122_v4 = vunpack.i.l.bf16 %v2571_v28 }
 0x1d1   : > { %v1054_v49 = vmul.f32 %v2118_v42, %v1030_v55  ;;  %v1052_v34 = vmul.f32 %v2112_v9, %v1028_v16 }
 0x1d2   : > { %v1053_v48 = vmul.f32 %v2113_v36, %v1029_v38  ;;  %v1131_v55 = vmul.f32 %v2122_v4, %v2468_v15 }
 0x1d3   : > { %850 = vrot.lane.b32.xlu2 %v842_v57, %s2202_s16  ;;  %v923_v57 = vperm.slane %v2513_v23, 0  ;;  %v2123_v23 = vunpack.i.h.bf16 %v2571_v28  ;;  %v1056_v22 = vadd.f32 %v1052_v34, %v1024_v3 }
 0x1d4   : > { %743 = vrot.lane.b32.xlu1 %v735_v58, %s2201_s15  ;;  %v2092_v58 = vunpack.i.l.bf16 %v2509_v20  ;;  %v1057_v63 = vadd.f32 %v1053_v48, %v1025_v32  ;;  %v1026_v20 = vmul.f32 %v2117_v60, %v2481_v41 }
 0x1d5   : > { %v947_v46 = vmul.f32 %v2102_v12, %v923_v57  ;;  %v1132_v17 = vmul.f32 %v2123_v23, %v2470_v18  ;;  %v2138_v57 = vunpack.i.h.bf16 %v2601_v61 }
 0x1d6   : > { %957 = vrot.lane.b32.xlu0 %v949_v8, %s2203_s30  ;;  %v919_v8 = vmul.f32 %v2092_v58, %v2481_v41  ;;  %v1058_v53 = vadd.f32 %v1054_v49, %v1026_v20  ;;  %v2630_v48 = vpop.permute.xlu0 %2160  ;;  %v2137_v49 = vunpack.i.l.bf16 %v2601_v61 }
 0x1d7   : > { %v2561_v11 = vld [vmem:[#allocation1 + $0x4] ss:$9 sm:$0xff]  ;;  %v2563_v14 = vld [vmem:[#allocation1 + $0x6] ss:$9 sm:$0xff] }
 0x1d8   : > { %v1110_v13 = vld [vmem:[#allocation1 + $0x5] ss:$9 sm:$0xff]  ;;  %v2569_v25 = vld [vmem:[#allocation1 + $0x7] ss:$9 sm:$0xff]  ;;  %v951_v6 = vadd.f32 %v947_v46, %v919_v8  ;;  %v1135_v0 = vperm.slane %v2561_v11, 0  ;;  %v2166_v11 = vpop.permute.xlu2 %2165  ;;  %v2162_v46 = vunpack.i.l.bf16 %v2630_v48 }
 0x1d9   : > { %1213 = vst [vmem:[#allocation1] sm:$0xff] %v2448_v7  ;;  %v1136_v2 = vperm.slane %v1110_v13, 0  ;;  %v1031_v13 = vperm.slane %v2541_v27, 0  ;;  %v2167_v58 = vunpack.i.l.bf16 %v2166_v11 }
 0x1db   : > { %856 = vrot.lane.b32.xlu2 %v845_v29, %s2202_s16  ;;  %v1160_v10 = vmul.f32 %v2128_v62, %v1136_v2  ;;  %v2147_v29 = vunpack.i.l.bf16 %v2146_v26  ;;  %v1055_v33 = vmul.f32 %v2133_v1, %v1031_v13  ;;  %v2153_v13 = vunpack.i.h.bf16 %v2617_v31 }
 0x1dc   : > { %747 = vrot.lane.b32.xlu1 %v737_v30, %s2201_s15 }
 0x1dd   : > { %v1164_v5 = vadd.f32 %v1160_v10, %v1132_v17  ;;  %v1059_v38 = vadd.f32 %v1055_v33, %v1027_v47 }
 0x1de   : > { %963 = vrot.lane.b32.xlu0 %v952_v37, %s2203_s30  ;;  %v2176_v61 = vpop.permute.xlu0 %2175 }
 0x1df   : > { %v2178_v17 = vunpack.i.h.bf16 %v2176_v61 }
 0x1e0   : > { %v2590_v43 = vld [vmem:[#allocation1 + $0x6] ss:$9 sm:$0xff]  ;;  %v1215_v44 = vld [vmem:[#allocation1 + $0x4] ss:$9 sm:$0xff] }
 0x1e1   : > { %v2592_v45 = vld [vmem:[#allocation1 + $0x5] ss:$9 sm:$0xff]  ;;  %v2594_v51 = vld [vmem:[#allocation1 + $0x7] ss:$9 sm:$0xff]  ;;  %v1242_v30 = vperm.slane %v1215_v44, 0  ;;  %v1244_v39 = vperm.slane %v2590_v43, 0 }
 0x1e2   : > { %1320 = vst [vmem:[#allocation1] sm:$0xff] %v2448_v7  ;;  %v2141_v7 = vpop.permute.xlu1 %2140  ;;  %v1243_v40 = vperm.slane %v2592_v45, 0  ;;  %v1245_v20 = vperm.slane %v2594_v51, 0  ;;  %v1138_v51 = vperm.slane %v2569_v25, 0  ;;  %v2168_v25 = vunpack.i.h.bf16 %v2166_v11 }
 0x1e3   : > { %959 = vrot.lane.b32.xlu2 %v950_v52, %s2203_s30  ;;  %v2142_v27 = vunpack.i.l.bf16 %v2141_v7  ;;  %v1266_v36 = vmul.f32 %v2147_v29, %v1242_v30  ;;  %v2143_v12 = vunpack.i.h.bf16 %v2141_v7  ;;  %v1159_v52 = vmul.f32 %v2127_v35, %v1135_v0 }
 0x1e4   : > { %854 = vrot.lane.b32.xlu1 %v844_v54, %s2202_s16  ;;  %v1267_v50 = vmul.f32 %v2148_v56, %v1243_v40  ;;  %v2177_v30 = vunpack.i.l.bf16 %v2176_v61  ;;  %v1162_v34 = vmul.f32 %v2153_v13, %v1138_v51  ;;  %v2181_v40 = vpop.permute.xlu2 %2180 }
 0x1e5   : > { %v1238_v59 = vmul.f32 %v2142_v27, %v2468_v15  ;;  %v1239_v28 = vmul.f32 %v2143_v12, %v2470_v18  ;;  %v1163_v62 = vadd.f32 %v1159_v52, %v1131_v55  ;;  %v2183_v0 = vunpack.i.h.bf16 %v2181_v40 }
 0x1e6   : > { %1066 = vrot.lane.b32.xlu0 %v1057_v63, %s2204_s17  ;;  %v1137_v63 = vperm.slane %v2563_v14, 0  ;;  %v1345_v14 = vmul.f32 %v2162_v46, %v2468_v15  ;;  %v1347_v47 = vmul.f32 %v2177_v30, %v2481_v41 }
 0x1e7   : > { %v1270_v44 = vadd.f32 %v1266_v36, %v1238_v59  ;;  %v1271_v60 = vadd.f32 %v1267_v50, %v1239_v28 }
 0x1e8   : > { %v1161_v1 = vmul.f32 %v2138_v57, %v1137_v63 }
 0x1e9   : > { %v1322_v54 = vld [vmem:[#allocation1 + $0x4] ss:$9 sm:$0xff] }
 0x1ea   : > { %v2156_v37 = vpop.permute.xlu1 %2155  ;;  %v1349_v43 = vperm.slane %v1322_v54, 0  ;;  %v1324_v27 = vld [vmem:[#allocation1 + $0x5] ss:$9 sm:$0xff] }
 0x1eb   : > { %1068 = vrot.lane.b32.xlu2 %v1058_v53, %s2204_s17  ;;  %v2158_v42 = vunpack.i.h.bf16 %v2156_v37  ;;  %v2157_v45 = vunpack.i.l.bf16 %v2156_v37  ;;  %v1326_v53 = vld [vmem:[#allocation1 + $0x6] ss:$9 sm:$0xff]  ;;  %v1350_v35 = vperm.slane %v1324_v27, 0 }
 0x1ec   : > { %961 = vrot.lane.b32.xlu1 %v951_v6, %s2203_s30  ;;  %v1373_v9 = vmul.f32 %v2167_v58, %v1349_v43  ;;  %v1133_v6 = vmul.f32 %v2137_v49, %v2481_v41  ;;  %v1351_v21 = vperm.slane %v1326_v53, 0 }
 0x1ed   : > { %v1268_v32 = vmul.f32 %v2158_v42, %v1244_v39  ;;  %v1240_v2 = vmul.f32 %v2157_v45, %v2481_v41  ;;  %v1374_v37 = vmul.f32 %v2168_v25, %v1350_v35  ;;  %v2182_v41 = vunpack.i.l.bf16 %v2181_v40 }
 0x1ee   : > { %1173 = vrot.lane.b32.xlu0 %v1164_v5, %s2205_s20  ;;  %v1377_v24 = vadd.f32 %v1373_v9, %v1345_v14  ;;  %v1165_v26 = vadd.f32 %v1161_v1, %v1133_v6  ;;  %v2152_v5 = vunpack.i.l.bf16 %v2617_v31  ;;  %v1375_v33 = vmul.f32 %v2178_v17, %v1351_v21 }
 0x1ef   : > { %v1272_v8 = vadd.f32 %v1268_v32, %v1240_v2  ;;  %v2163_v31 = vunpack.i.h.bf16 %v2630_v48  ;;  %v1348_v42 = vmul.f32 %v2182_v41, %v2472_v19 }
 0x1f0   : > { %v1134_v3 = vmul.f32 %v2152_v5, %v2472_v19  ;;  %v1379_v56 = vadd.f32 %v1375_v33, %v1347_v47 }
 0x1f2   : > { %v2171_v23 = vpop.permute.xlu1 %2170  ;;  %v1166_v36 = vadd.f32 %v1162_v34, %v1134_v3 }
 0x1f3   : > { %1070 = vrot.lane.b32.xlu2 %v1059_v38, %s2204_s17  ;;  %v2173_v7 = vunpack.i.h.bf16 %v2171_v23  ;;  %v2172_v10 = vunpack.i.l.bf16 %v2171_v23  ;;  %v1328_v38 = vld [vmem:[#allocation1 + $0x7] ss:$9 sm:$0xff] }
 0x1f4   : > { %1064 = vrot.lane.b32.xlu1 %v1056_v22, %s2204_s17  ;;  %v1346_v22 = vmul.f32 %v2163_v31, %v2470_v18  ;;  %v1352_v59 = vperm.slane %v1328_v38, 0 }
 0x1f5   : > { %v1269_v16 = vmul.f32 %v2173_v7, %v1245_v20  ;;  %v1241_v29 = vmul.f32 %v2172_v10, %v2472_v19 }
 0x1f6   : > { %1278 = vrot.lane.b32.xlu0 %v1270_v44, %s2206_s19  ;;  %v1378_v4 = vadd.f32 %v1374_v37, %v1346_v22  ;;  %v1376_v12 = vmul.f32 %v2183_v0, %v1352_v59  ;;  %v1413_v44 = vlaneseq }
 0x1f7   : > { %v1273_v15 = vadd.f32 %v1269_v16, %v1241_v29 }
 0x1f8   : > { %v1380_v39 = vadd.f32 %v1376_v12, %v1348_v42  ;;  %v2658_v48 = vand.u32 127, %v1413_v44 }
 0x1fa   : > { %v1529_v50 = vadd.s32 4, %v2658_v48 }
 0x1fb   : > { %1280 = vrot.lane.b32.xlu2 %v1271_v60, %s2206_s19 }
 0x1fc   : > { %1171 = vrot.lane.b32.xlu1 %v1163_v62, %s2205_s20 }
 0x1fe   : > { %1282 = vrot.lane.b32.xlu0 %v1272_v8, %s2206_s19 }
 0x203   : > { %1385 = vrot.lane.b32.xlu2 %v1377_v24, %s2207_s22 }
 0x204   : > { %1175 = vrot.lane.b32.xlu1 %v1165_v26, %s2205_s20 }
 0x206   : > { %1284 = vrot.lane.b32.xlu0 %v1273_v15, %s2206_s19 }
 0x20b   : > { %1389 = vrot.lane.b32.xlu2 %v1379_v56, %s2207_s22 }
 0x20c   : > { %1177 = vrot.lane.b32.xlu1 %v1166_v36, %s2205_s20 }
 0x214   : > { %1387 = vrot.lane.b32.xlu1 %v1378_v4, %s2207_s22 }
 0x21c   : > { %1391 = vrot.lane.b32.xlu1 %v1380_v39, %s2207_s22 }
 0x225   : > { %v650_v52 = vpop.xlane.xlu0 %649 }
 0x226   : > { %v653_v18 = vpop.xlane.xlu1 %652  ;;  %v1415_v45 = vperm.slane %v650_v52, %v2658_v48  ;;  %v1530_v54 = vperm.slane %v650_v52, %v1529_v50  ;;  %v659_v57 = vpop.xlane.xlu2 %658 }
 0x227   : > { %v1416_v11 = vperm.slane %v653_v18, %v2658_v48  ;;  %v1531_v28 = vperm.slane %v653_v18, %v1529_v50  ;;  %v1418_v60 = vperm.slane %v659_v57, %v2658_v48  ;;  %v1533_v62 = vperm.slane %v659_v57, %v1529_v50 }
 0x229   : > { %v1420_v55 = vsel %vm1419_vm4, %v1416_v11, %v1415_v45  ;;  %v1535_v19 = vsel %vm1534_vm5, %v1531_v28, %v1530_v54 }
 0x22e   : > { %v656_v32 = vpop.xlane.xlu1 %655  ;;  %v746_v7 = vpop.permute.xlu2 %745 }
 0x22f   : > { %v1417_v58 = vperm.slane %v656_v32, %v2658_v48  ;;  %v1532_v43 = vperm.slane %v656_v32, %v1529_v50  ;;  %v758_v8 = vsel %vm470_vm1, %v746_v7, 0.0 }
 0x231   : > { %v1422_v63 = vsel %vm1421_vm6, %v1417_v58, %v1420_v55  ;;  %v1537_v2 = vsel %vm1536_vm7, %v1532_v43, %v1535_v19 }
 0x232   : > { %v2670_v49 = vsel %vm1423_vm8, %v1418_v60, %v1422_v63  ;;  %v2673_v46 = vsel %vm1538_vm9, %v1533_v62, %v1537_v2  ;;  %v2704_v60 = vadd.s32 4294967292, %v2658_v48 }
 0x236   : > { %v851_v9 = vpop.permute.xlu2 %850 }
 0x237   : > { %v862_v24 = vsel %vm470_vm1, %v851_v9, 0.0 }
 0x238   : > { %v750_v23 = vpop.permute.xlu0 %749 }
 0x239   : > { %v764_v6 = vsel %vm470_vm1, %v750_v23, 0.0 }
 0x23e   : > { %v857_v16 = vpop.permute.xlu2 %856 }
 0x23f   : > { %v871_v30 = vsel %vm470_vm1, %v857_v16, 0.0 }
 0x240   : > { %v853_v20 = vpop.permute.xlu0 %852 }
 0x241   : > { %v865_v14 = vsel %vm470_vm1, %v853_v20, 0.0 }
 0x246   : > { %759 = vadd.xlane.f32.xlu1 %v758_v8  ;;  %v744_v1 = vpop.permute.xlu1 %743  ;;  %v960_v51 = vpop.permute.xlu2 %959 }
 0x247   : > { %v755_v10 = vsel %vm470_vm1, %v744_v1, 0.0  ;;  %v972_v15 = vsel %vm470_vm1, %v960_v51, 0.0 }
 0x248   : > { %756 = vadd.xlane.f32.xlu2 %v755_v10  ;;  %v958_v53 = vpop.permute.xlu0 %957 }
 0x249   : > { %v969_v3 = vsel %vm470_vm1, %v958_v53, 0.0 }
 0x24e   : > { %866 = vadd.xlane.f32.xlu1 %v865_v14  ;;  %v748_v61 = vpop.permute.xlu1 %747  ;;  %v1069_v34 = vpop.permute.xlu2 %1068 }
 0x24f   : > { %v761_v13 = vsel %vm470_vm1, %v748_v61, 0.0  ;;  %v1082_v37 = vsel %vm470_vm1, %v1069_v34, 0.0 }
 0x250   : > { %765 = vadd.xlane.f32.xlu2 %v764_v6  ;;  %762 = vadd.xlane.f32.xlu0 %v761_v13  ;;  %v964_v17 = vpop.permute.xlu0 %963 }
 0x251   : > { %v978_v35 = vsel %vm470_vm1, %v964_v17, 0.0 }
 0x256   : > { %v855_v21 = vpop.permute.xlu1 %854  ;;  %v1071_v56 = vpop.permute.xlu2 %1070 }
 0x257   : > { %v868_v26 = vsel %vm470_vm1, %v855_v21, 0.0  ;;  %v1085_v0 = vsel %vm470_vm1, %v1071_v56, 0.0 }
 0x258   : > { %863 = vadd.xlane.f32.xlu0 %v862_v24  ;;  %869 = vadd.xlane.f32.xlu2 %v868_v26  ;;  %v1067_v29 = vpop.permute.xlu0 %1066 }
 0x259   : > { %v1079_v31 = vsel %vm470_vm1, %v1067_v29, 0.0 }
 0x25e   : > { %v962_v5 = vpop.permute.xlu1 %961  ;;  %v1281_v4 = vpop.permute.xlu2 %1280 }
 0x25f   : > { %v975_v33 = vsel %vm470_vm1, %v962_v5, 0.0  ;;  %v1293_v42 = vsel %vm470_vm1, %v1281_v4, 0.0 }
 0x260   : > { %872 = vadd.xlane.f32.xlu0 %v871_v30  ;;  %973 = vadd.xlane.f32.xlu2 %v972_v15  ;;  %v1174_v47 = vpop.permute.xlu0 %1173 }
 0x261   : > { %976 = vadd.xlane.f32.xlu1 %v975_v33  ;;  %v1186_v38 = vsel %vm470_vm1, %v1174_v47, 0.0 }
 0x266   : > { %v1065_v27 = vpop.permute.xlu1 %1064  ;;  %v1386_v52 = vpop.permute.xlu2 %1385 }
 0x267   : > { %v1076_v25 = vsel %vm470_vm1, %v1065_v27, 0.0  ;;  %v1397_v45 = vsel %vm470_vm1, %v1386_v52, 0.0 }
 0x268   : > { %970 = vadd.xlane.f32.xlu0 %v969_v3  ;;  %1077 = vadd.xlane.f32.xlu2 %v1076_v25  ;;  %v1279_v22 = vpop.permute.xlu0 %1278 }
 0x269   : > { %979 = vadd.xlane.f32.xlu1 %v978_v35  ;;  %v1290_v41 = vsel %vm470_vm1, %v1279_v22, 0.0 }
 0x26e   : > { %v1172_v36 = vpop.permute.xlu1 %1171  ;;  %v1390_v55 = vpop.permute.xlu2 %1389 }
 0x26f   : > { %v1183_v59 = vsel %vm470_vm1, %v1172_v36, 0.0  ;;  %v1403_v19 = vsel %vm470_vm1, %v1390_v55, 0.0  ;;  %v1443_v36 = vadd.s32 4294967288, %v2658_v48 }
 0x270   : > { %1080 = vadd.xlane.f32.xlu0 %v1079_v31  ;;  %1083 = vadd.xlane.f32.xlu2 %v1082_v37  ;;  %v1283_v12 = vpop.permute.xlu0 %1282  ;;  %v1605_v31 = vld [vmem:[%s2892_s11] sm:$0xff] }
 0x271   : > { %1187 = vadd.xlane.f32.xlu1 %v1186_v38  ;;  %v1296_v50 = vsel %vm470_vm1, %v1283_v12, 0.0  ;;  %1665 = vmatpush.msra.mxu0 %v1605_v31 }
 0x272   : > { %2018 = vmatpush.msra.mxu1 %v1605_v31 }
 0x276   : > { %v1176_v40 = vpop.permute.xlu1 %1175 }
 0x277   : > { %v1189_v39 = vsel %vm470_vm1, %v1176_v40, 0.0 }
 0x278   : > { %1086 = vadd.xlane.f32.xlu2 %v1085_v0  ;;  %1184 = vadd.xlane.f32.xlu0 %v1183_v59  ;;  %v1285_v18 = vpop.permute.xlu0 %1284 }
 0x279   : > { %1291 = vadd.xlane.f32.xlu1 %v1290_v41  ;;  %v1299_v11 = vsel %vm470_vm1, %v1285_v18, 0.0 }
 0x27e   : > { %v1178_v44 = vpop.permute.xlu1 %1177 }
 0x27f   : > { %v1192_v54 = vsel %vm470_vm1, %v1178_v44, 0.0 }
 0x280   : > { %1294 = vadd.xlane.f32.xlu2 %v1293_v42  ;;  %1190 = vadd.xlane.f32.xlu0 %v1189_v39 }
 0x281   : > { %1297 = vadd.xlane.f32.xlu1 %v1296_v50 }
 0x286   : > { %v1388_v28 = vpop.permute.xlu1 %1387 }
 0x287   : > { %v1400_v57 = vsel %vm470_vm1, %v1388_v28, 0.0 }
 0x288   : > { %1398 = vadd.xlane.f32.xlu2 %v1397_v45  ;;  %1193 = vadd.xlane.f32.xlu0 %v1192_v54 }
 0x289   : > { %1300 = vadd.xlane.f32.xlu1 %v1299_v11 }
 0x28e   : > { %v1392_v32 = vpop.permute.xlu1 %1391 }
 0x28f   : > { %v1406_v58 = vsel %vm470_vm1, %v1392_v32, 0.0 }
 0x290   : > { %1404 = vadd.xlane.f32.xlu2 %v1403_v19  ;;  %1401 = vadd.xlane.f32.xlu0 %v1400_v57  ;;  %v2763_v19 = vadd.s32 4294967280, %v2658_v48 }
 0x298   : > { %1407 = vadd.xlane.f32.xlu0 %v1406_v58 }
 0x2b9   : > { %v760_v62 = vpop.xlane.xlu1 %759 }
 0x2ba   : > { %v1432_v23 = vperm.slane %v760_v62, %v2704_v60  ;;  %v1542_v7 = vperm.slane %v760_v62, %v2658_v48 }
 0x2bb   : > { %v757_v43 = vpop.xlane.xlu2 %756 }
 0x2bc   : > { %v1431_v63 = vperm.slane %v757_v43, %v2704_v60  ;;  %v1541_v2 = vperm.slane %v757_v43, %v2658_v48 }
 0x2be   : > { %v1435_v14 = vsel %vm1419_vm4, %v1432_v23, %v1431_v63  ;;  %v1545_v61 = vsel %vm1534_vm5, %v1542_v7, %v1541_v2 }
 0x2c1   : > { %v867_v29 = vpop.xlane.xlu1 %866 }
 0x2c2   : > { %v1445_v41 = vperm.slane %v867_v29, %v1443_v36  ;;  %v1550_v42 = vperm.slane %v867_v29, %v2704_v60 }
 0x2c3   : > { %v766_v20 = vpop.xlane.xlu2 %765  ;;  %v763_v8 = vpop.xlane.xlu0 %762 }
 0x2c4   : > { %v1434_v9 = vperm.slane %v766_v20, %v2704_v60  ;;  %v1544_v1 = vperm.slane %v766_v20, %v2658_v48  ;;  %v1433_v10 = vperm.slane %v763_v8, %v2704_v60  ;;  %v1543_v53 = vperm.slane %v763_v8, %v2658_v48 }
 0x2c6   : > { %v1436_v6 = vsel %vm1421_vm6, %v1433_v10, %v1435_v14  ;;  %v1546_v13 = vsel %vm1536_vm7, %v1543_v53, %v1545_v61  ;;  %v2780_v10 = vadd.s32 4294967276, %v2658_v48 }
 0x2c7   : > { %v1437_v16 = vsel %vm1423_vm8, %v1434_v9, %v1436_v6  ;;  %v1547_v17 = vsel %vm1538_vm9, %v1544_v1, %v1546_v13 }
 0x2c8   : > { %v2722_v21 = vsel %vm470_vm1, %v2670_v49, %v1437_v16  ;;  %v2726_v24 = vsel %vm470_vm1, %v2673_v46, %v1547_v17  ;;  %v2739_v46 = vadd.s32 4294967284, %v2658_v48 }
 0x2cb   : > { %v864_v26 = vpop.xlane.xlu0 %863  ;;  %v870_v51 = vpop.xlane.xlu2 %869 }
 0x2cc   : > { %v1444_v38 = vperm.slane %v864_v26, %v1443_v36  ;;  %v1549_v59 = vperm.slane %v864_v26, %v2704_v60  ;;  %v1446_v39 = vperm.slane %v870_v51, %v1443_v36  ;;  %v1551_v44 = vperm.slane %v870_v51, %v2704_v60 }
 0x2cd   : > { %v2793_v26 = vadd.s32 4294967272, %v2658_v48 }
 0x2ce   : > { %v1448_v52 = vsel %vm1419_vm4, %v1445_v41, %v1444_v38  ;;  %v1553_v11 = vsel %vm1534_vm5, %v1550_v42, %v1549_v59 }
 0x2cf   : > { %v1449_v32 = vsel %vm1421_vm6, %v1446_v39, %v1448_v52  ;;  %v1554_v2 = vsel %vm1536_vm7, %v1551_v44, %v1553_v11 }
 0x2d3   : > { %v873_v5 = vpop.xlane.xlu0 %872  ;;  %v974_v30 = vpop.xlane.xlu2 %973 }
 0x2d4   : > { %v977_v15 = vpop.xlane.xlu1 %976  ;;  %v1458_v4 = vperm.slane %v974_v30, %v2739_v46  ;;  %v1558_v12 = vperm.slane %v974_v30, %v1443_v36  ;;  %v1447_v18 = vperm.slane %v873_v5, %v1443_v36  ;;  %v1552_v28 = vperm.slane %v873_v5, %v2704_v60 }
 0x2d5   : > { %v1459_v45 = vperm.slane %v977_v15, %v2739_v46  ;;  %v1559_v55 = vperm.slane %v977_v15, %v1443_v36  ;;  %v1508_v30 = vadd.s32 4294967268, %v2658_v48 }
 0x2d6   : > { %v1450_v60 = vsel %vm1423_vm8, %v1447_v18, %v1449_v32  ;;  %v1555_v8 = vsel %vm1538_vm9, %v1552_v28, %v1554_v2 }
 0x2d7   : > { %v1518_v13 = vsel %vm529_vm3, %v2722_v21, %v1450_v60  ;;  %v1598_v51 = vsel %vm529_vm3, %v2726_v24, %v1555_v8 }
 0x2db   : > { %v971_v33 = vpop.xlane.xlu0 %970  ;;  %v2728_v34 = vpop.xlane.xlu2 %1077 }
 0x2dc   : > { %v980_v27 = vpop.xlane.xlu1 %979  ;;  %v1457_v37 = vperm.slane %v971_v33, %v2739_v46  ;;  %v1557_v22 = vperm.slane %v971_v33, %v1443_v36  ;;  %v1470_v9 = vperm.slane %v2728_v34, %v2763_v19  ;;  %v1565_v14 = vperm.slane %v2728_v34, %v2739_v46 }
 0x2dd   : > { %v1460_v43 = vperm.slane %v980_v27, %v2739_v46  ;;  %v1560_v23 = vperm.slane %v980_v27, %v1443_v36 }
 0x2de   : > { %v1461_v50 = vsel %vm1419_vm4, %v1458_v4, %v1457_v37  ;;  %v1561_v54 = vsel %vm1534_vm5, %v1558_v12, %v1557_v22 }
 0x2df   : > { %v1462_v57 = vsel %vm1421_vm6, %v1459_v45, %v1461_v50  ;;  %v1562_v58 = vsel %vm1536_vm7, %v1559_v55, %v1561_v54 }
 0x2e0   : > { %v1463_v1 = vsel %vm1423_vm8, %v1460_v43, %v1462_v57  ;;  %v1563_v61 = vsel %vm1538_vm9, %v1560_v23, %v1562_v58 }
 0x2e1   : > { %v1520_v29 = vsel %vm1519_vm10, %v1518_v13, %v1463_v1  ;;  %v1599_v21 = vsel %vm1519_vm10, %v1598_v51, %v1563_v61 }
 0x2e3   : > { %v1081_v47 = vpop.xlane.xlu0 %1080  ;;  %v2730_v3 = vpop.xlane.xlu2 %1083 }
 0x2e4   : > { %v2732_v25 = vpop.xlane.xlu1 %1187  ;;  %v1471_v62 = vperm.slane %v1081_v47, %v2763_v19  ;;  %v1566_v7 = vperm.slane %v1081_v47, %v2739_v46  ;;  %v1472_v6 = vperm.slane %v2730_v3, %v2763_v19  ;;  %v1567_v17 = vperm.slane %v2730_v3, %v2739_v46 }
 0x2e5   : > { %v1484_v15 = vperm.slane %v2732_v25, %v2780_v10  ;;  %v1574_v24 = vperm.slane %v2732_v25, %v2763_v19 }
 0x2e6   : > { %v1474_v16 = vsel %vm1419_vm4, %v1471_v62, %v1470_v9  ;;  %v1569_v5 = vsel %vm1534_vm5, %v1566_v7, %v1565_v14 }
 0x2e7   : > { %v1475_v27 = vsel %vm1421_vm6, %v1472_v6, %v1474_v16  ;;  %v1570_v3 = vsel %vm1536_vm7, %v1567_v17, %v1569_v5 }
 0x2eb   : > { %v2734_v49 = vpop.xlane.xlu2 %1086  ;;  %v2736_v35 = vpop.xlane.xlu0 %1184 }
 0x2ec   : > { %v2741_v56 = vpop.xlane.xlu1 %1291  ;;  %v1473_v33 = vperm.slane %v2734_v49, %v2763_v19  ;;  %v1568_v34 = vperm.slane %v2734_v49, %v2739_v46  ;;  %v1483_v47 = vperm.slane %v2736_v35, %v2780_v10  ;;  %v1573_v48 = vperm.slane %v2736_v35, %v2763_v19 }
 0x2ed   : > { %v1496_v49 = vperm.slane %v2741_v56, %v2793_v26  ;;  %v1581_v25 = vperm.slane %v2741_v56, %v2780_v10 }
 0x2ee   : > { %v1476_v38 = vsel %vm1423_vm8, %v1473_v33, %v1475_v27  ;;  %v1571_v22 = vsel %vm1538_vm9, %v1568_v34, %v1570_v3  ;;  %v1487_v41 = vsel %vm1419_vm4, %v1484_v15, %v1483_v47  ;;  %v1577_v56 = vsel %vm1534_vm5, %v1574_v24, %v1573_v48 }
 0x2ef   : > { %v1522_v32 = vsel %vm1521_vm11, %v1520_v29, %v1476_v38  ;;  %v1600_v58 = vsel %vm1521_vm11, %v1599_v21, %v1571_v22 }
 0x2f3   : > { %v2748_v40 = vpop.xlane.xlu2 %1294  ;;  %v2750_v0 = vpop.xlane.xlu0 %1190 }
 0x2f4   : > { %v2770_v63 = vpop.xlane.xlu1 %1297  ;;  %v1497_v36 = vperm.slane %v2748_v40, %v2793_v26  ;;  %v1582_v31 = vperm.slane %v2748_v40, %v2780_v10  ;;  %v1485_v46 = vperm.slane %v2750_v0, %v2780_v10  ;;  %v1575_v35 = vperm.slane %v2750_v0, %v2763_v19 }
 0x2f5   : > { %v1498_v12 = vperm.slane %v2770_v63, %v2793_v26  ;;  %v1583_v0 = vperm.slane %v2770_v63, %v2780_v10 }
 0x2f6   : > { %v1500_v42 = vsel %vm1419_vm4, %v1497_v36, %v1496_v49  ;;  %v1585_v39 = vsel %vm1534_vm5, %v1582_v31, %v1581_v25  ;;  %v1488_v18 = vsel %vm1421_vm6, %v1485_v46, %v1487_v41  ;;  %v1578_v45 = vsel %vm1536_vm7, %v1575_v35, %v1577_v56 }
 0x2f7   : > { %v1501_v63 = vsel %vm1421_vm6, %v1498_v12, %v1500_v42  ;;  %v1586_v2 = vsel %vm1536_vm7, %v1583_v0, %v1585_v39 }
 0x2fb   : > { %v1194_v20 = vpop.xlane.xlu0 %1193  ;;  %v1399_v53 = vpop.xlane.xlu2 %1398 }
 0x2fc   : > { %v1486_v40 = vperm.slane %v1194_v20, %v2780_v10  ;;  %v1576_v59 = vperm.slane %v1194_v20, %v2763_v19  ;;  %v1301_v4 = vpop.xlane.xlu1 %1300  ;;  %v1509_v28 = vperm.slane %v1399_v53, %v1508_v30  ;;  %v1589_v55 = vperm.slane %v1399_v53, %v2793_v26 }
 0x2fd   : > { %v1499_v54 = vperm.slane %v1301_v4, %v2793_v26  ;;  %v1584_v11 = vperm.slane %v1301_v4, %v2780_v10 }
 0x2fe   : > { %v1489_v19 = vsel %vm1423_vm8, %v1486_v40, %v1488_v18  ;;  %v1579_v57 = vsel %vm1538_vm9, %v1576_v59, %v1578_v45 }
 0x2ff   : > { %v1502_v7 = vsel %vm1423_vm8, %v1499_v54, %v1501_v63  ;;  %v1587_v20 = vsel %vm1538_vm9, %v1584_v11, %v1586_v2  ;;  %v1524_v9 = vsel %vm1523_vm12, %v1522_v32, %v1489_v19  ;;  %v1601_v1 = vsel %vm1523_vm12, %v1600_v58, %v1579_v57 }
 0x300   : > { %v1526_v13 = vsel %vm1525_vm13, %v1524_v9, %v1502_v7  ;;  %v1602_v17 = vsel %vm1525_vm13, %v1601_v1, %v1587_v20 }
 0x303   : > { %v1402_v37 = vpop.xlane.xlu0 %1401  ;;  %v1405_v44 = vpop.xlane.xlu2 %1404 }
 0x304   : > { %v1510_v50 = vperm.slane %v1402_v37, %v1508_v30  ;;  %v1590_v52 = vperm.slane %v1402_v37, %v2793_v26  ;;  %v1511_v43 = vperm.slane %v1405_v44, %v1508_v30  ;;  %v1591_v62 = vperm.slane %v1405_v44, %v2793_v26 }
 0x306   : > { %v1513_v60 = vsel %vm1419_vm4, %v1510_v50, %v1509_v28  ;;  %v1593_v23 = vsel %vm1534_vm5, %v1590_v52, %v1589_v55 }
 0x307   : > { %v1514_v14 = vsel %vm1421_vm6, %v1511_v43, %v1513_v60  ;;  %v1594_v61 = vsel %vm1536_vm7, %v1591_v62, %v1593_v23 }
 0x30b   : > { %v1408_v8 = vpop.xlane.xlu0 %1407 }
 0x30c   : > { %v1512_v10 = vperm.slane %v1408_v8, %v1508_v30  ;;  %v1592_v53 = vperm.slane %v1408_v8, %v2793_v26 }
 0x30e   : > { %v1515_v6 = vsel %vm1423_vm8, %v1512_v10, %v1514_v14  ;;  %v1595_v16 = vsel %vm1538_vm9, %v1592_v53, %v1594_v61 }
 0x30f   : > { %v1528_v51 = vsel %vm1527_vm14, %v1526_v13, %v1515_v6  ;;  %v1603_v29 = vsel %vm1527_vm14, %v1602_v17, %v1595_v16 }
 0x310   : > { %v1604_v5 = vsel %vm474_vm0, %v1528_v51, %v1603_v29 }
 0x311   : > { %1606 = vxpose.xlu1.b32.start.end [1/1] (short) (narrow) %v1604_v5, 32 }
 0x3b5   : > { %v1622_v26 = vpop.trf.xlu1 }
 0x3b6   : > { %1853 = vmatmul.msk.f32.vlgmr.msra.gmra.mxu0 %vm529_vm3, %v1622_v26 }
 0x3bd   : > { %v1623_v30 = vpop.trf.xlu1 }
 0x3be   : > { %1854 = vmatmul.msk.f32.gmra.mxu0 %vm529_vm3, %v1623_v30 }
 0x3c5   : > { %v1624_v21 = vpop.trf.xlu1 }
 0x3c6   : > { %1855 = vmatmul.msk.f32.vlgmr.msra.gmra.mxu1 %vm529_vm3, %v1624_v21 }
 0x3cd   : > { %v1625_v15 = vpop.trf.xlu1 }
 0x3ce   : > { %1856 = vmatmul.msk.f32.gmra.mxu1 %vm529_vm3, %v1625_v15 }
 0x433   : > { %v1667_v33 = vpop.f32.mrf.mxu0 }
 0x434   : > { %1679 = vst.msk [vmem:[%s465_s29] sm:$0xff] %vm529_vm3, %v1667_v33 }
 0x43b   : > { %v1670_v34 = vpop.f32.mrf.mxu0 }
 0x43c   : > { %1680 = vst.msk [vmem:[%s465_s29 + $0x8] sm:$0xff] %vm529_vm3, %v1670_v34 }
 0x443   : > { %v1673_v27 = vpop.f32.mrf.mxu1 }
 0x444   : > { %1681 = vst.msk [vmem:[%s465_s29 + $0x10] sm:$0xff] %vm529_vm3, %v1673_v27 }
 0x44b   : > { %v1676_v24 = vpop.f32.mrf.mxu1 }
 0x44c   : > { %1682 = vst.msk [vmem:[%s465_s29 + $0x18] sm:$0xff] %vm529_vm3, %v1676_v24 }
 0x44d PF: > { %s24_s25 = sadd.s32 1, %s2191_s25  }
 0x44e   : > { %p21_p4 = scmp.ge.s32.totalorder %s24_s25, 4  }
 0x450   :  { %23 = sbr.rel (!%p21_p4) target bundleno = 1 (0x1), region = 159 }

// kernel: forward.4
= control target key start
LH: loop header
LB: loop body
LE: loop exit
PB: predicated region body
PF: predicated region fallthrough
CT: control target
= control target key end

     0   :  { %s2388_s29 = smov 0   ;;  %s3032_s0 = inlined_call_operand.vmem [shape: f32[2,8,32], index: 0, kind: input, shape index: {}]   ;;  %s3033_s1 = inlined_call_operand.vmem [shape: f32[2,8,32], index: 1, kind: input, shape index: {}]   ;;  %s3034_s2 = inlined_call_operand.vmem [shape: f32[32,32], index: 2, kind: input, shape index: {}]   ;;  %s3035_s3 = inlined_call_operand.vmem [shape: f32[8,8], index: 3, kind: input, shape index: {}]   ;;  %s3036_s4 = inlined_call_operand.vmem [shape: f32[32,64], index: 4, kind: input, shape index: {}]   ;;  %s3037_s5 = inlined_call_operand.vmem [shape: f32[64,32], index: 5, kind: input, shape index: {}]   ;;  %s3038_s6 = inlined_call_operand.vmem [shape: f32[32,32], index: 6, kind: input, shape index: {}]   ;;  %s3039_s7 = inlined_call_operand.vmem [shape: f32[1,32], index: 7, kind: input, shape index: {}]   ;;  %s3040_s8 = inlined_call_operand.vmem [shape: bf16[8,4,8,4], index: 8, kind: input, shape index: {}]   ;;  %s3041_s9 = inlined_call_operand.vmem [shape: bf16[8,4,8,4], index: 9, kind: input, shape index: {}]   ;;  %s3042_s10 = inlined_call_operand.vmem [shape: f32[8,8], index: 10, kind: input, shape index: {}]   ;;  %s3043_s11 = inlined_call_operand.vmem [shape: f32[8,1], index: 11, kind: input, shape index: {}]   ;;  %s3044_s12 = inlined_call_operand.vmem [shape: f32[8,8], index: 12, kind: input, shape index: {}]   ;;  %s3045_s13 = inlined_call_operand.vmem [shape: f32[2,8,32], index: 13, kind: output, shape index: {0}]   ;;  %s3046_s14 = inlined_call_operand.vmem [shape: f32[2,32,8], index: 14, kind: output, shape index: {1}]  }
   0x1 LB: > { %s1885_s30 = sadd.s32 4294967295, %s2296_s29   ;;  %p1889_p0 = scmp.ge.s32.totalorder %s2296_s29, 1  ;;  %s2296_s29 = sphi %s2388_s29, %s25_s29  }
   0x2   : > { %p423_p1 = scmp.lt.s32.totalorder %s2296_s29, 3 }
   0x4   : > { %p424_p2 = pnand %p1889_p0, %p423_p1 }
   0x5   : > { %p476_p3 = scmp.lt.s32.totalorder (!%p424_p2), %s1885_s30, 1  ;;  %s2299_s15 = smov (!%p424_p2), 4  }
   0x6   : > { %427 = sbr.rel (%p424_p2) target bundleno = 1624 (0x658), region = 72  ;;  %s2300_s20 = smov (!%p424_p2), 8  }
   0x7   : > { %s2301_s25 = smov (!%p424_p2), 12   ;;  %s2302_s19 = smov (!%p424_p2), 16  }
   0x8   : > { %s2303_s18 = smov (!%p424_p2), 20   ;;  %s2306_s16 = smov (!%p424_p2), 124  }
   0x9   : > { %s2308_s17 = smov (!%p424_p2), 116   ;;  %s2309_s21 = smov (!%p424_p2), 112  }
   0xa   : > { %s2310_s22 = smov (!%p424_p2), 108  }
   0xb   : > { %v498_v0 = vld [vmem:[%s3034_s2 + $0x18] sm:$0xff]  ;;  %v497_v1 = vld [vmem:[%s3034_s2 + $0x10] sm:$0xff]  ;;  %v496_v2 = vld [vmem:[%s3034_s2 + $0x8] sm:$0xff]  ;;  %s3048_s30 = smov (!%p476_p3, %s1885_s30), 1  ;;  %vm512_vm0 = vcmask 261120   ;;  %vm537_vm1 = vcmask 64512  }
   0xc   : > { %528 = vmatpush.msra.mxu2 %v498_v0  ;;  %v495_v3 = vld [vmem:[%s3034_s2] sm:$0xff]  ;;  %s2411_s23 = sshll.u32 %s3048_s30, 3  ;;  %v503_v5 = vld [vmem:[%s3036_s4 + $0x18] sm:$0xff]  ;;  %v502_v6 = vld [vmem:[%s3036_s4 + $0x10] sm:$0xff]  ;;  %vm585_vm2 = vcmask 523264   ;;  %v2298_v29 = vmov 0  }
   0xd   : > { %s483_s26 = scalar_lea.vmem %s3033_s1, %s2411_s23  ;;  %v501_v7 = vld [vmem:[%s3036_s4 + $0x8] sm:$0xff]  ;;  %v500_v8 = vld [vmem:[%s3036_s4] sm:$0xff]  ;;  %s479_s24 = scalar_lea.vmem %s3032_s0, %s2411_s23  ;;  %v511_v13 = vld [vmem:[%s3037_s5 + $0x38] sm:$0xff]  ;;  %2148 = vset.pattern.permute.xlu0 %v2298_v29  ;;  %vm750_vm3 = vcmask 31744   ;;  %vm1522_vm4 = vcmask 1041409   ;;  %vm1637_vm5 = vcmask 1045509  }
   0xe   : > { %529 = vmatpush.msra.mxu2 %v497_v1  ;;  %v494_v4 = vld [vmem:[%s483_s26] sm:$0xff]  ;;  %v510_v14 = vld [vmem:[%s3037_s5 + $0x30] sm:$0xff]  ;;  %v509_v15 = vld [vmem:[%s3037_s5 + $0x28] sm:$0xff]  ;;  %s487_s26 = scalar_lea.vmem %s3045_s13, %s2411_s23  ;;  %vm1524_vm6 = vcmask 1042434   ;;  %vm1639_vm7 = vcmask 1046534   ;;  %vm1526_vm8 = vcmask 1043459  }
   0xf   : > { %v493_v9 = vld [vmem:[%s479_s24] sm:$0xff]  ;;  %v507_v17 = vld [vmem:[%s3037_s5 + $0x18] sm:$0xff]  ;;  %v506_v18 = vld [vmem:[%s3037_s5 + $0x10] sm:$0xff]  ;;  %vm1641_vm9 = vcmask 1047559   ;;  %vm1622_vm10 = vcmask 97280   ;;  %vm1624_vm11 = vcmask 130048  }
  0x10   : > { %530 = vmatpush.msra.mxu2 %v496_v2  ;;  %v499_v12 = vld [vmem:[%s3035_s3] sm:$0xff]  ;;  %v505_v20 = vld [vmem:[%s3037_s5 + $0x8] sm:$0xff]  ;;  %v2096_v26 = vld [vmem:[%s3040_s8 + $0x18] sm:$0xff]   ;;  %vm1626_vm12 = vcmask 162816   ;;  %vm1628_vm13 = vcmask 195584   ;;  %vm1630_vm14 = vcmask 228352  }
  0x11   : > { %v508_v16 = vld [vmem:[%s3037_s5 + $0x20] sm:$0xff]  ;;  %v1987_v27 = vunpack.c.l.bf16 %v2096_v26  ;;  %v1988_v28 = vunpack.c.h.bf16 %v2096_v26  ;;  %v2095_v30 = vld [vmem:[%s3040_s8 + $0x10] sm:$0xff]   ;;  %v2102_v48 = vld [vmem:[%s3041_s9 + $0x28] sm:$0xff]   ;;  %vm1707_vm15 = vcmask 1043456  }
  0x12   : > { %531 = vmatpush.msra.mxu2 %v495_v3  ;;  %v504_v21 = vld [vmem:[%s3037_s5] sm:$0xff]  ;;  %v1983_v33 = vunpack.c.l.bf16 %v2095_v30  ;;  %v1984_v34 = vunpack.c.h.bf16 %v2095_v30  ;;  %v2097_v37 = vld [vmem:[%s3041_s9 + $0x10] sm:$0xff]   ;;  %v2098_v52 = vld [vmem:[%s3041_s9 + $0x18] sm:$0xff]   ;;  %v2011_v53 = vunpack.c.l.bf16 %v2102_v48  ;;  %v2012_v54 = vunpack.c.h.bf16 %v2102_v48 }
  0x13   : > { %1895 = vmatmul.msk.f32.vlgmr.msra.gmra.mxu2 %vm512_vm0, %v494_v4  ;;  %v659_v31 = vld [vmem:[%s3043_s11] sm:$0xff]  ;;  %v2154_v36 = vpack.i.bf16 %v1988_v28, %v1987_v27  ;;  %v1991_v43 = vunpack.c.l.bf16 %v2097_v37  ;;  %v1992_v44 = vunpack.c.h.bf16 %v2097_v37  ;;  %v2105_v46 = vld [vmem:[%s3041_s9 + $0x30] sm:$0xff]   ;;  %v1995_v55 = vunpack.c.l.bf16 %v2098_v52  ;;  %v658_v58 = vld [vmem:[%s3038_s6 + $0x18] sm:$0xff] }
  0x14   : > { %576 = vmatpush.msrb.mxu2 %v503_v5  ;;  %v2099_v32 = vld [vmem:[%s3040_s8 + $0x20] sm:$0xff]   ;;  %663 = vperm.xlu0 %2148, %v659_v31   ;;  %v2149_v38 = vpack.i.bf16 %v1984_v34, %v1983_v33  ;;  %v2023_v50 = vunpack.c.l.bf16 %v2105_v46  ;;  %v2024_v51 = vunpack.c.h.bf16 %v2105_v46  ;;  %v1996_v56 = vunpack.c.h.bf16 %v2098_v52  ;;  %v657_v59 = vld [vmem:[%s3038_s6 + $0x10] sm:$0xff]  ;;  %v2108_v60 = vld [vmem:[%s3040_s8 + $0x48] sm:$0xff]  }
  0x15   : > { %v2101_v35 = vld [vmem:[%s3041_s9 + $0x20] sm:$0xff]   ;;  %2155 = vrot.lane.b32.xlu1 %v2154_v36, %s2299_s15  ;;  %v1999_v39 = vunpack.c.l.bf16 %v2099_v32  ;;  %v2000_v40 = vunpack.c.h.bf16 %v2099_v32  ;;  %v2159_v49 = vpack.i.bf16 %v1992_v44, %v1991_v43  ;;  %v2110_v61 = vld [vmem:[%s3041_s9 + $0x48] sm:$0xff]   ;;  %v2184_v63 = vpack.i.bf16 %v2012_v54, %v2011_v53  ;;  %v2103_v0 = vld [vmem:[%s3040_s8 + $0x30] sm:$0xff]  }
  0x16   : > { %577 = vmatpush.msrb.mxu2 %v502_v6  ;;  %v2007_v41 = vunpack.c.l.bf16 %v2101_v35  ;;  %v2008_v42 = vunpack.c.h.bf16 %v2101_v35  ;;  %2150 = vrot.lane.b32.xlu2 %v2149_v38, %s2299_s15  ;;  %v2199_v57 = vpack.i.bf16 %v2024_v51, %v2023_v50  ;;  %v656_v62 = vld [vmem:[%s3038_s6 + $0x8] sm:$0xff]  ;;  %v2164_v1 = vpack.i.bf16 %v1996_v56, %v1995_v55  ;;  %v2113_v30 = vld [vmem:[%s3041_s9 + $0x50] sm:$0xff]   ;;  %v2115_v34 = vld [vmem:[%s3040_s8 + $0x60] sm:$0xff]  }
  0x17   : > { %v2169_v47 = vpack.i.bf16 %v2000_v40, %v1999_v39  ;;  %v2035_v2 = vunpack.c.l.bf16 %v2108_v60  ;;  %v2043_v3 = vunpack.c.l.bf16 %v2110_v61  ;;  %v2100_v4 = vld [vmem:[%s3040_s8 + $0x28] sm:$0xff]   ;;  %v2015_v5 = vunpack.c.l.bf16 %v2103_v0  ;;  %v2107_v35 = vld [vmem:[%s3040_s8 + $0x40] sm:$0xff]   ;;  %v2119_v48 = vld [vmem:[%s3040_s8 + $0x70] sm:$0xff]  }
  0x18   : > { %578 = vmatpush.msrb.mxu2 %v501_v7  ;;  %v2179_v45 = vpack.i.bf16 %v2008_v42, %v2007_v41  ;;  %v2016_v6 = vunpack.c.h.bf16 %v2103_v0  ;;  %v655_v7 = vld [vmem:[%s3038_s6] sm:$0xff]  ;;  %v2055_v31 = vunpack.c.l.bf16 %v2113_v30  ;;  %v2056_v32 = vunpack.c.h.bf16 %v2113_v30  ;;  %v2116_v43 = vld [vmem:[%s3040_s8 + $0x68] sm:$0xff]  }
  0x19   : > { %v2117_v36 = vld [vmem:[%s3041_s9 + $0x60] sm:$0xff]   ;;  %v2063_v37 = vunpack.c.l.bf16 %v2115_v34  ;;  %v2064_v38 = vunpack.c.h.bf16 %v2115_v34  ;;  %v2031_v39 = vunpack.c.l.bf16 %v2107_v35  ;;  %v2032_v40 = vunpack.c.h.bf16 %v2107_v35  ;;  %v2118_v44 = vld [vmem:[%s3041_s9 + $0x68] sm:$0xff]  }
  0x1a   : > { %579 = vmatpush.msrb.mxu2 %v500_v8  ;;  %v2003_v8 = vunpack.c.l.bf16 %v2100_v4  ;;  %v2229_v33 = vpack.i.bf16 %v2056_v32, %v2055_v31  ;;  %v2071_v41 = vunpack.c.l.bf16 %v2117_v36  ;;  %v2072_v42 = vunpack.c.h.bf16 %v2117_v36  ;;  %v2093_v31 = vld [vmem:[%s3040_s8 + $0x8] sm:$0xff]  }
  0x1b   : > { %v2244_v46 = vpack.i.bf16 %v2064_v38, %v2063_v37  ;;  %v2067_v50 = vunpack.c.l.bf16 %v2116_v43  ;;  %v2075_v51 = vunpack.c.l.bf16 %v2118_v44  ;;  %v2079_v54 = vunpack.c.l.bf16 %v2119_v48  ;;  %v2094_v32 = vld [vmem:[%s3041_s9 + $0x8] sm:$0xff]  }
  0x1c   : > { %2180 = vrot.lane.b32.xlu0 %v2179_v45, %s2300_s20  ;;  %685 = vmatpush.msra.mxu2 %v658_v58  ;;  %v2111_v45 = vld [vmem:[%s3040_s8 + $0x50] sm:$0xff]   ;;  %v2080_v55 = vunpack.c.h.bf16 %v2119_v48  ;;  %v2076_v0 = vunpack.c.h.bf16 %v2118_v44  ;;  %v1980_v44 = vunpack.c.h.bf16 %v2094_v32 }
  0x1d   : > { %2170 = vrot.lane.b32.xlu1 %v2169_v47, %s2300_s20  ;;  %v2209_v47 = vpack.i.bf16 %v2032_v40, %v2031_v39  ;;  %v2047_v52 = vunpack.c.l.bf16 %v2111_v45  ;;  %v2048_v53 = vunpack.c.h.bf16 %v2111_v45  ;;  %v2259_v56 = vpack.i.bf16 %v2075_v51, %v2067_v50 }
  0x1e   : > { %2160 = vrot.lane.b32.xlu2 %v2159_v49, %s2299_s15  ;;  %686 = vmatpush.msra.mxu2 %v657_v59  ;;  %v2249_v49 = vpack.i.bf16 %v2072_v42, %v2071_v41  ;;  %v2264_v58 = vpack.i.bf16 %v2080_v55, %v2079_v54  ;;  %v2112_v59 = vld [vmem:[%s3040_s8 + $0x58] sm:$0xff]  }
  0x20   : > { %687 = vmatpush.msra.mxu2 %v656_v62  ;;  %v2122_v62 = vld [vmem:[%s3041_s9 + $0x78] sm:$0xff]  }
  0x22   : > { %688 = vmatpush.msra.mxu2 %v655_v7 }
  0x24   : > { %2200 = vrot.lane.b32.xlu0 %v2199_v57, %s2301_s25  ;;  %v2224_v57 = vpack.i.bf16 %v2048_v53, %v2047_v52  ;;  %v1979_v52 = vunpack.c.l.bf16 %v2094_v32 }
  0x25   : > { %2185 = vrot.lane.b32.xlu1 %v2184_v63, %s2300_s20  ;;  %v2068_v63 = vunpack.c.h.bf16 %v2116_v43  ;;  %v1972_v43 = vunpack.c.h.bf16 %v2093_v31 }
  0x26   : > { %2165 = vrot.lane.b32.xlu2 %v2164_v1, %s2299_s15  ;;  %s2304_s15 = smov 24   ;;  %v2051_v1 = vunpack.c.l.bf16 %v2112_v59 }
  0x96   : > { %v533_v10 = vpop.f32.mrf.mxu2 }
  0x97   : > { %v536_v11 = vadd.f32 %v533_v10, %v493_v9  ;;  %v2004_v9 = vunpack.c.h.bf16 %v2100_v4  ;;  %v2219_v10 = vpack.i.bf16 %v2043_v3, %v2035_v2  ;;  %v2091_v4 = vunpack.c.l.bf16 %v2122_v62 }
  0x99   : > { %556 = vmatpush.msra.mxu3 %v536_v11  ;;  %v2189_v11 = vpack.i.bf16 %v2016_v6, %v2015_v5  ;;  %2220 = vrot.lane.b32.xlu0 %v2219_v10, %s2302_s19  ;;  %v2274_v5 = vpack.i.bf16 %v2076_v0, %v2068_v63 }
  0x9a   : > { %1896 = vmatmul.msk.f32.vlgmr.msra.gmra.mxu3 %vm537_vm1, %v499_v12 }
  0x9b   : > { %597 = vmatpush.msrb.mxu3 %v511_v13  ;;  %v2174_v13 = vpack.i.bf16 %v2004_v9, %v2003_v8  ;;  %2190 = vrot.lane.b32.xlu1 %v2189_v11, %s2301_s25  ;;  %v2052_v8 = vunpack.c.h.bf16 %v2112_v59  ;;  %v2121_v11 = vld [vmem:[%s3041_s9 + $0x70] sm:$0xff]  }
  0x9d   : > { %598 = vmatpush.msrb.mxu3 %v510_v14  ;;  %v2036_v14 = vunpack.c.h.bf16 %v2108_v60  ;;  %2175 = vrot.lane.b32.xlu2 %v2174_v13, %s2300_s20  ;;  %v2114_v60 = vld [vmem:[%s3041_s9 + $0x58] sm:$0xff]   ;;  %s2305_s20 = smov 28   ;;  %v2088_v13 = vunpack.c.h.bf16 %v2121_v11 }
  0x9e   : > { %v2059_v2 = vunpack.c.l.bf16 %v2114_v60  ;;  %v2060_v9 = vunpack.c.h.bf16 %v2114_v60 }
  0x9f   : > { %599 = vmatpush.msrb.mxu3 %v509_v15  ;;  %v2044_v15 = vunpack.c.h.bf16 %v2110_v61  ;;  %v2120_v61 = vld [vmem:[%s3040_s8 + $0x78] sm:$0xff]  }
  0xa0   : > { %v2083_v3 = vunpack.c.l.bf16 %v2120_v61  ;;  %v2239_v6 = vpack.i.bf16 %v2059_v2, %v2051_v1  ;;  %v2254_v10 = vpack.i.bf16 %v2060_v9, %v2052_v8 }
  0xa1   : > { %600 = vmatpush.msrb.mxu3 %v508_v16  ;;  %v2104_v16 = vld [vmem:[%s3040_s8 + $0x38] sm:$0xff]  }
  0xa2   : > { %v2279_v7 = vpack.i.bf16 %v2091_v4, %v2083_v3 }
  0xa3   : > { %601 = vmatpush.msrb.mxu3 %v507_v17  ;;  %v631_v17 = vld [vmem:[%s3042_s10] sm:$0xff] }
  0xa5   : > { %602 = vmatpush.msrb.mxu3 %v506_v18 }
  0xa7   : > { %603 = vmatpush.msrb.mxu3 %v505_v20 }
  0xa9   : > { %604 = vmatpush.msrb.mxu3 %v504_v21  ;;  %v2019_v21 = vunpack.c.l.bf16 %v2104_v16 }
 0x11d   : > { %v558_v19 = vpop.f32.mrf.mxu3 }
 0x11e   : > { %1897 = vmatmul.msk.f32.vlgmr.msrb.gmra.mxu2 %vm512_vm0, %v558_v19 }
 0x1a1   : > { %v581_v22 = vpop.f32.mrf.mxu2 }
 0x1a2   : > { %v584_v23 = vmax.f32 %v581_v22, 0.0  ;;  %v2020_v22 = vunpack.c.h.bf16 %v2104_v16  ;;  %v2084_v16 = vunpack.c.h.bf16 %v2120_v61 }
 0x1a4   : > { %1898 = vmatmul.msk.f32.vlgmr.msrb.gmra.mxu3 %vm585_vm2, %v584_v23  ;;  %v2234_v23 = vpack.i.bf16 %v2044_v15, %v2036_v14  ;;  %v2194_v26 = vpack.i.bf16 %v2020_v22, %v2019_v21  ;;  %v2596_v21 = vpop.permute.xlu2 %2150 }
 0x1a6   : > { %2235 = vrot.lane.b32.xlu0 %v2234_v23, %s2302_s19  ;;  %2195 = vrot.lane.b32.xlu2 %v2194_v26, %s2301_s25 }
 0x1ac   : > { %v2611_v30 = vpop.permute.xlu2 %2160 }
 0x1ae   : > { %2210 = vrot.lane.b32.xlu2 %v2209_v47, %s2302_s19  ;;  %2250 = vrot.lane.b32.xlu0 %v2249_v49, %s2304_s15 }
 0x1b4   : > { %v2635_v0 = vpop.permute.xlu2 %2165 }
 0x1b6   : > { %2225 = vrot.lane.b32.xlu2 %v2224_v57, %s2303_s18  ;;  %2265 = vrot.lane.b32.xlu0 %v2264_v58, %s2305_s20 }
 0x1be   : > { %2240 = vrot.lane.b32.xlu2 %v2239_v6, %s2303_s18  ;;  %2280 = vrot.lane.b32.xlu0 %v2279_v7, %s2305_s20 }
 0x1c6   : > { %2255 = vrot.lane.b32.xlu2 %v2254_v10, %s2303_s18 }
 0x227   : > { %v606_v24 = vpop.f32.mrf.mxu3 }
 0x228   : > { %v609_v25 = vadd.f32 %v606_v24, %v558_v19 }
 0x22a   : > { %625 = vmatpush.msra.mxu1 %v609_v25  ;;  %v2109_v25 = vld [vmem:[%s3041_s9 + $0x40] sm:$0xff]  }
 0x22b   : > { %1899 = vmatmul.msk.f32.vlgmr.msra.gmra.mxu1 %vm537_vm1, %v499_v12  ;;  %v2106_v12 = vld [vmem:[%s3041_s9 + $0x38] sm:$0xff]   ;;  %v2039_v27 = vunpack.c.l.bf16 %v2109_v25  ;;  %v2040_v28 = vunpack.c.h.bf16 %v2109_v25 }
 0x22c   : > { %v2027_v18 = vunpack.c.l.bf16 %v2106_v12  ;;  %v2028_v19 = vunpack.c.h.bf16 %v2106_v12  ;;  %v2087_v12 = vunpack.c.l.bf16 %v2121_v11 }
 0x22d   : > { %v2214_v29 = vpack.i.bf16 %v2040_v28, %v2039_v27  ;;  %v1966_v27 = vld [vmem:[%s3040_s8] sm:$0xff]  }
 0x22e   : > { %v2204_v24 = vpack.i.bf16 %v2028_v19, %v2027_v18  ;;  %v2269_v15 = vpack.i.bf16 %v2088_v13, %v2087_v12  ;;  %v2289_v19 = vld [vmem:[%s3039_s7] ss:$0 sm:$0xff]  ;;  %v1968_v35 = vunpack.c.h.bf16 %v1966_v27  ;;  %v2647_v13 = vpop.permute.xlu2 %2175 }
 0x230   : > { %2205 = vrot.lane.b32.xlu1 %v2204_v24, %s2301_s25  ;;  %2270 = vrot.lane.b32.xlu2 %v2269_v15, %s2305_s20  ;;  %v2598_v24 = vpop.permute.xlu1 %2155  ;;  %v2168_v15 = vunpack.i.h.bf16 %v2635_v0 }
 0x238   : > { %2215 = vrot.lane.b32.xlu1 %v2214_v29, %s2302_s19  ;;  %v1974_v29 = vld [vmem:[%s3041_s9] sm:$0xff]   ;;  %v2626_v45 = vpop.permute.xlu1 %2170 }
 0x239   : > { %v1975_v37 = vunpack.c.l.bf16 %v1974_v29  ;;  %v1976_v38 = vunpack.c.h.bf16 %v1974_v29 }
 0x240   : > { %2230 = vrot.lane.b32.xlu1 %v2229_v33, %s2303_s18  ;;  %v1967_v33 = vunpack.c.l.bf16 %v1966_v27  ;;  %v2643_v10 = vpop.permute.xlu1 %2185  ;;  %s2312_s18 = smov 100  }
 0x248   : > { %2245 = vrot.lane.b32.xlu1 %v2244_v46, %s2304_s15 }
 0x250   : > { %2260 = vrot.lane.b32.xlu1 %v2259_v56, %s2304_s15 }
 0x258   : > { %2275 = vrot.lane.b32.xlu1 %v2274_v5, %s2304_s15  ;;  %s2311_s15 = smov 104  }
 0x2a8   : > { %v627_v20 = vpop.f32.mrf.mxu1 }
 0x2a9   : > { %630 = vst.msk [vmem:[%s487_s26] sm:$0xff] %vm512_vm0, %v627_v20  ;;  %650 = vmatpush.msra.mxu0 %v627_v20  ;;  %v664_v20 = vpop.permute.xlu0 %663  ;;  %s1964_s26 = sshll.u32 %s3048_s30, 5 }
 0x2aa   : > { %1900 = vmatmul.msk.f32.vlgmr.msra.gmra.mxu0 %vm537_vm1, %v631_v17  ;;  %v2092_v17 = vunpack.c.h.bf16 %v2122_v62  ;;  %v669_v22 = vmul.f32 %v2289_v19, %v664_v20  ;;  %v1971_v62 = vunpack.c.l.bf16 %v2093_v31  ;;  %v2158_v20 = vunpack.i.h.bf16 %v2598_v24  ;;  %s492_s19 = scalar_lea.vmem %s3046_s14, %s1964_s26 }
 0x2ab   : > { %v2153_v31 = vunpack.i.h.bf16 %v2596_v21 }
 0x2ac   : > { %v2284_v18 = vpack.i.bf16 %v2092_v17, %v2084_v16 }
 0x2ae   : > { %2285 = vrot.lane.b32.xlu2 %v2284_v18, %s2305_s20  ;;  %s2307_s20 = smov 120  }
 0x2b1   : > { %v2181_v27 = vpop.permute.xlu0 %2180 }
 0x2b2   : > { %v2183_v32 = vunpack.i.h.bf16 %v2181_v27 }
 0x327   : > { %v652_v14 = vpop.f32.mrf.mxu0 }
 0x328   : > { %1901 = vmatmul.msk.f32.vlgmr.msra.gmra.mxu2 %vm512_vm0, %v652_v14 }
 0x3ab   : > { %v690_v23 = vpop.f32.mrf.mxu2 }
 0x3ac   : > { %v2600_v25 = vadd.f32 %v690_v23, %v669_v22  ;;  %v2656_v22 = vpop.permute.xlu1 %2190 }
 0x3ae   : > { %713 = vst [vmem:[#allocation1] sm:$0xff] %v2600_v25  ;;  %v712_v26 = vrot.slane %v2600_v25, 3  ;;  %v710_v28 = vrot.slane %v2600_v25, 1  ;;  %v2620_v34 = vperm.slane %v2600_v25, 0  ;;  %v711_v47 = vrot.slane %v2600_v25, 2 }
 0x3b0   : > { %v2622_v36 = vperm.slane %v712_v26, 0  ;;  %v2624_v39 = vperm.slane %v710_v28, 0  ;;  %v730_v50 = vmul.f32 %v1967_v33, %v2620_v34  ;;  %v2633_v59 = vperm.slane %v711_v47, 0 }
 0x3b1   : > { %v2163_v26 = vunpack.i.h.bf16 %v2611_v30  ;;  %v2162_v47 = vunpack.i.l.bf16 %v2611_v30 }
 0x3b2   : > { %v731_v54 = vmul.f32 %v1968_v35, %v2624_v39  ;;  %v733_v57 = vmul.f32 %v1972_v43, %v2622_v36  ;;  %v732_v8 = vmul.f32 %v1971_v62, %v2633_v59  ;;  %v809_v29 = vmul.f32 %v2158_v20, %v2622_v36 }
 0x3b3   : > { %v2173_v43 = vunpack.i.h.bf16 %v2626_v45  ;;  %v2178_v20 = vunpack.i.h.bf16 %v2647_v13 }
 0x3b5   : > { %v715_v40 = vld [vmem:[#allocation1 + $0x4] ss:$9 sm:$0xff]  ;;  %v719_v42 = vld [vmem:[#allocation1 + $0x6] ss:$9 sm:$0xff] }
 0x3b6   : > { %v717_v41 = vld [vmem:[#allocation1 + $0x5] ss:$9 sm:$0xff]  ;;  %v721_v46 = vld [vmem:[#allocation1 + $0x7] ss:$9 sm:$0xff]  ;;  %v734_v48 = vperm.slane %v715_v40, 0  ;;  %v736_v56 = vperm.slane %v719_v42, 0 }
 0x3b7   : > { %v735_v49 = vperm.slane %v717_v41, 0  ;;  %781 = vst [vmem:[#allocation1] sm:$0xff] %v2600_v25  ;;  %v737_v51 = vperm.slane %v721_v46, 0  ;;  %v807_v46 = vmul.f32 %v2153_v31, %v2624_v39 }
 0x3b8   : > { %v742_v53 = vmul.f32 %v1975_v37, %v734_v48  ;;  %v744_v3 = vmul.f32 %v1979_v52, %v736_v56  ;;  %v2661_v37 = vpop.permute.xlu2 %2195  ;;  %v2172_v56 = vunpack.i.l.bf16 %v2626_v45 }
 0x3b9   : > { %v743_v55 = vmul.f32 %v1976_v38, %v735_v49  ;;  %v745_v58 = vmul.f32 %v1980_v44, %v737_v51  ;;  %v2182_v49 = vunpack.i.l.bf16 %v2181_v27 }
 0x3ba   : > { %v746_v60 = vadd.f32 %v742_v53, %v730_v50  ;;  %v748_v11 = vadd.f32 %v744_v3, %v732_v8  ;;  %v2674_v50 = vpop.permute.xlu1 %2205  ;;  %v2188_v8 = vunpack.i.h.bf16 %v2643_v10 }
 0x3bb   : > { %v747_v61 = vadd.f32 %v743_v55, %v731_v54  ;;  %v749_v63 = vadd.f32 %v745_v58, %v733_v57  ;;  %v914_v54 = vmul.f32 %v2173_v43, %v2624_v39  ;;  %v2152_v55 = vunpack.i.l.bf16 %v2596_v21  ;;  %v2679_v57 = vpop.permute.xlu0 %2200 }
 0x3bc   : > { %v751_v1 = vsel %vm750_vm3, %v746_v60, 0.0  ;;  %v757_v12 = vsel %vm750_vm3, %v748_v11, 0.0  ;;  %v2202_v58 = vunpack.i.l.bf16 %v2679_v57 }
 0x3bd   : > { %v754_v2 = vsel %vm750_vm3, %v747_v61, 0.0  ;;  %752 = vadd.xlane.f32.xlu0 %v751_v1  ;;  %v760_v4 = vsel %vm750_vm3, %v749_v63, 0.0  ;;  %v2192_v63 = vunpack.i.l.bf16 %v2656_v22 }
 0x3be   : > { %755 = vadd.xlane.f32.xlu1 %v754_v2  ;;  %v783_v5 = vld [vmem:[#allocation1 + $0x4] ss:$9 sm:$0xff]  ;;  %v2640_v7 = vld [vmem:[#allocation1 + $0x6] ss:$9 sm:$0xff]  ;;  %761 = vadd.xlane.f32.xlu2 %v760_v4  ;;  %v913_v4 = vmul.f32 %v2172_v56, %v2620_v34 }
 0x3bf   : > { %v785_v6 = vld [vmem:[#allocation1 + $0x5] ss:$9 sm:$0xff]  ;;  %v789_v9 = vld [vmem:[#allocation1 + $0x7] ss:$9 sm:$0xff]  ;;  %v810_v53 = vperm.slane %v783_v5, 0  ;;  %v806_v5 = vmul.f32 %v2152_v55, %v2620_v34 }
 0x3c0   : > { %888 = vst [vmem:[#allocation1] sm:$0xff] %v2600_v25  ;;  %v813_v14 = vperm.slane %v789_v9, 0  ;;  %v811_v28 = vperm.slane %v785_v6, 0  ;;  %v2691_v21 = vpop.permute.xlu2 %2210  ;;  %v2167_v6 = vunpack.i.l.bf16 %v2635_v0  ;;  %v2208_v0 = vunpack.i.h.bf16 %v2674_v50 }
 0x3c1   : > { %v834_v62 = vmul.f32 %v2162_v47, %v810_v53  ;;  %v2177_v53 = vunpack.i.l.bf16 %v2647_v13 }
 0x3c2   : > { %v837_v23 = vmul.f32 %v2168_v15, %v813_v14  ;;  %v835_v42 = vmul.f32 %v2163_v26, %v811_v28  ;;  %v812_v15 = vperm.slane %v2640_v7, 0  ;;  %v2198_v7 = vunpack.i.h.bf16 %v2661_v37 }
 0x3c4   : > { %v841_v33 = vadd.f32 %v837_v23, %v809_v29  ;;  %v839_v51 = vadd.f32 %v835_v42, %v807_v46  ;;  %v2705_v23 = vpop.permute.xlu1 %2215  ;;  %v836_v28 = vmul.f32 %v2167_v6, %v812_v15  ;;  %v2203_v42 = vunpack.i.h.bf16 %v2679_v57 }
 0x3c6   : > { %758 = vadd.xlane.f32.xlu1 %v757_v12  ;;  %v838_v12 = vadd.f32 %v834_v62, %v806_v5 }
 0x3c7   : > { %v890_v16 = vld [vmem:[#allocation1 + $0x4] ss:$9 sm:$0xff]  ;;  %v2650_v18 = vld [vmem:[#allocation1 + $0x6] ss:$9 sm:$0xff] }
 0x3c8   : > { %v892_v17 = vld [vmem:[#allocation1 + $0x5] ss:$9 sm:$0xff]  ;;  %v2652_v19 = vld [vmem:[#allocation1 + $0x7] ss:$9 sm:$0xff]  ;;  %v917_v52 = vperm.slane %v890_v16, 0  ;;  %v1020_v16 = vmul.f32 %v2192_v63, %v2620_v34  ;;  %v2723_v46 = vpop.permute.xlu2 %2225 }
 0x3c9   : > { %995 = vst [vmem:[#allocation1] sm:$0xff] %v2600_v25  ;;  %v918_v35 = vperm.slane %v892_v17, 0  ;;  %v920_v14 = vperm.slane %v2652_v19, 0  ;;  %v2157_v17 = vunpack.i.l.bf16 %v2598_v24  ;;  %v2221_v24 = vpop.permute.xlu0 %2220 }
 0x3ca   : > { %v941_v61 = vmul.f32 %v2182_v49, %v917_v52  ;;  %v1023_v52 = vmul.f32 %v2198_v7, %v2622_v36 }
 0x3cb   : > { %v942_v48 = vmul.f32 %v2183_v32, %v918_v35  ;;  %v944_v19 = vmul.f32 %v2188_v8, %v920_v14  ;;  %v808_v35 = vmul.f32 %v2157_v17, %v2633_v59  ;;  %v2222_v14 = vunpack.i.l.bf16 %v2221_v24 }
 0x3cc   : > { %v945_v11 = vadd.f32 %v941_v61, %v913_v4  ;;  %v2735_v57 = vpop.permute.xlu1 %2230 }
 0x3cd   : > { %v946_v30 = vadd.f32 %v942_v48, %v914_v54  ;;  %v840_v48 = vadd.f32 %v836_v28, %v808_v35  ;;  %v2218_v54 = vunpack.i.h.bf16 %v2705_v23 }
 0x3d0   : > { %v997_v38 = vld [vmem:[#allocation1 + $0x4] ss:$9 sm:$0xff]  ;;  %v2665_v41 = vld [vmem:[#allocation1 + $0x6] ss:$9 sm:$0xff]  ;;  %v2753_v15 = vpop.permute.xlu2 %2240 }
 0x3d1   : > { %v2663_v40 = vld [vmem:[#allocation1 + $0x5] ss:$9 sm:$0xff]  ;;  %v2668_v44 = vld [vmem:[#allocation1 + $0x7] ss:$9 sm:$0xff]  ;;  %852 = vrot.lane.b32.xlu0 %v841_v33, %s2306_s16  ;;  %v1024_v60 = vperm.slane %v997_v38, 0  ;;  %v916_v33 = vmul.f32 %v2178_v20, %v2622_v36  ;;  %v2187_v38 = vunpack.i.l.bf16 %v2643_v10  ;;  %v2193_v10 = vunpack.i.h.bf16 %v2656_v22  ;;  %v2236_v4 = vpop.permute.xlu0 %2235 }
 0x3d2   : > { %1102 = vst [vmem:[#allocation1] sm:$0xff] %v2600_v25  ;;  %v1027_v27 = vperm.slane %v2668_v44, 0  ;;  %v1025_v49 = vperm.slane %v2663_v40, 0  ;;  %v915_v22 = vmul.f32 %v2177_v53, %v2633_v59  ;;  %v2232_v53 = vunpack.i.l.bf16 %v2735_v57 }
 0x3d3   : > { %v1048_v9 = vmul.f32 %v2202_v58, %v1024_v60  ;;  %v948_v47 = vadd.f32 %v944_v19, %v916_v33  ;;  %v1021_v13 = vmul.f32 %v2193_v10, %v2624_v39  ;;  %v2223_v60 = vunpack.i.h.bf16 %v2221_v24 }
 0x3d4   : > { %v1051_v44 = vmul.f32 %v2208_v0, %v1027_v27  ;;  %v1049_v40 = vmul.f32 %v2203_v42, %v1025_v49  ;;  %v2217_v27 = vunpack.i.l.bf16 %v2705_v23  ;;  %v2238_v19 = vunpack.i.h.bf16 %v2236_v4 }
 0x3d5   : > { %v1052_v26 = vadd.f32 %v1048_v9, %v1020_v16  ;;  %v2233_v16 = vunpack.i.h.bf16 %v2735_v57  ;;  %v2237_v42 = vunpack.i.l.bf16 %v2236_v4 }
 0x3d6   : > { %848 = vrot.lane.b32.xlu2 %v839_v51, %s2306_s16  ;;  %v919_v51 = vperm.slane %v2650_v18, 0  ;;  %v1055_v55 = vadd.f32 %v1051_v44, %v1023_v52  ;;  %v2213_v18 = vunpack.i.h.bf16 %v2691_v21  ;;  %v1053_v6 = vadd.f32 %v1049_v40, %v1021_v13 }
 0x3d8   : > { %v943_v58 = vmul.f32 %v2187_v38, %v919_v51  ;;  %v2212_v38 = vunpack.i.l.bf16 %v2691_v21  ;;  %v2769_v49 = vpop.permute.xlu2 %2255 }
 0x3d9   : > { %v2684_v1 = vld [vmem:[#allocation1 + $0x4] ss:$9 sm:$0xff]  ;;  %v2688_v3 = vld [vmem:[#allocation1 + $0x6] ss:$9 sm:$0xff]  ;;  %955 = vrot.lane.b32.xlu0 %v946_v30, %s2307_s20  ;;  %v2207_v30 = vunpack.i.l.bf16 %v2674_v50  ;;  %v1128_v50 = vmul.f32 %v2213_v18, %v2624_v39  ;;  %v2251_v44 = vpop.permute.xlu0 %2250 }
 0x3da   : > { %v2686_v2 = vld [vmem:[#allocation1 + $0x5] ss:$9 sm:$0xff]  ;;  %v2693_v45 = vld [vmem:[#allocation1 + $0x7] ss:$9 sm:$0xff]  ;;  %v947_v8 = vadd.f32 %v943_v58, %v915_v22  ;;  %v1133_v9 = vperm.slane %v2688_v3, 0  ;;  %v1131_v33 = vperm.slane %v2684_v1, 0  ;;  %v1130_v1 = vmul.f32 %v2237_v42, %v2622_v36 }
 0x3db   : > { %1209 = vst [vmem:[#allocation1] sm:$0xff] %v2600_v25  ;;  %v1132_v56 = vperm.slane %v2686_v2, 0  ;;  %v1127_v21 = vmul.f32 %v2212_v38, %v2620_v34  ;;  %v2253_v10 = vunpack.i.h.bf16 %v2251_v44  ;;  %v2227_v22 = vunpack.i.l.bf16 %v2723_v46 }
 0x3dc   : > { %v1157_v3 = vmul.f32 %v2223_v60, %v1133_v9  ;;  %v1155_v52 = vmul.f32 %v2217_v27, %v1131_v33 }
 0x3dd   : > { %v1156_v2 = vmul.f32 %v2218_v54, %v1132_v56  ;;  %v1234_v9 = vmul.f32 %v2227_v22, %v2620_v34 }
 0x3de   : > { %953 = vrot.lane.b32.xlu2 %v945_v11, %s2307_s20  ;;  %v1026_v11 = vperm.slane %v2665_v41, 0  ;;  %v2228_v41 = vunpack.i.h.bf16 %v2723_v46  ;;  %v1159_v40 = vadd.f32 %v1155_v52, %v1127_v21 }
 0x3df   : > { %846 = vrot.lane.b32.xlu1 %v838_v12, %s2306_s16  ;;  %v2197_v12 = vunpack.i.l.bf16 %v2661_v37  ;;  %v1160_v17 = vadd.f32 %v1156_v2, %v1128_v50  ;;  %v1129_v37 = vmul.f32 %v2222_v14, %v2633_v59 }
 0x3e0   : > { %v1050_v0 = vmul.f32 %v2207_v30, %v1026_v11  ;;  %v1235_v35 = vmul.f32 %v2228_v41, %v2624_v39  ;;  %v2243_v11 = vunpack.i.h.bf16 %v2753_v15 }
 0x3e1   : > { %1060 = vrot.lane.b32.xlu0 %v1052_v26, %s2308_s17  ;;  %v1022_v26 = vmul.f32 %v2197_v12, %v2633_v59  ;;  %v1161_v7 = vadd.f32 %v1157_v3, %v1129_v37  ;;  %v2782_v2 = vpop.permute.xlu0 %2265  ;;  %v2242_v3 = vunpack.i.l.bf16 %v2753_v15 }
 0x3e2   : > { %v2713_v29 = vld [vmem:[#allocation1 + $0x4] ss:$9 sm:$0xff]  ;;  %v2715_v32 = vld [vmem:[#allocation1 + $0x6] ss:$9 sm:$0xff] }
 0x3e3   : > { %v1213_v31 = vld [vmem:[#allocation1 + $0x5] ss:$9 sm:$0xff]  ;;  %v2721_v43 = vld [vmem:[#allocation1 + $0x7] ss:$9 sm:$0xff]  ;;  %v1054_v24 = vadd.f32 %v1050_v0, %v1022_v26  ;;  %v1238_v18 = vperm.slane %v2713_v29, 0  ;;  %v2267_v0 = vunpack.i.l.bf16 %v2782_v2 }
 0x3e4   : > { %1316 = vst [vmem:[#allocation1] sm:$0xff] %v2600_v25  ;;  %v1239_v20 = vperm.slane %v1213_v31, 0  ;;  %v1134_v31 = vperm.slane %v2693_v45, 0 }
 0x3e5   : > { %v1448_v15 = vmul.f32 %v2267_v0, %v2620_v34 }
 0x3e6   : > { %959 = vrot.lane.b32.xlu2 %v948_v47, %s2307_s20  ;;  %v1263_v28 = vmul.f32 %v2233_v16, %v1239_v20  ;;  %v2252_v47 = vunpack.i.l.bf16 %v2251_v44  ;;  %v1158_v51 = vmul.f32 %v2238_v19, %v1134_v31  ;;  %v2258_v31 = vunpack.i.h.bf16 %v2769_v49 }
 0x3e7   : > { %850 = vrot.lane.b32.xlu1 %v840_v48, %s2306_s16 }
 0x3e8   : > { %v1267_v23 = vadd.f32 %v1263_v28, %v1235_v35  ;;  %v1162_v56 = vadd.f32 %v1158_v51, %v1130_v1 }
 0x3e9   : > { %1066 = vrot.lane.b32.xlu0 %v1055_v55, %s2308_s17 }
 0x3eb   : > { %v2742_v61 = vld [vmem:[#allocation1 + $0x7] ss:$9 sm:$0xff]  ;;  %v1318_v62 = vld [vmem:[#allocation1 + $0x4] ss:$9 sm:$0xff] }
 0x3ec   : > { %v2744_v63 = vld [vmem:[#allocation1 + $0x5] ss:$9 sm:$0xff]  ;;  %v1345_v48 = vperm.slane %v1318_v62, 0  ;;  %v1348_v37 = vperm.slane %v2742_v61, 0  ;;  %v1241_v61 = vperm.slane %v2721_v43, 0 }
 0x3ed   : > { %v2746_v5 = vld [vmem:[#allocation1 + $0x6] ss:$9 sm:$0xff]  ;;  %v1346_v58 = vperm.slane %v2744_v63, 0 }
 0x3ee   : > { %1423 = vst [vmem:[#allocation1] sm:$0xff] %v2600_v25  ;;  %1062 = vrot.lane.b32.xlu2 %v1053_v6, %s2308_s17  ;;  %v2246_v25 = vpop.permute.xlu1 %2245  ;;  %v1369_v54 = vmul.f32 %v2252_v47, %v1345_v48  ;;  %v1347_v62 = vperm.slane %v2746_v5, 0  ;;  %v1262_v6 = vmul.f32 %v2232_v53, %v1238_v18  ;;  %v1265_v52 = vmul.f32 %v2258_v31, %v1241_v61 }
 0x3ef   : > { %957 = vrot.lane.b32.xlu1 %v947_v8, %s2307_s20  ;;  %v2247_v45 = vunpack.i.l.bf16 %v2246_v25  ;;  %v2248_v30 = vunpack.i.h.bf16 %v2246_v25  ;;  %v1370_v4 = vmul.f32 %v2253_v10, %v1346_v58  ;;  %v2271_v8 = vpop.permute.xlu2 %2270 }
 0x3f0   : > { %v2272_v50 = vunpack.i.l.bf16 %v2271_v8  ;;  %v1266_v5 = vadd.f32 %v1262_v6, %v1234_v9  ;;  %v2273_v43 = vunpack.i.h.bf16 %v2271_v8 }
 0x3f1   : > { %1169 = vrot.lane.b32.xlu0 %v1160_v17, %s2309_s21  ;;  %v1341_v13 = vmul.f32 %v2247_v45, %v2620_v34  ;;  %v1342_v46 = vmul.f32 %v2248_v30, %v2624_v39  ;;  %v1240_v17 = vperm.slane %v2715_v32, 0  ;;  %v2281_v32 = vpop.permute.xlu0 %2280 }
 0x3f2   : > { %v2283_v35 = vunpack.i.h.bf16 %v2281_v32  ;;  %v2282_v48 = vunpack.i.l.bf16 %v2281_v32 }
 0x3f3   : > { %v1373_v57 = vadd.f32 %v1369_v54, %v1341_v13  ;;  %v1374_v14 = vadd.f32 %v1370_v4, %v1342_v46  ;;  %v1264_v19 = vmul.f32 %v2243_v11, %v1240_v17 }
 0x3f4   : > { %v1450_v1 = vmul.f32 %v2282_v48, %v2633_v59 }
 0x3f5   : > { %v1425_v29 = vld [vmem:[#allocation1 + $0x4] ss:$9 sm:$0xff] }
 0x3f6   : > { %1171 = vrot.lane.b32.xlu2 %v1161_v7, %s2309_s21  ;;  %v2261_v55 = vpop.permute.xlu1 %2260  ;;  %v1452_v16 = vperm.slane %v1425_v29, 0  ;;  %v1429_v7 = vld [vmem:[#allocation1 + $0x6] ss:$9 sm:$0xff] }
 0x3f7   : > { %1064 = vrot.lane.b32.xlu1 %v1054_v24, %s2308_s17  ;;  %v2263_v60 = vunpack.i.h.bf16 %v2261_v55  ;;  %v2262_v63 = vunpack.i.l.bf16 %v2261_v55  ;;  %v1236_v24 = vmul.f32 %v2242_v3, %v2633_v59  ;;  %v1454_v38 = vperm.slane %v1429_v7, 0  ;;  %v1427_v45 = vld [vmem:[#allocation1 + $0x5] ss:$9 sm:$0xff]  ;;  %v2286_v58 = vpop.permute.xlu2 %2285 }
 0x3f8   : > { %v1476_v27 = vmul.f32 %v2272_v50, %v1452_v16  ;;  %v1453_v54 = vperm.slane %v1427_v45, 0  ;;  %v2288_v18 = vunpack.i.h.bf16 %v2286_v58 }
 0x3f9   : > { %1276 = vrot.lane.b32.xlu0 %v1267_v23, %s2310_s22  ;;  %v1371_v12 = vmul.f32 %v2263_v60, %v1347_v62  ;;  %v1343_v20 = vmul.f32 %v2262_v63, %v2633_v59  ;;  %v1268_v44 = vadd.f32 %v1264_v19, %v1236_v24  ;;  %v2257_v23 = vunpack.i.l.bf16 %v2769_v49 }
 0x3fa   : > { %v1480_v42 = vadd.f32 %v1476_v27, %v1448_v15  ;;  %v1478_v51 = vmul.f32 %v2283_v35, %v1454_v38  ;;  %v2268_v49 = vunpack.i.h.bf16 %v2782_v2  ;;  %v1477_v55 = vmul.f32 %v2273_v43, %v1453_v54 }
 0x3fb   : > { %v1375_v26 = vadd.f32 %v1371_v12, %v1343_v20  ;;  %v1237_v21 = vmul.f32 %v2257_v23, %v2622_v36  ;;  %v2287_v59 = vunpack.i.l.bf16 %v2286_v58  ;;  %v1516_v62 = vlaneseq }
 0x3fc   : > { %v1482_v53 = vadd.f32 %v1478_v51, %v1450_v1 }
 0x3fd   : > { %v1269_v10 = vadd.f32 %v1265_v52, %v1237_v21  ;;  %v1451_v60 = vmul.f32 %v2287_v59, %v2622_v36  ;;  %v2810_v2 = vand.u32 127, %v1516_v62 }
 0x3fe   : > { %1173 = vrot.lane.b32.xlu2 %v1162_v56, %s2309_s21  ;;  %v2276_v41 = vpop.permute.xlu1 %2275  ;;  %v1431_v56 = vld [vmem:[#allocation1 + $0x7] ss:$9 sm:$0xff] }
 0x3ff   : > { %1167 = vrot.lane.b32.xlu1 %v1159_v40, %s2309_s21  ;;  %v2278_v25 = vunpack.i.h.bf16 %v2276_v41  ;;  %v2277_v28 = vunpack.i.l.bf16 %v2276_v41  ;;  %v1449_v40 = vmul.f32 %v2268_v49, %v2624_v39  ;;  %v1455_v13 = vperm.slane %v1431_v56, 0 }
 0x400   : > { %v1632_v4 = vadd.s32 4, %v2810_v2 }
 0x401   : > { %1381 = vrot.lane.b32.xlu0 %v1373_v57, %s2311_s15  ;;  %v1372_v33 = vmul.f32 %v2278_v25, %v1348_v37  ;;  %v1344_v47 = vmul.f32 %v2277_v28, %v2622_v36  ;;  %v1481_v22 = vadd.f32 %v1477_v55, %v1449_v40  ;;  %v1479_v30 = vmul.f32 %v2288_v18, %v1455_v13 }
 0x403   : > { %v1376_v34 = vadd.f32 %v1372_v33, %v1344_v47  ;;  %v1483_v57 = vadd.f32 %v1479_v30, %v1451_v60 }
 0x406   : > { %1383 = vrot.lane.b32.xlu2 %v1374_v14, %s2311_s15 }
 0x407   : > { %1274 = vrot.lane.b32.xlu1 %v1266_v5, %s2310_s22 }
 0x409   : > { %1385 = vrot.lane.b32.xlu0 %v1375_v26, %s2311_s15 }
 0x40e   : > { %1488 = vrot.lane.b32.xlu2 %v1480_v42, %s2312_s18 }
 0x40f   : > { %1278 = vrot.lane.b32.xlu1 %v1268_v44, %s2310_s22 }
 0x411   : > { %1387 = vrot.lane.b32.xlu0 %v1376_v34, %s2311_s15 }
 0x416   : > { %1492 = vrot.lane.b32.xlu2 %v1482_v53, %s2312_s18 }
 0x417   : > { %1280 = vrot.lane.b32.xlu1 %v1269_v10, %s2310_s22 }
 0x41f   : > { %1490 = vrot.lane.b32.xlu1 %v1481_v22, %s2312_s18 }
 0x427   : > { %1494 = vrot.lane.b32.xlu1 %v1483_v57, %s2312_s18 }
 0x430   : > { %v753_v6 = vpop.xlane.xlu0 %752 }
 0x431   : > { %v756_v39 = vpop.xlane.xlu1 %755  ;;  %v1518_v63 = vperm.slane %v753_v6, %v2810_v2  ;;  %v1633_v29 = vperm.slane %v753_v6, %v1632_v4  ;;  %v762_v11 = vpop.xlane.xlu2 %761 }
 0x432   : > { %v1519_v8 = vperm.slane %v756_v39, %v2810_v2  ;;  %v1634_v46 = vperm.slane %v756_v39, %v1632_v4  ;;  %v1521_v5 = vperm.slane %v762_v11, %v2810_v2  ;;  %v1636_v16 = vperm.slane %v762_v11, %v1632_v4 }
 0x434   : > { %v1523_v9 = vsel %vm1522_vm4, %v1519_v8, %v1518_v63  ;;  %v1638_v36 = vsel %vm1637_vm5, %v1634_v46, %v1633_v29 }
 0x439   : > { %v759_v50 = vpop.xlane.xlu1 %758  ;;  %v849_v25 = vpop.permute.xlu2 %848 }
 0x43a   : > { %v1520_v12 = vperm.slane %v759_v50, %v2810_v2  ;;  %v1635_v14 = vperm.slane %v759_v50, %v1632_v4  ;;  %v861_v26 = vsel %vm750_vm3, %v849_v25, 0.0 }
 0x43c   : > { %v1525_v17 = vsel %vm1524_vm6, %v1520_v12, %v1523_v9  ;;  %v1640_v20 = vsel %vm1639_vm7, %v1635_v14, %v1638_v36 }
 0x43d   : > { %v2822_v3 = vsel %vm1526_vm8, %v1521_v5, %v1525_v17  ;;  %v2825_v0 = vsel %vm1641_vm9, %v1636_v16, %v1640_v20  ;;  %v2856_v5 = vadd.s32 4294967292, %v2810_v2 }
 0x441   : > { %v954_v27 = vpop.permute.xlu2 %953 }
 0x442   : > { %v965_v42 = vsel %vm750_vm3, %v954_v27, 0.0 }
 0x443   : > { %v853_v41 = vpop.permute.xlu0 %852 }
 0x444   : > { %v867_v24 = vsel %vm750_vm3, %v853_v41, 0.0 }
 0x449   : > { %v960_v33 = vpop.permute.xlu2 %959 }
 0x44a   : > { %v974_v48 = vsel %vm750_vm3, %v960_v33, 0.0 }
 0x44b   : > { %v956_v37 = vpop.permute.xlu0 %955 }
 0x44c   : > { %v968_v32 = vsel %vm750_vm3, %v956_v37, 0.0 }
 0x451   : > { %862 = vadd.xlane.f32.xlu1 %v861_v26  ;;  %v847_v19 = vpop.permute.xlu1 %846  ;;  %v1063_v61 = vpop.permute.xlu2 %1062 }
 0x452   : > { %v858_v28 = vsel %vm750_vm3, %v847_v19, 0.0  ;;  %v1075_v34 = vsel %vm750_vm3, %v1063_v61, 0.0 }
 0x453   : > { %859 = vadd.xlane.f32.xlu2 %v858_v28  ;;  %v1061_v7 = vpop.permute.xlu0 %1060 }
 0x454   : > { %v1072_v21 = vsel %vm750_vm3, %v1061_v7, 0.0 }
 0x459   : > { %969 = vadd.xlane.f32.xlu1 %v968_v32  ;;  %v851_v15 = vpop.permute.xlu1 %850  ;;  %v1172_v52 = vpop.permute.xlu2 %1171 }
 0x45a   : > { %v864_v31 = vsel %vm750_vm3, %v851_v15, 0.0  ;;  %v1185_v55 = vsel %vm750_vm3, %v1172_v52, 0.0 }
 0x45b   : > { %868 = vadd.xlane.f32.xlu2 %v867_v24  ;;  %865 = vadd.xlane.f32.xlu0 %v864_v31  ;;  %v1067_v35 = vpop.permute.xlu0 %1066 }
 0x45c   : > { %v1081_v53 = vsel %vm750_vm3, %v1067_v35, 0.0 }
 0x461   : > { %v958_v38 = vpop.permute.xlu1 %957  ;;  %v1174_v10 = vpop.permute.xlu2 %1173 }
 0x462   : > { %v971_v44 = vsel %vm750_vm3, %v958_v38, 0.0  ;;  %v1188_v18 = vsel %vm750_vm3, %v1174_v10, 0.0 }
 0x463   : > { %966 = vadd.xlane.f32.xlu0 %v965_v42  ;;  %972 = vadd.xlane.f32.xlu2 %v971_v44  ;;  %v1170_v47 = vpop.permute.xlu0 %1169 }
 0x464   : > { %v1182_v49 = vsel %vm750_vm3, %v1170_v47, 0.0 }
 0x469   : > { %v1065_v23 = vpop.permute.xlu1 %1064  ;;  %v1384_v22 = vpop.permute.xlu2 %1383 }
 0x46a   : > { %v1078_v51 = vsel %vm750_vm3, %v1065_v23, 0.0  ;;  %v1396_v60 = vsel %vm750_vm3, %v1384_v22, 0.0 }
 0x46b   : > { %975 = vadd.xlane.f32.xlu0 %v974_v48  ;;  %1076 = vadd.xlane.f32.xlu2 %v1075_v34  ;;  %v1277_v1 = vpop.permute.xlu0 %1276 }
 0x46c   : > { %1079 = vadd.xlane.f32.xlu1 %v1078_v51  ;;  %v1289_v56 = vsel %vm750_vm3, %v1277_v1, 0.0 }
 0x471   : > { %v1168_v45 = vpop.permute.xlu1 %1167  ;;  %v1489_v6 = vpop.permute.xlu2 %1488 }
 0x472   : > { %v1179_v43 = vsel %vm750_vm3, %v1168_v45, 0.0  ;;  %v1500_v63 = vsel %vm750_vm3, %v1489_v6, 0.0 }
 0x473   : > { %1073 = vadd.xlane.f32.xlu0 %v1072_v21  ;;  %1180 = vadd.xlane.f32.xlu2 %v1179_v43  ;;  %v1382_v40 = vpop.permute.xlu0 %1381 }
 0x474   : > { %1082 = vadd.xlane.f32.xlu1 %v1081_v53  ;;  %v1393_v59 = vsel %vm750_vm3, %v1382_v40, 0.0 }
 0x479   : > { %v1275_v54 = vpop.permute.xlu1 %1274  ;;  %v1493_v9 = vpop.permute.xlu2 %1492 }
 0x47a   : > { %v1286_v13 = vsel %vm750_vm3, %v1275_v54, 0.0  ;;  %v1506_v36 = vsel %vm750_vm3, %v1493_v9, 0.0  ;;  %v1546_v54 = vadd.s32 4294967288, %v2810_v2 }
 0x47b   : > { %1183 = vadd.xlane.f32.xlu0 %v1182_v49  ;;  %1186 = vadd.xlane.f32.xlu2 %v1185_v55  ;;  %v1386_v30 = vpop.permute.xlu0 %1385  ;;  %v1709_v49 = vld [vmem:[%s3044_s12] sm:$0xff] }
 0x47c   : > { %1290 = vadd.xlane.f32.xlu1 %v1289_v56  ;;  %v1399_v4 = vsel %vm750_vm3, %v1386_v30, 0.0  ;;  %1769 = vmatpush.msrb.mxu0 %v1709_v49 }
 0x47d   : > { %2123 = vmatpush.msrb.mxu1 %v1709_v49 }
 0x481   : > { %v1279_v58 = vpop.permute.xlu1 %1278 }
 0x482   : > { %v1292_v57 = vsel %vm750_vm3, %v1279_v58, 0.0 }
 0x483   : > { %1189 = vadd.xlane.f32.xlu2 %v1188_v18  ;;  %1287 = vadd.xlane.f32.xlu0 %v1286_v13  ;;  %v1388_v39 = vpop.permute.xlu0 %1387 }
 0x484   : > { %1394 = vadd.xlane.f32.xlu1 %v1393_v59  ;;  %v1402_v8 = vsel %vm750_vm3, %v1388_v39, 0.0 }
 0x489   : > { %v1281_v62 = vpop.permute.xlu1 %1280 }
 0x48a   : > { %v1295_v29 = vsel %vm750_vm3, %v1281_v62, 0.0 }
 0x48b   : > { %1397 = vadd.xlane.f32.xlu2 %v1396_v60  ;;  %1293 = vadd.xlane.f32.xlu0 %v1292_v57 }
 0x48c   : > { %1400 = vadd.xlane.f32.xlu1 %v1399_v4 }
 0x491   : > { %v1491_v46 = vpop.permute.xlu1 %1490 }
 0x492   : > { %v1503_v11 = vsel %vm750_vm3, %v1491_v46, 0.0 }
 0x493   : > { %1501 = vadd.xlane.f32.xlu2 %v1500_v63  ;;  %1296 = vadd.xlane.f32.xlu0 %v1295_v29 }
 0x494   : > { %1403 = vadd.xlane.f32.xlu1 %v1402_v8 }
 0x499   : > { %v1495_v50 = vpop.permute.xlu1 %1494 }
 0x49a   : > { %v1509_v12 = vsel %vm750_vm3, %v1495_v50, 0.0 }
 0x49b   : > { %1507 = vadd.xlane.f32.xlu2 %v1506_v36  ;;  %1504 = vadd.xlane.f32.xlu0 %v1503_v11  ;;  %v2915_v36 = vadd.s32 4294967280, %v2810_v2 }
 0x4a3   : > { %1510 = vadd.xlane.f32.xlu0 %v1509_v12 }
 0x4c4   : > { %v863_v16 = vpop.xlane.xlu1 %862 }
 0x4c5   : > { %v1535_v41 = vperm.slane %v863_v16, %v2856_v5  ;;  %v1645_v25 = vperm.slane %v863_v16, %v2810_v2 }
 0x4c6   : > { %v860_v14 = vpop.xlane.xlu2 %859 }
 0x4c7   : > { %v1534_v17 = vperm.slane %v860_v14, %v2856_v5  ;;  %v1644_v20 = vperm.slane %v860_v14, %v2810_v2 }
 0x4c9   : > { %v1538_v32 = vsel %vm1522_vm4, %v1535_v41, %v1534_v17  ;;  %v1648_v15 = vsel %vm1637_vm5, %v1645_v25, %v1644_v20 }
 0x4cc   : > { %v970_v47 = vpop.xlane.xlu1 %969 }
 0x4cd   : > { %v1548_v59 = vperm.slane %v970_v47, %v1546_v54  ;;  %v1653_v60 = vperm.slane %v970_v47, %v2856_v5 }
 0x4ce   : > { %v869_v37 = vpop.xlane.xlu2 %868  ;;  %v866_v26 = vpop.xlane.xlu0 %865 }
 0x4cf   : > { %v1537_v27 = vperm.slane %v869_v37, %v2856_v5  ;;  %v1647_v19 = vperm.slane %v869_v37, %v2810_v2  ;;  %v1536_v28 = vperm.slane %v866_v26, %v2856_v5  ;;  %v1646_v7 = vperm.slane %v866_v26, %v2810_v2 }
 0x4d1   : > { %v1539_v24 = vsel %vm1524_vm6, %v1536_v28, %v1538_v32  ;;  %v1649_v31 = vsel %vm1639_vm7, %v1646_v7, %v1648_v15  ;;  %v2932_v28 = vadd.s32 4294967276, %v2810_v2 }
 0x4d2   : > { %v1540_v33 = vsel %vm1526_vm8, %v1537_v27, %v1539_v24  ;;  %v1650_v35 = vsel %vm1641_vm9, %v1647_v19, %v1649_v31 }
 0x4d3   : > { %v2874_v38 = vsel %vm750_vm3, %v2822_v3, %v1540_v33  ;;  %v2878_v42 = vsel %vm750_vm3, %v2825_v0, %v1650_v35  ;;  %v2891_v0 = vadd.s32 4294967284, %v2810_v2 }
 0x4d6   : > { %v967_v44 = vpop.xlane.xlu0 %966  ;;  %v973_v61 = vpop.xlane.xlu2 %972 }
 0x4d7   : > { %v1547_v56 = vperm.slane %v967_v44, %v1546_v54  ;;  %v1652_v13 = vperm.slane %v967_v44, %v2856_v5  ;;  %v1549_v57 = vperm.slane %v973_v61, %v1546_v54  ;;  %v1654_v62 = vperm.slane %v973_v61, %v2856_v5 }
 0x4d8   : > { %v2945_v44 = vadd.s32 4294967272, %v2810_v2 }
 0x4d9   : > { %v1551_v6 = vsel %vm1522_vm4, %v1548_v59, %v1547_v56  ;;  %v1656_v8 = vsel %vm1637_vm5, %v1653_v60, %v1652_v13 }
 0x4da   : > { %v1552_v50 = vsel %vm1524_vm6, %v1549_v57, %v1551_v6  ;;  %v1657_v20 = vsel %vm1639_vm7, %v1654_v62, %v1656_v8 }
 0x4de   : > { %v976_v23 = vpop.xlane.xlu0 %975  ;;  %v1077_v48 = vpop.xlane.xlu2 %1076 }
 0x4df   : > { %v1080_v34 = vpop.xlane.xlu1 %1079  ;;  %v1561_v22 = vperm.slane %v1077_v48, %v2891_v0  ;;  %v1661_v30 = vperm.slane %v1077_v48, %v1546_v54  ;;  %v1550_v39 = vperm.slane %v976_v23, %v1546_v54  ;;  %v1655_v46 = vperm.slane %v976_v23, %v2856_v5 }
 0x4e0   : > { %v1562_v63 = vperm.slane %v1080_v34, %v2891_v0  ;;  %v1662_v9 = vperm.slane %v1080_v34, %v1546_v54  ;;  %v1611_v48 = vadd.s32 4294967268, %v2810_v2 }
 0x4e1   : > { %v1553_v5 = vsel %vm1526_vm8, %v1550_v39, %v1552_v50  ;;  %v1658_v26 = vsel %vm1641_vm9, %v1655_v46, %v1657_v20 }
 0x4e2   : > { %v1621_v31 = vsel %vm537_vm1, %v2874_v38, %v1553_v5  ;;  %v1701_v61 = vsel %vm537_vm1, %v2878_v42, %v1658_v26 }
 0x4e6   : > { %v1074_v51 = vpop.xlane.xlu0 %1073  ;;  %v2880_v52 = vpop.xlane.xlu2 %1180 }
 0x4e7   : > { %v1083_v45 = vpop.xlane.xlu1 %1082  ;;  %v1560_v55 = vperm.slane %v1074_v51, %v2891_v0  ;;  %v1660_v40 = vperm.slane %v1074_v51, %v1546_v54  ;;  %v1573_v27 = vperm.slane %v2880_v52, %v2915_v36  ;;  %v1668_v32 = vperm.slane %v2880_v52, %v2891_v0 }
 0x4e8   : > { %v1563_v14 = vperm.slane %v1083_v45, %v2891_v0  ;;  %v1663_v41 = vperm.slane %v1083_v45, %v1546_v54 }
 0x4e9   : > { %v1564_v4 = vsel %vm1522_vm4, %v1561_v22, %v1560_v55  ;;  %v1664_v29 = vsel %vm1637_vm5, %v1661_v30, %v1660_v40 }
 0x4ea   : > { %v1565_v11 = vsel %vm1524_vm6, %v1562_v63, %v1564_v4  ;;  %v1665_v12 = vsel %vm1639_vm7, %v1662_v9, %v1664_v29 }
 0x4eb   : > { %v1566_v19 = vsel %vm1526_vm8, %v1563_v14, %v1565_v11  ;;  %v1666_v15 = vsel %vm1641_vm9, %v1663_v41, %v1665_v12 }
 0x4ec   : > { %v1623_v47 = vsel %vm1622_vm10, %v1621_v31, %v1566_v19  ;;  %v1702_v38 = vsel %vm1622_vm10, %v1701_v61, %v1666_v15 }
 0x4ee   : > { %v1184_v1 = vpop.xlane.xlu0 %1183  ;;  %v2882_v21 = vpop.xlane.xlu2 %1186 }
 0x4ef   : > { %v2884_v43 = vpop.xlane.xlu1 %1290  ;;  %v1574_v16 = vperm.slane %v1184_v1, %v2915_v36  ;;  %v1669_v25 = vperm.slane %v1184_v1, %v2891_v0  ;;  %v1575_v24 = vperm.slane %v2882_v21, %v2915_v36  ;;  %v1670_v35 = vperm.slane %v2882_v21, %v2891_v0 }
 0x4f0   : > { %v1587_v34 = vperm.slane %v2884_v43, %v2932_v28  ;;  %v1677_v42 = vperm.slane %v2884_v43, %v2915_v36 }
 0x4f1   : > { %v1577_v33 = vsel %vm1522_vm4, %v1574_v16, %v1573_v27  ;;  %v1672_v23 = vsel %vm1637_vm5, %v1669_v25, %v1668_v32 }
 0x4f2   : > { %v1578_v45 = vsel %vm1524_vm6, %v1575_v24, %v1577_v33  ;;  %v1673_v21 = vsel %vm1639_vm7, %v1670_v35, %v1672_v23 }
 0x4f6   : > { %v2886_v3 = vpop.xlane.xlu2 %1189  ;;  %v2888_v53 = vpop.xlane.xlu0 %1287 }
 0x4f7   : > { %v2893_v10 = vpop.xlane.xlu1 %1394  ;;  %v1576_v51 = vperm.slane %v2886_v3, %v2915_v36  ;;  %v1671_v52 = vperm.slane %v2886_v3, %v2891_v0  ;;  %v1586_v1 = vperm.slane %v2888_v53, %v2932_v28  ;;  %v1676_v2 = vperm.slane %v2888_v53, %v2915_v36 }
 0x4f8   : > { %v1599_v3 = vperm.slane %v2893_v10, %v2945_v44  ;;  %v1684_v43 = vperm.slane %v2893_v10, %v2932_v28 }
 0x4f9   : > { %v1579_v56 = vsel %vm1526_vm8, %v1576_v51, %v1578_v45  ;;  %v1674_v40 = vsel %vm1641_vm9, %v1671_v52, %v1673_v21  ;;  %v1590_v59 = vsel %vm1522_vm4, %v1587_v34, %v1586_v1  ;;  %v1680_v10 = vsel %vm1637_vm5, %v1677_v42, %v1676_v2 }
 0x4fa   : > { %v1625_v50 = vsel %vm1624_vm11, %v1623_v47, %v1579_v56  ;;  %v1703_v12 = vsel %vm1624_vm11, %v1702_v38, %v1674_v40 }
 0x4fe   : > { %v2900_v58 = vpop.xlane.xlu2 %1397  ;;  %v2902_v18 = vpop.xlane.xlu0 %1293 }
 0x4ff   : > { %v2922_v17 = vpop.xlane.xlu1 %1400  ;;  %v1600_v54 = vperm.slane %v2900_v58, %v2945_v44  ;;  %v1685_v49 = vperm.slane %v2900_v58, %v2932_v28  ;;  %v1588_v0 = vperm.slane %v2902_v18, %v2932_v28  ;;  %v1678_v53 = vperm.slane %v2902_v18, %v2915_v36 }
 0x500   : > { %v1601_v30 = vperm.slane %v2922_v17, %v2945_v44  ;;  %v1686_v18 = vperm.slane %v2922_v17, %v2932_v28 }
 0x501   : > { %v1603_v60 = vsel %vm1522_vm4, %v1600_v54, %v1599_v3  ;;  %v1688_v57 = vsel %vm1637_vm5, %v1685_v49, %v1684_v43  ;;  %v1591_v39 = vsel %vm1524_vm6, %v1588_v0, %v1590_v59  ;;  %v1681_v63 = vsel %vm1639_vm7, %v1678_v53, %v1680_v10 }
 0x502   : > { %v1604_v17 = vsel %vm1524_vm6, %v1601_v30, %v1603_v60  ;;  %v1689_v20 = vsel %vm1639_vm7, %v1686_v18, %v1688_v57 }
 0x506   : > { %v1297_v37 = vpop.xlane.xlu0 %1296  ;;  %v1502_v7 = vpop.xlane.xlu2 %1501 }
 0x507   : > { %v1589_v58 = vperm.slane %v1297_v37, %v2932_v28  ;;  %v1679_v13 = vperm.slane %v1297_v37, %v2915_v36  ;;  %v1404_v22 = vpop.xlane.xlu1 %1403  ;;  %v1612_v46 = vperm.slane %v1502_v7, %v1611_v48  ;;  %v1692_v9 = vperm.slane %v1502_v7, %v2945_v44 }
 0x508   : > { %v1602_v29 = vperm.slane %v1404_v22, %v2945_v44  ;;  %v1687_v8 = vperm.slane %v1404_v22, %v2932_v28 }
 0x509   : > { %v1592_v36 = vsel %vm1526_vm8, %v1589_v58, %v1591_v39  ;;  %v1682_v11 = vsel %vm1641_vm9, %v1679_v13, %v1681_v63 }
 0x50a   : > { %v1605_v25 = vsel %vm1526_vm8, %v1602_v29, %v1604_v17  ;;  %v1690_v37 = vsel %vm1641_vm9, %v1687_v8, %v1689_v20  ;;  %v1627_v27 = vsel %vm1626_vm12, %v1625_v50, %v1592_v36  ;;  %v1704_v19 = vsel %vm1626_vm12, %v1703_v12, %v1682_v11 }
 0x50b   : > { %v1629_v31 = vsel %vm1628_vm13, %v1627_v27, %v1605_v25  ;;  %v1705_v35 = vsel %vm1628_vm13, %v1704_v19, %v1690_v37 }
 0x50e   : > { %v1505_v55 = vpop.xlane.xlu0 %1504  ;;  %v1508_v62 = vpop.xlane.xlu2 %1507 }
 0x50f   : > { %v1613_v4 = vperm.slane %v1505_v55, %v1611_v48  ;;  %v1693_v6 = vperm.slane %v1505_v55, %v2945_v44  ;;  %v1614_v14 = vperm.slane %v1508_v62, %v1611_v48  ;;  %v1694_v16 = vperm.slane %v1508_v62, %v2945_v44 }
 0x511   : > { %v1616_v5 = vsel %vm1522_vm4, %v1613_v4, %v1612_v46  ;;  %v1696_v41 = vsel %vm1637_vm5, %v1693_v6, %v1692_v9 }
 0x512   : > { %v1617_v32 = vsel %vm1524_vm6, %v1614_v14, %v1616_v5  ;;  %v1697_v15 = vsel %vm1639_vm7, %v1694_v16, %v1696_v41 }
 0x516   : > { %v1511_v26 = vpop.xlane.xlu0 %1510 }
 0x517   : > { %v1615_v28 = vperm.slane %v1511_v26, %v1611_v48  ;;  %v1695_v7 = vperm.slane %v1511_v26, %v2945_v44 }
 0x519   : > { %v1618_v24 = vsel %vm1526_vm8, %v1615_v28, %v1617_v32  ;;  %v1698_v33 = vsel %vm1641_vm9, %v1695_v7, %v1697_v15 }
 0x51a   : > { %v1631_v61 = vsel %vm1630_vm14, %v1629_v31, %v1618_v24  ;;  %v1706_v47 = vsel %vm1630_vm14, %v1705_v35, %v1698_v33 }
 0x51b   : > { %v1708_v23 = vsel %vm1707_vm15, %v1631_v61, %v1706_v47 }
 0x51c   : > { %1710 = vxpose.xlu1.b32.start.end [1/1] (short) (narrow) %v1708_v23, 32 }
 0x5c0   : > { %v1726_v44 = vpop.trf.xlu1 }
 0x5c1   : > { %1958 = vmatmul.msk.f32.vlgmr.msrb.gmra.mxu0 %vm537_vm1, %v1726_v44 }
 0x5c8   : > { %v1727_v48 = vpop.trf.xlu1 }
 0x5c9   : > { %1959 = vmatmul.msk.f32.gmra.mxu0 %vm537_vm1, %v1727_v48 }
 0x5d0   : > { %v1728_v38 = vpop.trf.xlu1 }
 0x5d1   : > { %1960 = vmatmul.msk.f32.vlgmr.msrb.gmra.mxu1 %vm537_vm1, %v1728_v38 }
 0x5d8   : > { %v1729_v34 = vpop.trf.xlu1 }
 0x5d9   : > { %1961 = vmatmul.msk.f32.gmra.mxu1 %vm537_vm1, %v1729_v34 }
 0x63e   : > { %v1771_v51 = vpop.f32.mrf.mxu0 }
 0x63f   : > { %1783 = vst.msk [vmem:[%s492_s19] sm:$0xff] %vm537_vm1, %v1771_v51 }
 0x646   : > { %v1774_v52 = vpop.f32.mrf.mxu0 }
 0x647   : > { %1784 = vst.msk [vmem:[%s492_s19 + $0x8] sm:$0xff] %vm537_vm1, %v1774_v52 }
 0x64e   : > { %v1777_v45 = vpop.f32.mrf.mxu1 }
 0x64f   : > { %1785 = vst.msk [vmem:[%s492_s19 + $0x10] sm:$0xff] %vm537_vm1, %v1777_v45 }
 0x656   : > { %v1780_v42 = vpop.f32.mrf.mxu1 }
 0x657   : > { %1786 = vst.msk [vmem:[%s492_s19 + $0x18] sm:$0xff] %vm537_vm1, %v1780_v42 }
 0x658 PF: > { %s25_s29 = sadd.s32 1, %s2296_s29  }
 0x659   : > { %p22_p4 = scmp.ge.s32.totalorder %s25_s29, 4  }
 0x65b   :  { %24 = sbr.rel (!%p22_p4) target bundleno = 1 (0x1), region = 163 }

</bundles_post_ra>
